<compile_context>
chip_gen: v6e
topology: v6e:2x2x1
jax: 0.10.0
libtpu: 0.0.40
codegen_flags: <defaults>
</compile_context>

<pallas_src>
import functools

import jax
import jax.numpy as jnp
from jax import lax
from jax.experimental import pallas as pl
from jax.experimental.pallas import tpu as pltpu


def _round_up(x, m):
    return (x + m - 1) // m * m


def _vmem_limit_bytes():
    # v7x has only 64 MiB physical VMEM per TensorCore (v5e/v6e: 128 MiB);
    # request 3/4 of physical with a 96 MiB cap so we never overshoot.
    cap = 128 * 1024 * 1024
    try:
        cap = int(getattr(pltpu.get_tpu_info(), "vmem_capacity_bytes", cap))
    except Exception:
        pass
    return int(min(cap * 3 // 4, 96 * 1024 * 1024))


_VMEM_LIMIT = _vmem_limit_bytes()


def _cparams(dimension_semantics):
    return pltpu.CompilerParams(dimension_semantics=dimension_semantics,
                                vmem_limit_bytes=_VMEM_LIMIT)


# ---------------------------------------------------------------------------
# Pass 1: stride-2 3x3 conv (+bias) with folded contraction + BN partial stats
# ---------------------------------------------------------------------------
def _conv_stats_kernel(ph_ref, w_ref, b_ref, m_ref, y_ref, st_ref, kmat,
                       *, cin_p, taps):
    # ph_ref : (1, 1, 4*cin_p, Lw)  four phase maps (row-major over channels)
    # w_ref  : (Cout, 9*cin_p)      taps folded into one contraction dim
    # b_ref  : (1, Cout, 1)
    # m_ref  : (1, Lt)              validity mask (padded-width garbage lanes)
    # y_ref  : (1, Cout, Lt)        conv + bias output (pre-BN)
    # st_ref : (1, 1, Cout, 2)      per-tile [sum, sum-of-squares] per channel
    # kmat   : (9*cin_p, Lt)        VMEM scratch K-matrix
    lt = kmat.shape[1]
    # Build the K-matrix from 9 statically-shifted phase views (VMEM copies
    # only; all slice starts are static so no dynamic lane indexing needed).
    for t, (p, s) in enumerate(taps):
        kmat[pl.ds(t * cin_p, cin_p), :] = (
            ph_ref[0, 0, pl.ds(p * cin_p, cin_p), pl.ds(s, lt)])
    # Single MXU matmul with K = 9 * cin_p.
    y = jnp.dot(w_ref[...], kmat[...], preferred_element_type=jnp.float32)
    y = y + b_ref[0]
    y_ref[0] = y
    # Masked partial BatchNorm statistics (exclude wrap / padding lanes).
    m = m_ref[...]
    st_ref[0, 0, :, 0:1] = jnp.sum(y * m, axis=-1, keepdims=True)
    st_ref[0, 0, :, 1:2] = jnp.sum(y * y * m, axis=-1, keepdims=True)


# ---------------------------------------------------------------------------
# Pass 2: BatchNorm affine (precomputed scale/shift) + LeakyReLU(0.01)
# ---------------------------------------------------------------------------
def _bn_lrelu_kernel(y_ref, sc_ref, sh_ref, o_ref):
    y = y_ref[0] * sc_ref[0] + sh_ref[0]
    o_ref[0] = jnp.where(y > 0, y, 0.01 * y)


def conv_bn_lrelu_s2(x, w, b, gamma, beta, *, lane_target=2048, eps=1e-5):
    """Conv2d(3x3, stride=2, pad=1) + BatchNorm2d(train stats) + LeakyReLU."""
    N, Cin, H, W = x.shape
    Cout = w.shape[0]
    assert H % 2 == 0 and W % 2 == 0
    Ho, Wo = H // 2, W // 2
    Hp2, Wp2 = Ho + 1, Wo + 1                # sub-pixel phase image size
    cin_p = _round_up(Cin, 8)
    K = 9 * cin_p

    # Output is computed in padded-width coordinates (Wp2 = Wo + 1 columns per
    # row) so every tap is a *contiguous* flat slice of a phase map.
    Lo = Ho * Wp2
    JT = max(1, -(-Lo // lane_target))       # number of lane tiles
    Lt = _round_up(-(-Lo // JT), 128)        # lane tile width
    Lo_p = JT * Lt
    HALO = _round_up(Wp2 + 1, 128)           # max tap shift, rounded to lanes
    Lw = Lt + HALO                           # halo-duplicated tile width
    Lp = Lo_p + HALO                         # padded flat phase length

    # ---- plain-JAX layout glue (no compute): phase split + halo tiles ------
    xp = jnp.pad(x, ((0, 0), (0, 0), (1, 1), (1, 1)))
    ph = jnp.stack([xp[:, :, a::2, b::2] for a in (0, 1) for b in (0, 1)],
                   axis=1)                                    # (N,4,Cin,Hp2,Wp2)
    ph = ph.reshape(N, 4, Cin, Hp2 * Wp2)
    ph = jnp.pad(ph, ((0, 0), (0, 0), (0, cin_p - Cin),
                      (0, Lp - Hp2 * Wp2)))
    ph = ph.reshape(N, 4 * cin_p, Lp)
    ph_t = jnp.stack([lax.slice_in_dim(ph, jt * Lt, jt * Lt + Lw, axis=2)
                      for jt in range(JT)], axis=1)           # (N,JT,4*cin_p,Lw)

    # Weight folded to (Cout, 9*cin_p): column index = tap*cin_p + channel.
    w_t = jnp.pad(jnp.transpose(w, (0, 2, 3, 1)),
                  ((0, 0), (0, 0), (0, 0), (0, cin_p - Cin)))
    w2d = w_t.reshape(Cout, K)
    b3 = b.reshape(1, Cout, 1)

    # Validity mask over padded-width / padded-length output lanes.
    idx = jnp.arange(Lo_p, dtype=jnp.int32)
    mask = ((idx < Lo) & (idx % Wp2 < Wo)).astype(jnp.float32).reshape(1, Lo_p)

    # tap -> (phase index, static flat shift inside the phase map)
    taps = tuple(((kh % 2) * 2 + (kw % 2), (kh // 2) * Wp2 + (kw // 2))
                 for kh in range(3) for kw in range(3))

    kern = functools.partial(_conv_stats_kernel, cin_p=cin_p, taps=taps)
    y, stats = pl.pallas_call(
        kern,
        out_shape=(jax.ShapeDtypeStruct((N, Cout, Lo_p), jnp.float32),
                   jax.ShapeDtypeStruct((N, JT, Cout, 2), jnp.float32)),
        grid=(N, JT),
        in_specs=[
            pl.BlockSpec((1, 1, 4 * cin_p, Lw), lambda n, j: (n, j, 0, 0)),
            pl.BlockSpec((Cout, K), lambda n, j: (0, 0)),
            pl.BlockSpec((1, Cout, 1), lambda n, j: (0, 0, 0)),
            pl.BlockSpec((1, Lt), lambda n, j: (0, j)),
        ],
        out_specs=(
            pl.BlockSpec((1, Cout, Lt), lambda n, j: (n, 0, j)),
            pl.BlockSpec((1, 1, Cout, 2), lambda n, j: (n, j, 0, 0)),
        ),
        scratch_shapes=[pltpu.VMEM((K, Lt), jnp.float32)],
        compiler_params=_cparams(("parallel", "parallel")),
    )(ph_t, w2d, b3, mask)

    # BatchNorm statistics (training mode, biased variance) from the partials.
    s = jnp.sum(stats, axis=(0, 1))                  # (Cout, 2)
    cnt = jnp.float32(N * Ho * Wo)
    mean = s[:, 0] / cnt
    var = jnp.maximum(s[:, 1] / cnt - mean * mean, 0.0)
    scale = gamma * lax.rsqrt(var + eps)
    shift = beta - mean * scale

    out = pl.pallas_call(
        _bn_lrelu_kernel,
        out_shape=jax.ShapeDtypeStruct((N, Cout, Lo_p), jnp.float32),
        grid=(N, JT),
        in_specs=[
            pl.BlockSpec((1, Cout, Lt), lambda n, j: (n, 0, j)),
            pl.BlockSpec((1, Cout, 1), lambda n, j: (0, 0, 0)),
            pl.BlockSpec((1, Cout, 1), lambda n, j: (0, 0, 0)),
        ],
        out_specs=pl.BlockSpec((1, Cout, Lt), lambda n, j: (n, 0, j)),
        compiler_params=_cparams(("parallel", "parallel")),
    )(y, scale.reshape(1, Cout, 1), shift.reshape(1, Cout, 1))

    # Strip padded-width / padded-length garbage lanes and restore NCHW.
    out = out[:, :, :Lo].reshape(N, Cout, Ho, Wp2)[:, :, :, :Wo]
    return out


# ---------------------------------------------------------------------------
# Fused encoder head: Linear+ReLU -> Linear+ReLU -> [fc_mu | fc_var]
# ---------------------------------------------------------------------------
def _head_kernel(x_ref, w1_ref, b1_ref, w2_ref, b2_ref, wh_ref, bh_ref,
                 o_ref, acc_ref):
    @pl.when(pl.program_id(0) == 0)
    def _():
        acc_ref[...] = jnp.zeros_like(acc_ref)

    acc_ref[...] += jnp.dot(x_ref[...], w1_ref[...],
                            preferred_element_type=jnp.float32)

    @pl.when(pl.program_id(0) == pl.num_programs(0) - 1)
    def _():
        h = jnp.maximum(acc_ref[...] + b1_ref[...], 0.0)
        h = jnp.dot(h, w2_ref[...], preferred_element_type=jnp.float32)
        h = jnp.maximum(h + b2_ref[...], 0.0)
        o_ref[...] = (jnp.dot(h, wh_ref[...],
                              preferred_element_type=jnp.float32) + bh_ref[...])


def encoder_head(xf, w1, b1, w2, b2, w_mu, b_mu, w_var, b_var, *, k_tile=1024):
    N, K = xf.shape
    H1 = w1.shape[1]
    L = w_mu.shape[1]
    wh = jnp.concatenate([w_mu, w_var], axis=1)          # (H1, 2L)
    bh = jnp.concatenate([b_mu, b_var], axis=0).reshape(1, 2 * L)
    tk = k_tile if K % k_tile == 0 else K                # K-pipelined weight DMA
    nk = K // tk
    out = pl.pallas_call(
        _head_kernel,
        out_shape=jax.ShapeDtypeStruct((N, 2 * L), jnp.float32),
        grid=(nk,),
        in_specs=[
            pl.BlockSpec((N, tk), lambda k: (0, k)),
            pl.BlockSpec((tk, H1), lambda k: (k, 0)),
            pl.BlockSpec((1, H1), lambda k: (0, 0)),
            pl.BlockSpec((H1, H1), lambda k: (0, 0)),
            pl.BlockSpec((1, H1), lambda k: (0, 0)),
            pl.BlockSpec((H1, 2 * L), lambda k: (0, 0)),
            pl.BlockSpec((1, 2 * L), lambda k: (0, 0)),
        ],
        out_specs=pl.BlockSpec((N, 2 * L), lambda k: (0, 0)),
        scratch_shapes=[pltpu.VMEM((N, H1), jnp.float32)],
        compiler_params=_cparams(("arbitrary",)),
    )(xf, w1, b1.reshape(1, H1), w2, b2.reshape(1, H1), wh, bh)
    return out[:, :L], out[:, L:]


# ---------------------------------------------------------------------------
# Parameters + forward (matches VariationalEncoder.forward -> [mu, log_var])
# ---------------------------------------------------------------------------
def init_params(key, in_channels, latent_dim, hidden_dims):
    keys = iter(jax.random.split(key, 4 * len(hidden_dims) + 8))

    def winit(shape, fan_in):
        return (jax.random.normal(next(keys), shape, jnp.float32)
                / jnp.sqrt(jnp.float32(fan_in)))

    zeros = lambda s: jnp.zeros(s, jnp.float32)
    ones = lambda s: jnp.ones(s, jnp.float32)

    p = {"convs": []}
    cin = in_channels
    for h in hidden_dims:
        p["convs"].append(dict(w=winit((h, cin, 3, 3), cin * 9), b=zeros((h,)),
                               gamma=ones((h,)), beta=zeros((h,))))
        cin = h
    flat = hidden_dims[-1] * 32 * 32
    p["lin1"] = (winit((flat, 256), flat), zeros((256,)))
    p["lin2"] = (winit((256, 256), 256), zeros((256,)))
    p["fc_mu"] = (winit((256, latent_dim), 256), zeros((latent_dim,)))
    p["fc_var"] = (winit((256, latent_dim), 256), zeros((latent_dim,)))
    return p


def variational_encoder_forward(params, x):
    h = x
    for c in params["convs"]:
        h = conv_bn_lrelu_s2(h, c["w"], c["b"], c["gamma"], c["beta"])
    N = h.shape[0]
    hf = h.reshape(N, -1)                            # torch.flatten(result, 1)
    w1, b1 = params["lin1"]
    w2, b2 = params["lin2"]
    wm, bm = params["fc_mu"]
    wv, bv = params["fc_var"]
    mu, log_var = encoder_head(hf, w1, b1, w2, b2, wm, bm, wv, bv)
    return [mu, log_var]


# Pure-JAX reference for a correctness cross-check.
def _reference_forward(params, x):
    h = x
    for c in params["convs"]:
        y = lax.conv_general_dilated(
            h, c["w"], window_strides=(2, 2), padding=((1, 1), (1, 1)),
            dimension_numbers=("NCHW", "OIHW", "NCHW"))
        y = y + c["b"].reshape(1, -1, 1, 1)
        mean = jnp.mean(y, axis=(0, 2, 3), keepdims=True)
        var = jnp.mean((y - mean) ** 2, axis=(0, 2, 3), keepdims=True)
        y = (y - mean) * lax.rsqrt(var + 1e-5)
        y = y * c["gamma"].reshape(1, -1, 1, 1) + c["beta"].reshape(1, -1, 1, 1)
        h = jnp.where(y > 0, y, 0.01 * y)
    hf = h.reshape(h.shape[0], -1)
    w1, b1 = params["lin1"]
    w2, b2 = params["lin2"]
    hf = jnp.maximum(hf @ w1 + b1, 0.0)
    hf = jnp.maximum(hf @ w2 + b2, 0.0)
    wm, bm = params["fc_mu"]
    wv, bv = params["fc_var"]
    return hf @ wm + bm, hf @ wv + bv


# ---------------------------------------------------------------------------
if __name__ == "__main__":
    key = jax.random.PRNGKey(0)
    in_channels, latent_dim = 3, 8
    hidden_dims = [4, 8]                     # encoder's 32x32 bottleneck forces
    N = 2                                    # input spatial = 32 * 2**len(dims)
    H = W = 32 * (2 ** len(hidden_dims))     # = 128

    kp, kx = jax.random.split(key)
    params = init_params(kp, in_channels, latent_dim, hidden_dims)
    x = jax.random.normal(kx, (N, in_channels, H, W), jnp.float32)

    fwd = jax.jit(variational_encoder_forward)
    mu, log_var = fwd(params, x)
    jax.block_until_ready((mu, log_var))

    assert mu.shape == (N, latent_dim)
    assert log_var.shape == (N, latent_dim)
    assert bool(jnp.all(jnp.isfinite(mu)))
    assert bool(jnp.all(jnp.isfinite(log_var)))

    mu_ref, lv_ref = jax.jit(_reference_forward)(params, x)
    assert bool(jnp.allclose(mu, mu_ref, atol=5e-2, rtol=5e-2))
    assert bool(jnp.allclose(log_var, lv_ref, atol=5e-2, rtol=5e-2))

    print("KERNEL_OK")
</pallas_src>

<mosaic_0001>
module attributes {stable_mosaic.version = 11 : i64} {
  func.func @_conv_stats_kernel(%arg0: i32, %arg1: i32, %arg2: memref<1x1x32x1536xf32, #tpu.memory_space<vmem>>, %arg3: memref<4x72xf32, #tpu.memory_space<vmem>>, %arg4: memref<1x4x1xf32, #tpu.memory_space<vmem>>, %arg5: memref<1x1408xf32, #tpu.memory_space<vmem>>, %arg6: memref<1x4x1408xf32, #tpu.memory_space<vmem>>, %arg7: memref<1x1x4x2xf32, #tpu.memory_space<vmem>>, %arg8: memref<72x1408xf32, #tpu.memory_space<vmem>>) attributes {dimension_semantics = [#tpu.dimension_semantics<parallel>, #tpu.dimension_semantics<parallel>], iteration_bounds = array<i64: 2, 3>, scalar_prefetch = 0 : i64, scratch_operands = 1 : i64, tpu.core_type = #tpu.core_type<tc>, window_params = [{transform_indices = @transform_0, window_bounds = array<i64: 1, 1, 32, 1536>}, {pipeline_mode = #tpu.pipeline_mode<synchronous>, transform_indices = @transform_1, window_bounds = array<i64: 4, 72>}, {pipeline_mode = #tpu.pipeline_mode<synchronous>, transform_indices = @transform_2, window_bounds = array<i64: 1, 4, 1>}, {transform_indices = @transform_3, window_bounds = array<i64: 1, 1408>}, {transform_indices = @transform_4, window_bounds = array<i64: 1, 4, 1408>}, {transform_indices = @transform_5, window_bounds = array<i64: 1, 1, 4, 2>}]} {
    %c0 = arith.constant 0 : index
    %c0_0 = arith.constant 0 : index
    %c0_1 = arith.constant 0 : index
    %c0_2 = arith.constant 0 : index
    %0 = vector.load %arg2[%c0, %c0_0, %c0_1, %c0_2] : memref<1x1x32x1536xf32, #tpu.memory_space<vmem>>, vector<1x1x8x1408xf32>
    %1 = vector.shape_cast %0 : vector<1x1x8x1408xf32> to vector<8x1408xf32>
    %c0_3 = arith.constant 0 : index
    %c0_4 = arith.constant 0 : index
    %2 = vector.load %arg8[%c0_3, %c0_4] : memref<72x1408xf32, #tpu.memory_space<vmem>>, vector<8x1408xf32>
    tpu.vector_store %arg8[%c0_3, %c0_4], %1 {strides = array<i32>} : memref<72x1408xf32, #tpu.memory_space<vmem>>, vector<8x1408xf32>,
    %c0_5 = arith.constant 0 : index
    %c0_6 = arith.constant 0 : index
    %c8 = arith.constant 8 : index
    %c0_7 = arith.constant 0 : index
    %3 = vector.load %arg2[%c0_5, %c0_6, %c8, %c0_7] : memref<1x1x32x1536xf32, #tpu.memory_space<vmem>>, vector<1x1x8x1408xf32>
    %4 = vector.shape_cast %3 : vector<1x1x8x1408xf32> to vector<8x1408xf32>
    %c8_8 = arith.constant 8 : index
    %c0_9 = arith.constant 0 : index
    %5 = vector.load %arg8[%c8_8, %c0_9] : memref<72x1408xf32, #tpu.memory_space<vmem>>, vector<8x1408xf32>
    tpu.vector_store %arg8[%c8_8, %c0_9], %4 {strides = array<i32>} : memref<72x1408xf32, #tpu.memory_space<vmem>>, vector<8x1408xf32>,
    %c0_10 = arith.constant 0 : index
    %c0_11 = arith.constant 0 : index
    %c0_12 = arith.constant 0 : index
    %c1 = arith.constant 1 : index
    %6 = vector.load %arg2[%c0_10, %c0_11, %c0_12, %c1] : memref<1x1x32x1536xf32, #tpu.memory_space<vmem>>, vector<1x1x8x1408xf32>
    %7 = vector.shape_cast %6 : vector<1x1x8x1408xf32> to vector<8x1408xf32>
    %c16 = arith.constant 16 : index
    %c0_13 = arith.constant 0 : index
    %8 = vector.load %arg8[%c16, %c0_13] : memref<72x1408xf32, #tpu.memory_space<vmem>>, vector<8x1408xf32>
    tpu.vector_store %arg8[%c16, %c0_13], %7 {strides = array<i32>} : memref<72x1408xf32, #tpu.memory_space<vmem>>, vector<8x1408xf32>,
    %c0_14 = arith.constant 0 : index
    %c0_15 = arith.constant 0 : index
    %c16_16 = arith.constant 16 : index
    %c0_17 = arith.constant 0 : index
    %9 = vector.load %arg2[%c0_14, %c0_15, %c16_16, %c0_17] : memref<1x1x32x1536xf32, #tpu.memory_space<vmem>>, vector<1x1x8x1408xf32>
    %10 = vector.shape_cast %9 : vector<1x1x8x1408xf32> to vector<8x1408xf32>
    %c24 = arith.constant 24 : index
    %c0_18 = arith.constant 0 : index
    %11 = vector.load %arg8[%c24, %c0_18] : memref<72x1408xf32, #tpu.memory_space<vmem>>, vector<8x1408xf32>
    tpu.vector_store %arg8[%c24, %c0_18], %10 {strides = array<i32>} : memref<72x1408xf32, #tpu.memory_space<vmem>>, vector<8x1408xf32>,
    %c0_19 = arith.constant 0 : index
    %c0_20 = arith.constant 0 : index
    %c24_21 = arith.constant 24 : index
    %c0_22 = arith.constant 0 : index
    %12 = vector.load %arg2[%c0_19, %c0_20, %c24_21, %c0_22] : memref<1x1x32x1536xf32, #tpu.memory_space<vmem>>, vector<1x1x8x1408xf32>
    %13 = vector.shape_cast %12 : vector<1x1x8x1408xf32> to vector<8x1408xf32>
    %c32 = arith.constant 32 : index
    %c0_23 = arith.constant 0 : index
    %14 = vector.load %arg8[%c32, %c0_23] : memref<72x1408xf32, #tpu.memory_space<vmem>>, vector<8x1408xf32>
    tpu.vector_store %arg8[%c32, %c0_23], %13 {strides = array<i32>} : memref<72x1408xf32, #tpu.memory_space<vmem>>, vector<8x1408xf32>,
    %c0_24 = arith.constant 0 : index
    %c0_25 = arith.constant 0 : index
    %c16_26 = arith.constant 16 : index
    %c1_27 = arith.constant 1 : index
    %15 = vector.load %arg2[%c0_24, %c0_25, %c16_26, %c1_27] : memref<1x1x32x1536xf32, #tpu.memory_space<vmem>>, vector<1x1x8x1408xf32>
    %16 = vector.shape_cast %15 : vector<1x1x8x1408xf32> to vector<8x1408xf32>
    %c40 = arith.constant 40 : index
    %c0_28 = arith.constant 0 : index
    %17 = vector.load %arg8[%c40, %c0_28] : memref<72x1408xf32, #tpu.memory_space<vmem>>, vector<8x1408xf32>
    tpu.vector_store %arg8[%c40, %c0_28], %16 {strides = array<i32>} : memref<72x1408xf32, #tpu.memory_space<vmem>>, vector<8x1408xf32>,
    %c0_29 = arith.constant 0 : index
    %c0_30 = arith.constant 0 : index
    %c0_31 = arith.constant 0 : index
    %c65 = arith.constant 65 : index
    %18 = vector.load %arg2[%c0_29, %c0_30, %c0_31, %c65] : memref<1x1x32x1536xf32, #tpu.memory_space<vmem>>, vector<1x1x8x1408xf32>
    %19 = vector.shape_cast %18 : vector<1x1x8x1408xf32> to vector<8x1408xf32>
    %c48 = arith.constant 48 : index
    %c0_32 = arith.constant 0 : index
    %20 = vector.load %arg8[%c48, %c0_32] : memref<72x1408xf32, #tpu.memory_space<vmem>>, vector<8x1408xf32>
    tpu.vector_store %arg8[%c48, %c0_32], %19 {strides = array<i32>} : memref<72x1408xf32, #tpu.memory_space<vmem>>, vector<8x1408xf32>,
    %c0_33 = arith.constant 0 : index
    %c0_34 = arith.constant 0 : index
    %c8_35 = arith.constant 8 : index
    %c65_36 = arith.constant 65 : index
    %21 = vector.load %arg2[%c0_33, %c0_34, %c8_35, %c65_36] : memref<1x1x32x1536xf32, #tpu.memory_space<vmem>>, vector<1x1x8x1408xf32>
    %22 = vector.shape_cast %21 : vector<1x1x8x1408xf32> to vector<8x1408xf32>
    %c56 = arith.constant 56 : index
    %c0_37 = arith.constant 0 : index
    %23 = vector.load %arg8[%c56, %c0_37] : memref<72x1408xf32, #tpu.memory_space<vmem>>, vector<8x1408xf32>
    tpu.vector_store %arg8[%c56, %c0_37], %22 {strides = array<i32>} : memref<72x1408xf32, #tpu.memory_space<vmem>>, vector<8x1408xf32>,
    %c0_38 = arith.constant 0 : index
    %c0_39 = arith.constant 0 : index
    %c0_40 = arith.constant 0 : index
    %c66 = arith.constant 66 : index
    %24 = vector.load %arg2[%c0_38, %c0_39, %c0_40, %c66] : memref<1x1x32x1536xf32, #tpu.memory_space<vmem>>, vector<1x1x8x1408xf32>
    %25 = vector.shape_cast %24 : vector<1x1x8x1408xf32> to vector<8x1408xf32>
    %c64 = arith.constant 64 : index
    %c0_41 = arith.constant 0 : index
    %26 = vector.load %arg8[%c64, %c0_41] : memref<72x1408xf32, #tpu.memory_space<vmem>>, vector<8x1408xf32>
    tpu.vector_store %arg8[%c64, %c0_41], %25 {strides = array<i32>} : memref<72x1408xf32, #tpu.memory_space<vmem>>, vector<8x1408xf32>,
    %c0_42 = arith.constant 0 : index
    %c0_43 = arith.constant 0 : index
    %27 = vector.load %arg3[%c0_42, %c0_43] : memref<4x72xf32, #tpu.memory_space<vmem>>, vector<4x72xf32>
    %c0_44 = arith.constant 0 : index
    %c0_45 = arith.constant 0 : index
    %28 = vector.load %arg8[%c0_44, %c0_45] : memref<72x1408xf32, #tpu.memory_space<vmem>>, vector<72x1408xf32>
    %cst = arith.constant dense<0.000000e+00> : vector<4x1408xf32>
    %29 = tpu.matmul %27, %28, %cst {dimension_numbers = #tpu.dot_dimension_numbers<[1], [0], [0], [1], [0, 0, 1, 1], [], []>} : vector<4x72xf32>, vector<72x1408xf32>, vector<4x1408xf32> -> vector<4x1408xf32>
    %c0_46 = arith.constant 0 : index
    %c0_47 = arith.constant 0 : index
    %c0_48 = arith.constant 0 : index
    %30 = vector.load %arg4[%c0_46, %c0_47, %c0_48] : memref<1x4x1xf32, #tpu.memory_space<vmem>>, vector<1x4x1xf32>
    %31 = vector.shape_cast %30 : vector<1x4x1xf32> to vector<4x1xf32>
    %32 = vector.broadcast %31 : vector<4x1xf32> to vector<4x1408xf32>
    %33 = arith.addf %29, %32 : vector<4x1408xf32>
    %c0_49 = arith.constant 0 : index
    %c0_50 = arith.constant 0 : index
    %c0_51 = arith.constant 0 : index
    %34 = vector.load %arg6[%c0_49, %c0_50, %c0_51] : memref<1x4x1408xf32, #tpu.memory_space<vmem>>, vector<1x4x1408xf32>
    %35 = vector.shape_cast %34 : vector<1x4x1408xf32> to vector<4x1408xf32>
    %36 = vector.shape_cast %33 : vector<4x1408xf32> to vector<1x4x1408xf32>
    tpu.vector_store %arg6[%c0_49, %c0_50, %c0_51], %36 {strides = array<i32>} : memref<1x4x1408xf32, #tpu.memory_space<vmem>>, vector<1x4x1408xf32>,
    %c0_52 = arith.constant 0 : index
    %c0_53 = arith.constant 0 : index
    %37 = vector.load %arg5[%c0_52, %c0_53] : memref<1x1408xf32, #tpu.memory_space<vmem>>, vector<1x1408xf32>
    %38 = vector.broadcast %37 : vector<1x1408xf32> to vector<4x1408xf32>
    %39 = arith.mulf %33, %38 : vector<4x1408xf32>
    %cst_54 = arith.constant dense<0.000000e+00> : vector<4xf32>
    %40 = vector.multi_reduction <add>, %39, %cst_54 [1] : vector<4x1408xf32> to vector<4xf32>
    %41 = vector.shape_cast %40 : vector<4xf32> to vector<4x1xf32>
    %c0_55 = arith.constant 0 : index
    %c0_56 = arith.constant 0 : index
    %c0_57 = arith.constant 0 : index
    %c0_58 = arith.constant 0 : index
    %42 = vector.load %arg7[%c0_55, %c0_56, %c0_57, %c0_58] : memref<1x1x4x2xf32, #tpu.memory_space<vmem>>, vector<1x1x4x1xf32>
    %43 = vector.shape_cast %42 : vector<1x1x4x1xf32> to vector<4x1xf32>
    %44 = vector.shape_cast %41 : vector<4x1xf32> to vector<1x1x4x1xf32>
    tpu.vector_store %arg7[%c0_55, %c0_56, %c0_57, %c0_58], %44 {strides = array<i32>} : memref<1x1x4x2xf32, #tpu.memory_space<vmem>>, vector<1x1x4x1xf32>,
    %45 = arith.mulf %33, %33 : vector<4x1408xf32>
    %46 = vector.broadcast %37 : vector<1x1408xf32> to vector<4x1408xf32>
    %47 = arith.mulf %45, %46 : vector<4x1408xf32>
    %cst_59 = arith.constant dense<0.000000e+00> : vector<4xf32>
    %48 = vector.multi_reduction <add>, %47, %cst_59 [1] : vector<4x1408xf32> to vector<4xf32>
    %49 = vector.shape_cast %48 : vector<4xf32> to vector<4x1xf32>
    %c0_60 = arith.constant 0 : index
    %c0_61 = arith.constant 0 : index
    %c0_62 = arith.constant 0 : index
    %c1_63 = arith.constant 1 : index
    %50 = vector.load %arg7[%c0_60, %c0_61, %c0_62, %c1_63] : memref<1x1x4x2xf32, #tpu.memory_space<vmem>>, vector<1x1x4x1xf32>
    %51 = vector.shape_cast %50 : vector<1x1x4x1xf32> to vector<4x1xf32>
    %52 = vector.shape_cast %49 : vector<4x1xf32> to vector<1x1x4x1xf32>
    tpu.vector_store %arg7[%c0_60, %c0_61, %c0_62, %c1_63], %52 {strides = array<i32>} : memref<1x1x4x2xf32, #tpu.memory_space<vmem>>, vector<1x1x4x1xf32>,
    return
  }
  func.func @transform_0(%arg0: i32, %arg1: i32) -> (i32, i32, i32, i32) {
    %c0_i32 = arith.constant 0 : i32
    %c0_i32_0 = arith.constant 0 : i32
    %c0_i32_1 = arith.constant 0 : i32
    return %arg0, %arg1, %c0_i32, %c0_i32_0 : i32, i32, i32, i32
  }
  func.func @transform_1(%arg0: i32, %arg1: i32) -> (i32, i32) {
    %c0_i32 = arith.constant 0 : i32
    %c0_i32_0 = arith.constant 0 : i32
    %c0_i32_1 = arith.constant 0 : i32
    return %c0_i32, %c0_i32_0 : i32, i32
  }
  func.func @transform_2(%arg0: i32, %arg1: i32) -> (i32, i32, i32) {
    %c0_i32 = arith.constant 0 : i32
    %c0_i32_0 = arith.constant 0 : i32
    %c0_i32_1 = arith.constant 0 : i32
    %c0_i32_2 = arith.constant 0 : i32
    return %c0_i32, %c0_i32_0, %c0_i32_1 : i32, i32, i32
  }
  func.func @transform_3(%arg0: i32, %arg1: i32) -> (i32, i32) {
    %c0_i32 = arith.constant 0 : i32
    %c0_i32_0 = arith.constant 0 : i32
    return %c0_i32, %arg1 : i32, i32
  }
  func.func @transform_4(%arg0: i32, %arg1: i32) -> (i32, i32, i32) {
    %c0_i32 = arith.constant 0 : i32
    %c0_i32_0 = arith.constant 0 : i32
    return %arg0, %c0_i32, %arg1 : i32, i32, i32
  }
  func.func @transform_5(%arg0: i32, %arg1: i32) -> (i32, i32, i32, i32) {
    %c0_i32 = arith.constant 0 : i32
    %c0_i32_0 = arith.constant 0 : i32
    %c0_i32_1 = arith.constant 0 : i32
    return %arg0, %arg1, %c0_i32, %c0_i32_0 : i32, i32, i32, i32
  }
}

module attributes {stable_mosaic.version = 11 : i64} {
  func.func @_bn_lrelu_kernel(%arg0: i32, %arg1: i32, %arg2: memref<1x4x1408xf32, #tpu.memory_space<vmem>>, %arg3: memref<1x4x1xf32, #tpu.memory_space<vmem>>, %arg4: memref<1x4x1xf32, #tpu.memory_space<vmem>>, %arg5: memref<1x4x1408xf32, #tpu.memory_space<vmem>>) attributes {dimension_semantics = [#tpu.dimension_semantics<parallel>, #tpu.dimension_semantics<parallel>], iteration_bounds = array<i64: 2, 3>, scalar_prefetch = 0 : i64, scratch_operands = 0 : i64, tpu.core_type = #tpu.core_type<tc>, window_params = [{transform_indices = @transform_0, window_bounds = array<i64: 1, 4, 1408>}, {pipeline_mode = #tpu.pipeline_mode<synchronous>, transform_indices = @transform_1, window_bounds = array<i64: 1, 4, 1>}, {pipeline_mode = #tpu.pipeline_mode<synchronous>, transform_indices = @transform_2, window_bounds = array<i64: 1, 4, 1>}, {transform_indices = @transform_3, window_bounds = array<i64: 1, 4, 1408>}]} {
    %c0 = arith.constant 0 : index
    %c0_0 = arith.constant 0 : index
    %c0_1 = arith.constant 0 : index
    %0 = vector.load %arg2[%c0, %c0_0, %c0_1] : memref<1x4x1408xf32, #tpu.memory_space<vmem>>, vector<1x4x1408xf32>
    %1 = vector.shape_cast %0 : vector<1x4x1408xf32> to vector<4x1408xf32>
    %c0_2 = arith.constant 0 : index
    %c0_3 = arith.constant 0 : index
    %c0_4 = arith.constant 0 : index
    %2 = vector.load %arg3[%c0_2, %c0_3, %c0_4] : memref<1x4x1xf32, #tpu.memory_space<vmem>>, vector<1x4x1xf32>
    %3 = vector.shape_cast %2 : vector<1x4x1xf32> to vector<4x1xf32>
    %4 = vector.broadcast %3 : vector<4x1xf32> to vector<4x1408xf32>
    %5 = arith.mulf %1, %4 : vector<4x1408xf32>
    %c0_5 = arith.constant 0 : index
    %c0_6 = arith.constant 0 : index
    %c0_7 = arith.constant 0 : index
    %6 = vector.load %arg4[%c0_5, %c0_6, %c0_7] : memref<1x4x1xf32, #tpu.memory_space<vmem>>, vector<1x4x1xf32>
    %7 = vector.shape_cast %6 : vector<1x4x1xf32> to vector<4x1xf32>
    %8 = vector.broadcast %7 : vector<4x1xf32> to vector<4x1408xf32>
    %9 = arith.addf %5, %8 : vector<4x1408xf32>
    %cst = arith.constant 0.000000e+00 : f32
    %10 = vector.broadcast %cst : f32 to vector<4x1408xf32>
    %11 = arith.cmpf ogt, %9, %10 : vector<4x1408xf32>
    %cst_8 = arith.constant 0.00999999977 : f32
    %12 = vector.broadcast %cst_8 : f32 to vector<4x1408xf32>
    %13 = arith.mulf %12, %9 : vector<4x1408xf32>
    %14 = arith.select %11, %9, %13 : vector<4x1408xi1>, vector<4x1408xf32>
    %c0_9 = arith.constant 0 : index
    %c0_10 = arith.constant 0 : index
    %c0_11 = arith.constant 0 : index
    %15 = vector.load %arg5[%c0_9, %c0_10, %c0_11] : memref<1x4x1408xf32, #tpu.memory_space<vmem>>, vector<1x4x1408xf32>
    %16 = vector.shape_cast %15 : vector<1x4x1408xf32> to vector<4x1408xf32>
    %17 = vector.shape_cast %14 : vector<4x1408xf32> to vector<1x4x1408xf32>
    tpu.vector_store %arg5[%c0_9, %c0_10, %c0_11], %17 {strides = array<i32>} : memref<1x4x1408xf32, #tpu.memory_space<vmem>>, vector<1x4x1408xf32>,
    return
  }
  func.func @transform_0(%arg0: i32, %arg1: i32) -> (i32, i32, i32) {
    %c0_i32 = arith.constant 0 : i32
    %c0_i32_0 = arith.constant 0 : i32
    return %arg0, %c0_i32, %arg1 : i32, i32, i32
  }
  func.func @transform_1(%arg0: i32, %arg1: i32) -> (i32, i32, i32) {
    %c0_i32 = arith.constant 0 : i32
    %c0_i32_0 = arith.constant 0 : i32
    %c0_i32_1 = arith.constant 0 : i32
    %c0_i32_2 = arith.constant 0 : i32
    return %c0_i32, %c0_i32_0, %c0_i32_1 : i32, i32, i32
  }
  func.func @transform_2(%arg0: i32, %arg1: i32) -> (i32, i32, i32) {
    %c0_i32 = arith.constant 0 : i32
    %c0_i32_0 = arith.constant 0 : i32
    %c0_i32_1 = arith.constant 0 : i32
    %c0_i32_2 = arith.constant 0 : i32
    return %c0_i32, %c0_i32_0, %c0_i32_1 : i32, i32, i32
  }
  func.func @transform_3(%arg0: i32, %arg1: i32) -> (i32, i32, i32) {
    %c0_i32 = arith.constant 0 : i32
    %c0_i32_0 = arith.constant 0 : i32
    return %arg0, %c0_i32, %arg1 : i32, i32, i32
  }
}

module attributes {stable_mosaic.version = 11 : i64} {
  func.func @_conv_stats_kernel(%arg0: i32, %arg1: i32, %arg2: memref<1x1x32x1280xf32, #tpu.memory_space<vmem>>, %arg3: memref<8x72xf32, #tpu.memory_space<vmem>>, %arg4: memref<1x8x1xf32, #tpu.memory_space<vmem>>, %arg5: memref<1x1152xf32, #tpu.memory_space<vmem>>, %arg6: memref<1x8x1152xf32, #tpu.memory_space<vmem>>, %arg7: memref<1x1x8x2xf32, #tpu.memory_space<vmem>>, %arg8: memref<72x1152xf32, #tpu.memory_space<vmem>>) attributes {dimension_semantics = [#tpu.dimension_semantics<parallel>, #tpu.dimension_semantics<parallel>], iteration_bounds = array<i64: 2, 1>, scalar_prefetch = 0 : i64, scratch_operands = 1 : i64, tpu.core_type = #tpu.core_type<tc>, window_params = [{transform_indices = @transform_0, window_bounds = array<i64: 1, 1, 32, 1280>}, {pipeline_mode = #tpu.pipeline_mode<synchronous>, transform_indices = @transform_1, window_bounds = array<i64: 8, 72>}, {pipeline_mode = #tpu.pipeline_mode<synchronous>, transform_indices = @transform_2, window_bounds = array<i64: 1, 8, 1>}, {transform_indices = @transform_3, window_bounds = array<i64: 1, 1152>}, {transform_indices = @transform_4, window_bounds = array<i64: 1, 8, 1152>}, {transform_indices = @transform_5, window_bounds = array<i64: 1, 1, 8, 2>}]} {
    %c0 = arith.constant 0 : index
    %c0_0 = arith.constant 0 : index
    %c0_1 = arith.constant 0 : index
    %c0_2 = arith.constant 0 : index
    %0 = vector.load %arg2[%c0, %c0_0, %c0_1, %c0_2] : memref<1x1x32x1280xf32, #tpu.memory_space<vmem>>, vector<1x1x8x1152xf32>
    %1 = vector.shape_cast %0 : vector<1x1x8x1152xf32> to vector<8x1152xf32>
    %c0_3 = arith.constant 0 : index
    %c0_4 = arith.constant 0 : index
    %2 = vector.load %arg8[%c0_3, %c0_4] : memref<72x1152xf32, #tpu.memory_space<vmem>>, vector<8x1152xf32>
    tpu.vector_store %arg8[%c0_3, %c0_4], %1 {strides = array<i32>} : memref<72x1152xf32, #tpu.memory_space<vmem>>, vector<8x1152xf32>,
    %c0_5 = arith.constant 0 : index
    %c0_6 = arith.constant 0 : index
    %c8 = arith.constant 8 : index
    %c0_7 = arith.constant 0 : index
    %3 = vector.load %arg2[%c0_5, %c0_6, %c8, %c0_7] : memref<1x1x32x1280xf32, #tpu.memory_space<vmem>>, vector<1x1x8x1152xf32>
    %4 = vector.shape_cast %3 : vector<1x1x8x1152xf32> to vector<8x1152xf32>
    %c8_8 = arith.constant 8 : index
    %c0_9 = arith.constant 0 : index
    %5 = vector.load %arg8[%c8_8, %c0_9] : memref<72x1152xf32, #tpu.memory_space<vmem>>, vector<8x1152xf32>
    tpu.vector_store %arg8[%c8_8, %c0_9], %4 {strides = array<i32>} : memref<72x1152xf32, #tpu.memory_space<vmem>>, vector<8x1152xf32>,
    %c0_10 = arith.constant 0 : index
    %c0_11 = arith.constant 0 : index
    %c0_12 = arith.constant 0 : index
    %c1 = arith.constant 1 : index
    %6 = vector.load %arg2[%c0_10, %c0_11, %c0_12, %c1] : memref<1x1x32x1280xf32, #tpu.memory_space<vmem>>, vector<1x1x8x1152xf32>
    %7 = vector.shape_cast %6 : vector<1x1x8x1152xf32> to vector<8x1152xf32>
    %c16 = arith.constant 16 : index
    %c0_13 = arith.constant 0 : index
    %8 = vector.load %arg8[%c16, %c0_13] : memref<72x1152xf32, #tpu.memory_space<vmem>>, vector<8x1152xf32>
    tpu.vector_store %arg8[%c16, %c0_13], %7 {strides = array<i32>} : memref<72x1152xf32, #tpu.memory_space<vmem>>, vector<8x1152xf32>,
    %c0_14 = arith.constant 0 : index
    %c0_15 = arith.constant 0 : index
    %c16_16 = arith.constant 16 : index
    %c0_17 = arith.constant 0 : index
    %9 = vector.load %arg2[%c0_14, %c0_15, %c16_16, %c0_17] : memref<1x1x32x1280xf32, #tpu.memory_space<vmem>>, vector<1x1x8x1152xf32>
    %10 = vector.shape_cast %9 : vector<1x1x8x1152xf32> to vector<8x1152xf32>
    %c24 = arith.constant 24 : index
    %c0_18 = arith.constant 0 : index
    %11 = vector.load %arg8[%c24, %c0_18] : memref<72x1152xf32, #tpu.memory_space<vmem>>, vector<8x1152xf32>
    tpu.vector_store %arg8[%c24, %c0_18], %10 {strides = array<i32>} : memref<72x1152xf32, #tpu.memory_space<vmem>>, vector<8x1152xf32>,
    %c0_19 = arith.constant 0 : index
    %c0_20 = arith.constant 0 : index
    %c24_21 = arith.constant 24 : index
    %c0_22 = arith.constant 0 : index
    %12 = vector.load %arg2[%c0_19, %c0_20, %c24_21, %c0_22] : memref<1x1x32x1280xf32, #tpu.memory_space<vmem>>, vector<1x1x8x1152xf32>
    %13 = vector.shape_cast %12 : vector<1x1x8x1152xf32> to vector<8x1152xf32>
    %c32 = arith.constant 32 : index
    %c0_23 = arith.constant 0 : index
    %14 = vector.load %arg8[%c32, %c0_23] : memref<72x1152xf32, #tpu.memory_space<vmem>>, vector<8x1152xf32>
    tpu.vector_store %arg8[%c32, %c0_23], %13 {strides = array<i32>} : memref<72x1152xf32, #tpu.memory_space<vmem>>, vector<8x1152xf32>,
    %c0_24 = arith.constant 0 : index
    %c0_25 = arith.constant 0 : index
    %c16_26 = arith.constant 16 : index
    %c1_27 = arith.constant 1 : index
    %15 = vector.load %arg2[%c0_24, %c0_25, %c16_26, %c1_27] : memref<1x1x32x1280xf32, #tpu.memory_space<vmem>>, vector<1x1x8x1152xf32>
    %16 = vector.shape_cast %15 : vector<1x1x8x1152xf32> to vector<8x1152xf32>
    %c40 = arith.constant 40 : index
    %c0_28 = arith.constant 0 : index
    %17 = vector.load %arg8[%c40, %c0_28] : memref<72x1152xf32, #tpu.memory_space<vmem>>, vector<8x1152xf32>
    tpu.vector_store %arg8[%c40, %c0_28], %16 {strides = array<i32>} : memref<72x1152xf32, #tpu.memory_space<vmem>>, vector<8x1152xf32>,
    %c0_29 = arith.constant 0 : index
    %c0_30 = arith.constant 0 : index
    %c0_31 = arith.constant 0 : index
    %c33 = arith.constant 33 : index
    %18 = vector.load %arg2[%c0_29, %c0_30, %c0_31, %c33] : memref<1x1x32x1280xf32, #tpu.memory_space<vmem>>, vector<1x1x8x1152xf32>
    %19 = vector.shape_cast %18 : vector<1x1x8x1152xf32> to vector<8x1152xf32>
    %c48 = arith.constant 48 : index
    %c0_32 = arith.constant 0 : index
    %20 = vector.load %arg8[%c48, %c0_32] : memref<72x1152xf32, #tpu.memory_space<vmem>>, vector<8x1152xf32>
    tpu.vector_store %arg8[%c48, %c0_32], %19 {strides = array<i32>} : memref<72x1152xf32, #tpu.memory_space<vmem>>, vector<8x1152xf32>,
    %c0_33 = arith.constant 0 : index
    %c0_34 = arith.constant 0 : index
    %c8_35 = arith.constant 8 : index
    %c33_36 = arith.constant 33 : index
    %21 = vector.load %arg2[%c0_33, %c0_34, %c8_35, %c33_36] : memref<1x1x32x1280xf32, #tpu.memory_space<vmem>>, vector<1x1x8x1152xf32>
    %22 = vector.shape_cast %21 : vector<1x1x8x1152xf32> to vector<8x1152xf32>
    %c56 = arith.constant 56 : index
    %c0_37 = arith.constant 0 : index
    %23 = vector.load %arg8[%c56, %c0_37] : memref<72x1152xf32, #tpu.memory_space<vmem>>, vector<8x1152xf32>
    tpu.vector_store %arg8[%c56, %c0_37], %22 {strides = array<i32>} : memref<72x1152xf32, #tpu.memory_space<vmem>>, vector<8x1152xf32>,
    %c0_38 = arith.constant 0 : index
    %c0_39 = arith.constant 0 : index
    %c0_40 = arith.constant 0 : index
    %c34 = arith.constant 34 : index
    %24 = vector.load %arg2[%c0_38, %c0_39, %c0_40, %c34] : memref<1x1x32x1280xf32, #tpu.memory_space<vmem>>, vector<1x1x8x1152xf32>
    %25 = vector.shape_cast %24 : vector<1x1x8x1152xf32> to vector<8x1152xf32>
    %c64 = arith.constant 64 : index
    %c0_41 = arith.constant 0 : index
    %26 = vector.load %arg8[%c64, %c0_41] : memref<72x1152xf32, #tpu.memory_space<vmem>>, vector<8x1152xf32>
    tpu.vector_store %arg8[%c64, %c0_41], %25 {strides = array<i32>} : memref<72x1152xf32, #tpu.memory_space<vmem>>, vector<8x1152xf32>,
    %c0_42 = arith.constant 0 : index
    %c0_43 = arith.constant 0 : index
    %27 = vector.load %arg3[%c0_42, %c0_43] : memref<8x72xf32, #tpu.memory_space<vmem>>, vector<8x72xf32>
    %c0_44 = arith.constant 0 : index
    %c0_45 = arith.constant 0 : index
    %28 = vector.load %arg8[%c0_44, %c0_45] : memref<72x1152xf32, #tpu.memory_space<vmem>>, vector<72x1152xf32>
    %cst = arith.constant dense<0.000000e+00> : vector<8x1152xf32>
    %29 = tpu.matmul %27, %28, %cst {dimension_numbers = #tpu.dot_dimension_numbers<[1], [0], [0], [1], [0, 0, 1, 1], [], []>} : vector<8x72xf32>, vector<72x1152xf32>, vector<8x1152xf32> -> vector<8x1152xf32>
    %c0_46 = arith.constant 0 : index
    %c0_47 = arith.constant 0 : index
    %c0_48 = arith.constant 0 : index
    %30 = vector.load %arg4[%c0_46, %c0_47, %c0_48] : memref<1x8x1xf32, #tpu.memory_space<vmem>>, vector<1x8x1xf32>
    %31 = vector.shape_cast %30 : vector<1x8x1xf32> to vector<8x1xf32>
    %32 = vector.broadcast %31 : vector<8x1xf32> to vector<8x1152xf32>
    %33 = arith.addf %29, %32 : vector<8x1152xf32>
    %c0_49 = arith.constant 0 : index
    %c0_50 = arith.constant 0 : index
    %c0_51 = arith.constant 0 : index
    %34 = vector.load %arg6[%c0_49, %c0_50, %c0_51] : memref<1x8x1152xf32, #tpu.memory_space<vmem>>, vector<1x8x1152xf32>
    %35 = vector.shape_cast %34 : vector<1x8x1152xf32> to vector<8x1152xf32>
    %36 = vector.shape_cast %33 : vector<8x1152xf32> to vector<1x8x1152xf32>
    tpu.vector_store %arg6[%c0_49, %c0_50, %c0_51], %36 {strides = array<i32>} : memref<1x8x1152xf32, #tpu.memory_space<vmem>>, vector<1x8x1152xf32>,
    %c0_52 = arith.constant 0 : index
    %c0_53 = arith.constant 0 : index
    %37 = vector.load %arg5[%c0_52, %c0_53] : memref<1x1152xf32, #tpu.memory_space<vmem>>, vector<1x1152xf32>
    %38 = vector.broadcast %37 : vector<1x1152xf32> to vector<8x1152xf32>
    %39 = arith.mulf %33, %38 : vector<8x1152xf32>
    %cst_54 = arith.constant dense<0.000000e+00> : vector<8xf32>
    %40 = vector.multi_reduction <add>, %39, %cst_54 [1] : vector<8x1152xf32> to vector<8xf32>
    %41 = vector.shape_cast %40 : vector<8xf32> to vector<8x1xf32>
    %c0_55 = arith.constant 0 : index
    %c0_56 = arith.constant 0 : index
    %c0_57 = arith.constant 0 : index
    %c0_58 = arith.constant 0 : index
    %42 = vector.load %arg7[%c0_55, %c0_56, %c0_57, %c0_58] : memref<1x1x8x2xf32, #tpu.memory_space<vmem>>, vector<1x1x8x1xf32>
    %43 = vector.shape_cast %42 : vector<1x1x8x1xf32> to vector<8x1xf32>
    %44 = vector.shape_cast %41 : vector<8x1xf32> to vector<1x1x8x1xf32>
    tpu.vector_store %arg7[%c0_55, %c0_56, %c0_57, %c0_58], %44 {strides = array<i32>} : memref<1x1x8x2xf32, #tpu.memory_space<vmem>>, vector<1x1x8x1xf32>,
    %45 = arith.mulf %33, %33 : vector<8x1152xf32>
    %46 = vector.broadcast %37 : vector<1x1152xf32> to vector<8x1152xf32>
    %47 = arith.mulf %45, %46 : vector<8x1152xf32>
    %cst_59 = arith.constant dense<0.000000e+00> : vector<8xf32>
    %48 = vector.multi_reduction <add>, %47, %cst_59 [1] : vector<8x1152xf32> to vector<8xf32>
    %49 = vector.shape_cast %48 : vector<8xf32> to vector<8x1xf32>
    %c0_60 = arith.constant 0 : index
    %c0_61 = arith.constant 0 : index
    %c0_62 = arith.constant 0 : index
    %c1_63 = arith.constant 1 : index
    %50 = vector.load %arg7[%c0_60, %c0_61, %c0_62, %c1_63] : memref<1x1x8x2xf32, #tpu.memory_space<vmem>>, vector<1x1x8x1xf32>
    %51 = vector.shape_cast %50 : vector<1x1x8x1xf32> to vector<8x1xf32>
    %52 = vector.shape_cast %49 : vector<8x1xf32> to vector<1x1x8x1xf32>
    tpu.vector_store %arg7[%c0_60, %c0_61, %c0_62, %c1_63], %52 {strides = array<i32>} : memref<1x1x8x2xf32, #tpu.memory_space<vmem>>, vector<1x1x8x1xf32>,
    return
  }
  func.func @transform_0(%arg0: i32, %arg1: i32) -> (i32, i32, i32, i32) {
    %c0_i32 = arith.constant 0 : i32
    %c0_i32_0 = arith.constant 0 : i32
    %c0_i32_1 = arith.constant 0 : i32
    return %arg0, %arg1, %c0_i32, %c0_i32_0 : i32, i32, i32, i32
  }
  func.func @transform_1(%arg0: i32, %arg1: i32) -> (i32, i32) {
    %c0_i32 = arith.constant 0 : i32
    %c0_i32_0 = arith.constant 0 : i32
    %c0_i32_1 = arith.constant 0 : i32
    return %c0_i32, %c0_i32_0 : i32, i32
  }
  func.func @transform_2(%arg0: i32, %arg1: i32) -> (i32, i32, i32) {
    %c0_i32 = arith.constant 0 : i32
    %c0_i32_0 = arith.constant 0 : i32
    %c0_i32_1 = arith.constant 0 : i32
    %c0_i32_2 = arith.constant 0 : i32
    return %c0_i32, %c0_i32_0, %c0_i32_1 : i32, i32, i32
  }
  func.func @transform_3(%arg0: i32, %arg1: i32) -> (i32, i32) {
    %c0_i32 = arith.constant 0 : i32
    %c0_i32_0 = arith.constant 0 : i32
    return %c0_i32, %arg1 : i32, i32
  }
  func.func @transform_4(%arg0: i32, %arg1: i32) -> (i32, i32, i32) {
    %c0_i32 = arith.constant 0 : i32
    %c0_i32_0 = arith.constant 0 : i32
    return %arg0, %c0_i32, %arg1 : i32, i32, i32
  }
  func.func @transform_5(%arg0: i32, %arg1: i32) -> (i32, i32, i32, i32) {
    %c0_i32 = arith.constant 0 : i32
    %c0_i32_0 = arith.constant 0 : i32
    %c0_i32_1 = arith.constant 0 : i32
    return %arg0, %arg1, %c0_i32, %c0_i32_0 : i32, i32, i32, i32
  }
}

module attributes {stable_mosaic.version = 11 : i64} {
  func.func @_bn_lrelu_kernel(%arg0: i32, %arg1: i32, %arg2: memref<1x8x1152xf32, #tpu.memory_space<vmem>>, %arg3: memref<1x8x1xf32, #tpu.memory_space<vmem>>, %arg4: memref<1x8x1xf32, #tpu.memory_space<vmem>>, %arg5: memref<1x8x1152xf32, #tpu.memory_space<vmem>>) attributes {dimension_semantics = [#tpu.dimension_semantics<parallel>, #tpu.dimension_semantics<parallel>], iteration_bounds = array<i64: 2, 1>, scalar_prefetch = 0 : i64, scratch_operands = 0 : i64, tpu.core_type = #tpu.core_type<tc>, window_params = [{transform_indices = @transform_0, window_bounds = array<i64: 1, 8, 1152>}, {pipeline_mode = #tpu.pipeline_mode<synchronous>, transform_indices = @transform_1, window_bounds = array<i64: 1, 8, 1>}, {pipeline_mode = #tpu.pipeline_mode<synchronous>, transform_indices = @transform_2, window_bounds = array<i64: 1, 8, 1>}, {transform_indices = @transform_3, window_bounds = array<i64: 1, 8, 1152>}]} {
    %c0 = arith.constant 0 : index
    %c0_0 = arith.constant 0 : index
    %c0_1 = arith.constant 0 : index
    %0 = vector.load %arg2[%c0, %c0_0, %c0_1] : memref<1x8x1152xf32, #tpu.memory_space<vmem>>, vector<1x8x1152xf32>
    %1 = vector.shape_cast %0 : vector<1x8x1152xf32> to vector<8x1152xf32>
    %c0_2 = arith.constant 0 : index
    %c0_3 = arith.constant 0 : index
    %c0_4 = arith.constant 0 : index
    %2 = vector.load %arg3[%c0_2, %c0_3, %c0_4] : memref<1x8x1xf32, #tpu.memory_space<vmem>>, vector<1x8x1xf32>
    %3 = vector.shape_cast %2 : vector<1x8x1xf32> to vector<8x1xf32>
    %4 = vector.broadcast %3 : vector<8x1xf32> to vector<8x1152xf32>
    %5 = arith.mulf %1, %4 : vector<8x1152xf32>
    %c0_5 = arith.constant 0 : index
    %c0_6 = arith.constant 0 : index
    %c0_7 = arith.constant 0 : index
    %6 = vector.load %arg4[%c0_5, %c0_6, %c0_7] : memref<1x8x1xf32, #tpu.memory_space<vmem>>, vector<1x8x1xf32>
    %7 = vector.shape_cast %6 : vector<1x8x1xf32> to vector<8x1xf32>
    %8 = vector.broadcast %7 : vector<8x1xf32> to vector<8x1152xf32>
    %9 = arith.addf %5, %8 : vector<8x1152xf32>
    %cst = arith.constant 0.000000e+00 : f32
    %10 = vector.broadcast %cst : f32 to vector<8x1152xf32>
    %11 = arith.cmpf ogt, %9, %10 : vector<8x1152xf32>
    %cst_8 = arith.constant 0.00999999977 : f32
    %12 = vector.broadcast %cst_8 : f32 to vector<8x1152xf32>
    %13 = arith.mulf %12, %9 : vector<8x1152xf32>
    %14 = arith.select %11, %9, %13 : vector<8x1152xi1>, vector<8x1152xf32>
    %c0_9 = arith.constant 0 : index
    %c0_10 = arith.constant 0 : index
    %c0_11 = arith.constant 0 : index
    %15 = vector.load %arg5[%c0_9, %c0_10, %c0_11] : memref<1x8x1152xf32, #tpu.memory_space<vmem>>, vector<1x8x1152xf32>
    %16 = vector.shape_cast %15 : vector<1x8x1152xf32> to vector<8x1152xf32>
    %17 = vector.shape_cast %14 : vector<8x1152xf32> to vector<1x8x1152xf32>
    tpu.vector_store %arg5[%c0_9, %c0_10, %c0_11], %17 {strides = array<i32>} : memref<1x8x1152xf32, #tpu.memory_space<vmem>>, vector<1x8x1152xf32>,
    return
  }
  func.func @transform_0(%arg0: i32, %arg1: i32) -> (i32, i32, i32) {
    %c0_i32 = arith.constant 0 : i32
    %c0_i32_0 = arith.constant 0 : i32
    return %arg0, %c0_i32, %arg1 : i32, i32, i32
  }
  func.func @transform_1(%arg0: i32, %arg1: i32) -> (i32, i32, i32) {
    %c0_i32 = arith.constant 0 : i32
    %c0_i32_0 = arith.constant 0 : i32
    %c0_i32_1 = arith.constant 0 : i32
    %c0_i32_2 = arith.constant 0 : i32
    return %c0_i32, %c0_i32_0, %c0_i32_1 : i32, i32, i32
  }
  func.func @transform_2(%arg0: i32, %arg1: i32) -> (i32, i32, i32) {
    %c0_i32 = arith.constant 0 : i32
    %c0_i32_0 = arith.constant 0 : i32
    %c0_i32_1 = arith.constant 0 : i32
    %c0_i32_2 = arith.constant 0 : i32
    return %c0_i32, %c0_i32_0, %c0_i32_1 : i32, i32, i32
  }
  func.func @transform_3(%arg0: i32, %arg1: i32) -> (i32, i32, i32) {
    %c0_i32 = arith.constant 0 : i32
    %c0_i32_0 = arith.constant 0 : i32
    return %arg0, %c0_i32, %arg1 : i32, i32, i32
  }
}

module attributes {stable_mosaic.version = 11 : i64} {
  func.func @_head_kernel(%arg0: i32, %arg1: memref<2x1024xf32, #tpu.memory_space<vmem>>, %arg2: memref<1024x256xf32, #tpu.memory_space<vmem>>, %arg3: memref<1x256xf32, #tpu.memory_space<vmem>>, %arg4: memref<256x256xf32, #tpu.memory_space<vmem>>, %arg5: memref<1x256xf32, #tpu.memory_space<vmem>>, %arg6: memref<256x16xf32, #tpu.memory_space<vmem>>, %arg7: memref<1x16xf32, #tpu.memory_space<vmem>>, %arg8: memref<2x16xf32, #tpu.memory_space<vmem>>, %arg9: memref<2x256xf32, #tpu.memory_space<vmem>>) attributes {dimension_semantics = [#tpu.dimension_semantics<arbitrary>], iteration_bounds = array<i64: 8>, scalar_prefetch = 0 : i64, scratch_operands = 1 : i64, tpu.core_type = #tpu.core_type<tc>, window_params = [{transform_indices = @transform_0, window_bounds = array<i64: 2, 1024>}, {transform_indices = @transform_1, window_bounds = array<i64: 1024, 256>}, {pipeline_mode = #tpu.pipeline_mode<synchronous>, transform_indices = @transform_2, window_bounds = array<i64: 1, 256>}, {pipeline_mode = #tpu.pipeline_mode<synchronous>, transform_indices = @transform_3, window_bounds = array<i64: 256, 256>}, {pipeline_mode = #tpu.pipeline_mode<synchronous>, transform_indices = @transform_4, window_bounds = array<i64: 1, 256>}, {pipeline_mode = #tpu.pipeline_mode<synchronous>, transform_indices = @transform_5, window_bounds = array<i64: 256, 16>}, {pipeline_mode = #tpu.pipeline_mode<synchronous>, transform_indices = @transform_6, window_bounds = array<i64: 1, 16>}, {pipeline_mode = #tpu.pipeline_mode<synchronous>, transform_indices = @transform_7, window_bounds = array<i64: 2, 16>}]} {
    %c0_i32 = arith.constant 0 : i32
    %0 = arith.cmpi eq, %arg0, %c0_i32 : i32
    %1 = arith.extui %0 : i1 to i32
    %c0_i32_0 = arith.constant 0 : i32
    %2 = arith.cmpi ne, %1, %c0_i32_0 : i32
    scf.if %2 {
      %cst_9 = arith.constant 0.000000e+00 : f32
      %12 = vector.broadcast %cst_9 : f32 to vector<2x256xf32>
      %c0_10 = arith.constant 0 : index
      %c0_11 = arith.constant 0 : index
      %13 = vector.load %arg9[%c0_10, %c0_11] : memref<2x256xf32, #tpu.memory_space<vmem>>, vector<2x256xf32>
      tpu.vector_store %arg9[%c0_10, %c0_11], %12 {strides = array<i32>} : memref<2x256xf32, #tpu.memory_space<vmem>>, vector<2x256xf32>,
    } else {
    }
    %c0 = arith.constant 0 : index
    %c0_1 = arith.constant 0 : index
    %3 = vector.load %arg9[%c0, %c0_1] : memref<2x256xf32, #tpu.memory_space<vmem>>, vector<2x256xf32>
    %c0_2 = arith.constant 0 : index
    %c0_3 = arith.constant 0 : index
    %4 = vector.load %arg1[%c0_2, %c0_3] : memref<2x1024xf32, #tpu.memory_space<vmem>>, vector<2x1024xf32>
    %c0_4 = arith.constant 0 : index
    %c0_5 = arith.constant 0 : index
    %5 = vector.load %arg2[%c0_4, %c0_5] : memref<1024x256xf32, #tpu.memory_space<vmem>>, vector<1024x256xf32>
    %cst = arith.constant dense<0.000000e+00> : vector<2x256xf32>
    %6 = tpu.matmul %4, %5, %cst {dimension_numbers = #tpu.dot_dimension_numbers<[1], [0], [0], [1], [0, 0, 1, 1], [], []>} : vector<2x1024xf32>, vector<1024x256xf32>, vector<2x256xf32> -> vector<2x256xf32>
    %7 = arith.addf %3, %6 : vector<2x256xf32>
    %c0_6 = arith.constant 0 : index
    %c0_7 = arith.constant 0 : index
    %8 = vector.load %arg9[%c0_6, %c0_7] : memref<2x256xf32, #tpu.memory_space<vmem>>, vector<2x256xf32>
    tpu.vector_store %arg9[%c0_6, %c0_7], %7 {strides = array<i32>} : memref<2x256xf32, #tpu.memory_space<vmem>>, vector<2x256xf32>,
    %c7_i32 = arith.constant 7 : i32
    %9 = arith.cmpi eq, %arg0, %c7_i32 : i32
    %10 = arith.extui %9 : i1 to i32
    %c0_i32_8 = arith.constant 0 : i32
    %11 = arith.cmpi ne, %10, %c0_i32_8 : i32
    scf.if %11 {
      %c0_9 = arith.constant 0 : index
      %c0_10 = arith.constant 0 : index
      %12 = vector.load %arg9[%c0_9, %c0_10] : memref<2x256xf32, #tpu.memory_space<vmem>>, vector<2x256xf32>
      %c0_11 = arith.constant 0 : index
      %c0_12 = arith.constant 0 : index
      %13 = vector.load %arg3[%c0_11, %c0_12] : memref<1x256xf32, #tpu.memory_space<vmem>>, vector<1x256xf32>
      %14 = vector.broadcast %13 : vector<1x256xf32> to vector<2x256xf32>
      %15 = arith.addf %12, %14 : vector<2x256xf32>
      %cst_13 = arith.constant 0.000000e+00 : f32
      %16 = vector.broadcast %cst_13 : f32 to vector<2x256xf32>
      %17 = arith.maximumf %15, %16 : vector<2x256xf32>
      %c0_14 = arith.constant 0 : index
      %c0_15 = arith.constant 0 : index
      %18 = vector.load %arg4[%c0_14, %c0_15] : memref<256x256xf32, #tpu.memory_space<vmem>>, vector<256x256xf32>
      %cst_16 = arith.constant dense<0.000000e+00> : vector<2x256xf32>
      %19 = tpu.matmul %17, %18, %cst_16 {dimension_numbers = #tpu.dot_dimension_numbers<[1], [0], [0], [1], [0, 0, 1, 1], [], []>} : vector<2x256xf32>, vector<256x256xf32>, vector<2x256xf32> -> vector<2x256xf32>
      %c0_17 = arith.constant 0 : index
      %c0_18 = arith.constant 0 : index
      %20 = vector.load %arg5[%c0_17, %c0_18] : memref<1x256xf32, #tpu.memory_space<vmem>>, vector<1x256xf32>
      %21 = vector.broadcast %20 : vector<1x256xf32> to vector<2x256xf32>
      %22 = arith.addf %19, %21 : vector<2x256xf32>
      %cst_19 = arith.constant 0.000000e+00 : f32
      %23 = vector.broadcast %cst_19 : f32 to vector<2x256xf32>
      %24 = arith.maximumf %22, %23 : vector<2x256xf32>
      %c0_20 = arith.constant 0 : index
      %c0_21 = arith.constant 0 : index
      %25 = vector.load %arg6[%c0_20, %c0_21] : memref<256x16xf32, #tpu.memory_space<vmem>>, vector<256x16xf32>
      %cst_22 = arith.constant dense<0.000000e+00> : vector<2x16xf32>
      %26 = tpu.matmul %24, %25, %cst_22 {dimension_numbers = #tpu.dot_dimension_numbers<[1], [0], [0], [1], [0, 0, 1, 1], [], []>} : vector<2x256xf32>, vector<256x16xf32>, vector<2x16xf32> -> vector<2x16xf32>
      %c0_23 = arith.constant 0 : index
      %c0_24 = arith.constant 0 : index
      %27 = vector.load %arg7[%c0_23, %c0_24] : memref<1x16xf32, #tpu.memory_space<vmem>>, vector<1x16xf32>
      %28 = vector.broadcast %27 : vector<1x16xf32> to vector<2x16xf32>
      %29 = arith.addf %26, %28 : vector<2x16xf32>
      %c0_25 = arith.constant 0 : index
      %c0_26 = arith.constant 0 : index
      %30 = vector.load %arg8[%c0_25, %c0_26] : memref<2x16xf32, #tpu.memory_space<vmem>>, vector<2x16xf32>
      tpu.vector_store %arg8[%c0_25, %c0_26], %29 {strides = array<i32>} : memref<2x16xf32, #tpu.memory_space<vmem>>, vector<2x16xf32>,
    } else {
    }
    return
  }
  func.func @transform_0(%arg0: i32) -> (i32, i32) {
    %c0_i32 = arith.constant 0 : i32
    %c0_i32_0 = arith.constant 0 : i32
    return %c0_i32, %arg0 : i32, i32
  }
  func.func @transform_1(%arg0: i32) -> (i32, i32) {
    %c0_i32 = arith.constant 0 : i32
    %c0_i32_0 = arith.constant 0 : i32
    return %arg0, %c0_i32 : i32, i32
  }
  func.func @transform_2(%arg0: i32) -> (i32, i32) {
    %c0_i32 = arith.constant 0 : i32
    %c0_i32_0 = arith.constant 0 : i32
    %c0_i32_1 = arith.constant 0 : i32
    return %c0_i32, %c0_i32_0 : i32, i32
  }
  func.func @transform_3(%arg0: i32) -> (i32, i32) {
    %c0_i32 = arith.constant 0 : i32
    %c0_i32_0 = arith.constant 0 : i32
    %c0_i32_1 = arith.constant 0 : i32
    return %c0_i32, %c0_i32_0 : i32, i32
  }
  func.func @transform_4(%arg0: i32) -> (i32, i32) {
    %c0_i32 = arith.constant 0 : i32
    %c0_i32_0 = arith.constant 0 : i32
    %c0_i32_1 = arith.constant 0 : i32
    return %c0_i32, %c0_i32_0 : i32, i32
  }
  func.func @transform_5(%arg0: i32) -> (i32, i32) {
    %c0_i32 = arith.constant 0 : i32
    %c0_i32_0 = arith.constant 0 : i32
    %c0_i32_1 = arith.constant 0 : i32
    return %c0_i32, %c0_i32_0 : i32, i32
  }
  func.func @transform_6(%arg0: i32) -> (i32, i32) {
    %c0_i32 = arith.constant 0 : i32
    %c0_i32_0 = arith.constant 0 : i32
    %c0_i32_1 = arith.constant 0 : i32
    return %c0_i32, %c0_i32_0 : i32, i32
  }
  func.func @transform_7(%arg0: i32) -> (i32, i32) {
    %c0_i32 = arith.constant 0 : i32
    %c0_i32_0 = arith.constant 0 : i32
    %c0_i32_1 = arith.constant 0 : i32
    return %c0_i32, %c0_i32_0 : i32, i32
  }
}

</mosaic_0001>

<bundles_post_ra>
// kernel: variational_encoder_forward.6
= control target key start
LH: loop header
LB: loop body
LE: loop exit
PB: predicated region body
PF: predicated region fallthrough
CT: control target
= control target key end

     0   :  { %s483_s12 = smov 0   ;;  %s485_s13 = smov 0   ;;  %s547_s0 = inlined_call_operand.vmem [shape: f32[2,4,4224], index: 0, kind: input, shape index: {}]   ;;  %s548_s1 = inlined_call_operand.vmem [shape: f32[1,4,1], index: 1, kind: input, shape index: {}]   ;;  %s549_s2 = inlined_call_operand.vmem [shape: f32[1,4,1], index: 2, kind: input, shape index: {}]   ;;  %s550_s3 = inlined_call_operand.vmem [shape: f32[2,4,4224], index: 3, kind: output, shape index: {}]  }
   0x1   :  { %s487_s14 = smov 0   ;;  %s489_s15 = smov 0  }
   0x2   :  { %s491_s16 = smov 0  }
   0x3 LB: > { %s22_s17 = sadd.s32 1, %s451_s14  ;;  %s25_s18 = sadd.s32 1, %s455_s15  ;;  %s459_s16 = sphi %s491_s16, %s13_s16   ;;  %s455_s15 = sphi %s489_s15, %s554_s15   ;;  %s451_s14 = sphi %s487_s14, %s553_s14   ;;  %s447_s13 = sphi %s485_s13, %s552_s13   ;;  %s443_s12 = sphi %s483_s12, %s551_s12  }
   0x4   : > { %p23_p0 = scmp.ge.s32.totalorder %s22_s17, 3  ;;  %p372_p1 = scmp.ge.s32.totalorder %s459_s16, 1 }
   0x5   : > { %p158_p2 = scmp.lt.s32.totalorder %s459_s16, 7 }
   0x6   : > { %s556_s17 = smov (%p23_p0, %s22_s17), 0  ;;  %s558_s18 = smov (!%p23_p0, %s25_s18), %s455_s15 }
   0x7   : > { %p159_p3 = pnand %p372_p1, %p158_p2  ;;  %p27_p4 = scmp.ge.s32.totalorder %s558_s18, 2 }
   0x8   : > { %s190_s23 = smul.u32 (!%p159_p3), 11, %s443_s12  ;;  %p191_p5 = scmp.lt.s32.totalorder (!%p159_p3), %s447_s13, 1 }
   0x9   : > { %s560_s18 = smov (%p27_p4, %s558_s18), 0  ;;  %162 = sbr.rel (%p159_p3) target bundleno = 155 (0x9b), region = 32 }
   0xa   : > { %p193_p6 = scmp.lt.s32.totalorder (!%p159_p3), %s190_s23, 32 }
   0xe   : > { %v216_v0 = vld [vmem:[%s548_s1] sm:$0xf]  ;;  %v461_v1 = vmov 0   ;;  %s562_s13 = smov (!%p191_p5, %s447_s13), 1  ;;  %s564_s23 = smov (!%p193_p6, %s190_s23), 32  ;;  %v224_v5 = vlaneseq }
   0xf   : > { %420 = vset.pattern.permute.xlu0 %v461_v1  ;;  %v235_v2 = vld [vmem:[%s549_s2] sm:$0xf]  ;;  %s377_s24 = smul.u32 33, %s562_s13  ;;  %v462_v3 = vmov 839922192  }
  0x10   : > { %219 = vperm.xlu0 %420, %v216_v0   ;;  %v222_v4 = vunpack.c.l.s4 %v462_v3  ;;  %v225_v7 = vshrl.u32 %v224_v5, 7 }
  0x11   : > { %s519_s25 = sadd.s32 %s377_s24, %s564_s23 }
  0x12   : > { %v223_v6 = vunpack.c.0.s8 %v222_v4  ;;  %s373_s26 = sshll.u32 %s519_s25, 2 }
  0x13   : > { %s198_s29 = scalar_lea.vmem %s547_s0, %s373_s26  ;;  %s208_s5 = scalar_lea.vmem %s550_s3, %s373_s26 }
  0x14   : > { %238 = vperm.xlu0 %420, %v235_v2   ;;  %v226_v8 = vsub.s32 %v223_v6, %v225_v7  ;;  %v210_v10 = vld [vmem:[%s198_s29] sm:$0xff]  ;;  %v211_v12 = vld [vmem:[%s198_s29 + $0x8] sm:$0xff]  ;;  %v212_v13 = vld [vmem:[%s198_s29 + $0x10] sm:$0xff] }
  0x15   : > { %v213_v14 = vld [vmem:[%s198_s29 + $0x18] sm:$0xff]  ;;  %v214_v15 = vld [vmem:[%s198_s29 + $0x20] sm:$0xff]  ;;  %v215_v16 = vld [vmem:[%s198_s29 + $0x28] sm:$0xf] }
  0x8b   : > { %v220_v9 = vpop.permute.xlu0 %219 }
  0x8c   : > { %v227_v11 = vrot.slane %v220_v9, %v226_v8 }
  0x8e   : > { %v229_v17 = vmul.f32 %v227_v11, %v210_v10  ;;  %v230_v19 = vmul.f32 %v227_v11, %v211_v12  ;;  %v231_v20 = vmul.f32 %v227_v11, %v212_v13  ;;  %v232_v21 = vmul.f32 %v227_v11, %v213_v14 }
  0x8f   : > { %v239_v18 = vpop.permute.xlu0 %238  ;;  %v233_v23 = vmul.f32 %v227_v11, %v214_v15  ;;  %v234_v24 = vmul.f32 %v227_v11, %v215_v16 }
  0x90   : > { %v246_v22 = vrot.slane %v239_v18, %v226_v8 }
  0x92   : > { %v248_v25 = vadd.f32 %v246_v22, %v229_v17  ;;  %v249_v26 = vadd.f32 %v246_v22, %v230_v19  ;;  %v250_v27 = vadd.f32 %v246_v22, %v231_v20  ;;  %v251_v28 = vadd.f32 %v246_v22, %v232_v21 }
  0x93   : > { %v252_v29 = vadd.f32 %v246_v22, %v233_v23  ;;  %v253_v30 = vadd.f32 %v246_v22, %v234_v24 }
  0x94   : > { %vm254_vm0 = vcmp.gt.f32.partialorder %v248_v25, 0.0  ;;  %vm255_vm1 = vcmp.gt.f32.partialorder %v249_v26, 0.0  ;;  %vm256_vm2 = vcmp.gt.f32.partialorder %v250_v27, 0.0  ;;  %vm257_vm3 = vcmp.gt.f32.partialorder %v251_v28, 0.0 }
  0x95   : > { %vm258_vm4 = vcmp.gt.f32.partialorder %v252_v29, 0.0  ;;  %vm259_vm5 = vcmp.gt.f32.partialorder %v253_v30, 0.0  ;;  %v260_v31 = vmul.f32 0.01, %v248_v25  ;;  %v261_v32 = vmul.f32 0.01, %v249_v26 }
  0x96   : > { %v262_v33 = vmul.f32 0.01, %v250_v27  ;;  %v263_v34 = vmul.f32 0.01, %v251_v28  ;;  %v264_v35 = vmul.f32 0.01, %v252_v29 }
  0x97   : > { %v265_v36 = vmul.f32 0.01, %v253_v30  ;;  %v266_v37 = vsel %vm254_vm0, %v248_v25, %v260_v31  ;;  %v267_v38 = vsel %vm255_vm1, %v249_v26, %v261_v32 }
  0x98   : > { %v268_v39 = vsel %vm256_vm2, %v250_v27, %v262_v33  ;;  %v269_v40 = vsel %vm257_vm3, %v251_v28, %v263_v34  ;;  %v270_v41 = vsel %vm258_vm4, %v252_v29, %v264_v35  ;;  %272 = vst [vmem:[%s208_s5] sm:$0xff] %v266_v37  ;;  %273 = vst [vmem:[%s208_s5 + $0x8] sm:$0xff] %v267_v38 }
  0x99   : > { %v271_v42 = vsel %vm259_vm5, %v253_v30, %v265_v36  ;;  %274 = vst [vmem:[%s208_s5 + $0x10] sm:$0xff] %v268_v39  ;;  %275 = vst [vmem:[%s208_s5 + $0x18] sm:$0xff] %v269_v40 }
  0x9a   : > { %276 = vst [vmem:[%s208_s5 + $0x20] sm:$0xff] %v270_v41  ;;  %277 = vst [vmem:[%s208_s5 + $0x28] sm:$0xf] %v271_v42 }
  0x9b PF: > { %s13_s16 = sadd.s32 1, %s459_s16   ;;  %s551_s12 = smov %s451_s14 }
  0x9c   : > { %p10_p7 = scmp.ge.s32.totalorder %s13_s16, 8   ;;  %s552_s13 = smov %s455_s15 }
  0x9d   : > { %s553_s14 = smov %s556_s17  ;;  %s554_s15 = smov %s560_s18 }
  0x9e   :  { %12 = sbr.rel (!%p10_p7) target bundleno = 3 (0x3), region = 62 }

// kernel: variational_encoder_forward.5
= control target key start
LH: loop header
LB: loop body
LE: loop exit
PB: predicated region body
PF: predicated region fallthrough
CT: control target
= control target key end

     0   :  { %s1825_s18 = smov 0   ;;  %s1827_s19 = smov 0   ;;  %s2360_s0 = inlined_call_operand.vmem [shape: f32[2,3,32,1536], index: 0, kind: input, shape index: {}]   ;;  %s2361_s1 = inlined_call_operand.vmem [shape: f32[4,72], index: 1, kind: input, shape index: {}]   ;;  %s2362_s2 = inlined_call_operand.vmem [shape: f32[1,4,1], index: 2, kind: input, shape index: {}]   ;;  %s2363_s3 = inlined_call_operand.vmem [shape: f32[1,4224], index: 3, kind: input, shape index: {}]   ;;  %s2364_s4 = inlined_call_operand.vmem [shape: f32[2,4,4224], index: 4, kind: output, shape index: {0}]   ;;  %s2365_s5 = inlined_call_operand.vmem [shape: f32[2,3,4,2], index: 5, kind: output, shape index: {1}]  }
   0x1   :  { %s1829_s20 = smov 0   ;;  %s1831_s21 = smov 0  }
   0x2   :  { %s1833_s22 = smov 0  }
   0x3 LB: > { %s25_s23 = sadd.s32 1, %s1779_s20  ;;  %s28_s24 = sadd.s32 1, %s1783_s21  ;;  %s1787_s22 = sphi %s1833_s22, %s16_s22   ;;  %s1783_s21 = sphi %s1831_s21, %s2369_s21   ;;  %s1779_s20 = sphi %s1829_s20, %s2368_s20   ;;  %s1775_s19 = sphi %s1827_s19, %s2367_s19   ;;  %s1771_s18 = sphi %s1825_s18, %s2366_s18  }
   0x4   : > { %p26_p0 = scmp.ge.s32.totalorder %s25_s23, 3  ;;  %p1655_p1 = scmp.ge.s32.totalorder %s1787_s22, 1 }
   0x5   : > { %p222_p2 = scmp.lt.s32.totalorder %s1787_s22, 7 }
   0x6   : > { %s2371_s23 = smov (%p26_p0, %s25_s23), 0  ;;  %s2373_s24 = smov (!%p26_p0, %s28_s24), %s1783_s21 }
   0x7   : > { %p223_p3 = pnand %p1655_p1, %p222_p2  ;;  %p30_p4 = scmp.ge.s32.totalorder %s2373_s24, 2 }
   0x8   : > { %p270_p5 = scmp.lt.s32.totalorder (!%p223_p3), %s1775_s19, 1  ;;  %p272_p6 = scmp.lt.s32.totalorder (!%p223_p3), %s1771_s18, 2 }
   0x9   : > { %s2375_s24 = smov (%p30_p4, %s2373_s24), 0  ;;  %226 = sbr.rel (%p223_p3) target bundleno = 606 (0x25e), region = 36 }
   0xa   : > { %s1789_s8 = smov (!%p223_p3), 62   ;;  %s1790_s9 = smov (!%p223_p3), 63  }
   0xb   : > { %s1791_s10 = smov (!%p223_p3), 127   ;;  %s279_s15 = smul.u32 (!%p223_p3), 11, %s1771_s18 }
   0xd   : > { %p280_p7 = scmp.lt.s32.totalorder (!%p223_p3), %s279_s15, 32 }
   0xe   : > { %s2377_s19 = smov (!%p270_p5, %s1775_s19), 1  ;;  %v1792_v15 = vmov 0.0   ;;  %v1793_v37 = vmov 0   ;;  %vm764_vm0 = vcmask 506880   ;;  %v898_v40 = vld [vmem:[%s2362_s2] sm:$0xf] }
   0xf   : > { %s1861_s25 = scalar_select %p272_p6, %s1771_s18, 2  ;;  %972 = vmatprep.mubr.f32.mxu0 %v1792_v15  ;;  %1043 = vmatprep.mubr.f32.mxu1 %v1792_v15  ;;  %vm601_vm1 = vcmask 515072   ;;  %vm394_vm2 = vcmask 1039360   ;;  %vm904_vm3 = vcmask 588800   ;;  %vm1794_vm4 = vmmov 0  }
  0x10   : > { %s1699_s26 = smul.u32 144, %s2377_s19  ;;  %1748 = vset.pattern.permute.xlu0 %v1793_v37  ;;  %s2379_s15 = smov (!%p280_p7, %s279_s15), 32  ;;  %vm1429_vm5 = vcmask 1043456   ;;  %vm1453_vm6 = vcmask 3072   ;;  %vm1500_vm7 = vcmask 11272  }
  0x11   : > { %s1698_s27 = smul.u32 48, %s1861_s25  ;;  %s2273_s6 = scalar_lea.vmem %s2363_s3, %s2379_s15 }
  0x12   : > { %s1700_s16 = smul.u32 33, %s2377_s19 }
  0x13   : > { %s276_s28 = sadd.s32 %s1699_s26, %s1698_s27 }
  0x14   : > { %s1656_s29 = sshll.u32 %s276_s28, 3  ;;  %s290_s17 = sadd.s32 %s1700_s16, %s2379_s15 }
  0x15   : > { %s1868_s7 = scalar_lea.vmem %s2360_s0, %s1656_s29  ;;  %s1657_s26 = sshll.u32 %s290_s17, 2 }
  0x16   : > { %v1871_v0 = vld [vmem:[%s1868_s7 + $0x8] sm:$0xff]  ;;  %v1874_v1 = vld [vmem:[%s1868_s7] sm:$0xff]  ;;  %v1881_v2 = vld [vmem:[%s1868_s7 + $0x10] sm:$0xff]  ;;  %s2262_s29 = scalar_lea.vmem %s2364_s4, %s1657_s26 }
  0x17   : > { %742 = vrot.lane.b32.xlu0 %v1871_v0, %s1789_s8  ;;  %740 = vrot.lane.b32.xlu1 %v1874_v1, %s1789_s8  ;;  %v1884_v3 = vld [vmem:[%s1868_s7 + $0x68] sm:$0xff]  ;;  %v1891_v4 = vld [vmem:[%s1868_s7 + $0x70] sm:$0xff] }
  0x18   : > { %v1894_v5 = vld [vmem:[%s1868_s7 + $0x60] sm:$0xff]  ;;  %v1908_v7 = vld [vmem:[%s1868_s7 + $0x18] sm:$0xff]  ;;  %v1915_v8 = vld [vmem:[%s1868_s7 + $0xc8] sm:$0xff] }
  0x19   : > { %v1905_v6 = vld [vmem:[%s1868_s7 + $0x20] sm:$0xff]  ;;  %v1922_v9 = vld [vmem:[%s1868_s7 + $0xd0] sm:$0xff]  ;;  %v1925_v10 = vld [vmem:[%s1868_s7 + $0x78] sm:$0xff] }
  0x1a   : > { %v1932_v11 = vld [vmem:[%s1868_s7 + $0x80] sm:$0xff]  ;;  %v1946_v13 = vld [vmem:[%s1868_s7 + $0xd8] sm:$0xff]  ;;  %v1966_v16 = vld [vmem:[%s1868_s7 + $0x28] sm:$0xff] }
  0x1b   : > { %744 = vrot.lane.b32.xlu0 %v1881_v2, %s1789_s8  ;;  %661 = vrot.lane.b32.xlu1 %v1884_v3, %s1790_s9  ;;  %v1935_v12 = vld [vmem:[%s1868_s7 + $0xc0] sm:$0xff]  ;;  %v1973_v17 = vld [vmem:[%s1868_s7 + $0x88] sm:$0xff] }
  0x1c   : > { %v1949_v14 = vld [vmem:[%s1868_s7 + $0xe0] sm:$0xff]  ;;  %v1976_v18 = vld [vmem:[%s1868_s7 + $0x30] sm:$0xff]  ;;  %v1990_v20 = vld [vmem:[%s1868_s7 + $0x38] sm:$0xff] }
  0x1d   : > { %v1983_v19 = vld [vmem:[%s1868_s7 + $0x90] sm:$0xff]  ;;  %v1997_v21 = vld [vmem:[%s1868_s7 + $0xe8] sm:$0xff]  ;;  %v2000_v22 = vld [vmem:[%s1868_s7 + $0x40] sm:$0xff] }
  0x1e   : > { %v2007_v23 = vld [vmem:[%s1868_s7 + $0x98] sm:$0xff]  ;;  %v2010_v24 = vld [vmem:[%s1868_s7 + $0xf0] sm:$0xff]  ;;  %v2017_v25 = vld [vmem:[%s1868_s7 + $0xa0] sm:$0xff] }
  0x1f   : > { %663 = vrot.lane.b32.xlu0 %v1891_v4, %s1790_s9  ;;  %659 = vrot.lane.b32.xlu1 %v1894_v5, %s1790_s9  ;;  %v2024_v26 = vld [vmem:[%s1868_s7 + $0xf8] sm:$0xff]  ;;  %v2031_v27 = vld [vmem:[%s1868_s7 + $0x100] sm:$0xff] }
  0x20   : > { %v2042_v28 = vld [vmem:[%s1868_s7 + $0x48] sm:$0xff]  ;;  %v2052_v30 = vld [vmem:[%s1868_s7 + $0x50] sm:$0xff]  ;;  %v727_v32 = vld [vmem:[%s1868_s7 + $0x58] sm:$0xff] }
  0x21   : > { %v2049_v29 = vld [vmem:[%s1868_s7 + $0xa8] sm:$0xff]  ;;  %v2059_v31 = vld [vmem:[%s1868_s7 + $0xb0] sm:$0xff]  ;;  %v646_v35 = vld [vmem:[%s1868_s7 + $0xb8] sm:$0xff] }
  0x22   : > { %v2070_v33 = vld [vmem:[%s1868_s7 + $0x110] sm:$0xff]  ;;  %v2073_v34 = vld [vmem:[%s1868_s7 + $0x108] sm:$0xff]  ;;  %v483_v36 = vld [vmem:[%s1868_s7 + $0x118] sm:$0xff] }
  0x23   : > { %581 = vrot.lane.b32.xlu1 %v1881_v2, %s1790_s9  ;;  %579 = vrot.lane.b32.xlu0 %v1871_v0, %s1790_s9  ;;  %v450_v37 = vld [vmem:[%s1868_s7 + $0x120] sm:$0xff] }
  0x27   : > { %748 = vrot.lane.b32.xlu1 %v1905_v6, %s1789_s8  ;;  %746 = vrot.lane.b32.xlu0 %v1908_v7, %s1789_s8 }
  0x2b   : > { %577 = vrot.lane.b32.xlu0 %v1874_v1, %s1790_s9  ;;  %498 = vrot.lane.b32.xlu1 %v1915_v8, %s1791_s10 }
  0x2f   : > { %500 = vrot.lane.b32.xlu0 %v1922_v9, %s1791_s10  ;;  %665 = vrot.lane.b32.xlu1 %v1925_v10, %s1790_s9 }
  0x33   : > { %667 = vrot.lane.b32.xlu0 %v1932_v11, %s1790_s9  ;;  %496 = vrot.lane.b32.xlu1 %v1935_v12, %s1791_s10 }
  0x37   : > { %583 = vrot.lane.b32.xlu0 %v1908_v7, %s1790_s9  ;;  %585 = vrot.lane.b32.xlu1 %v1905_v6, %s1790_s9 }
  0x3b   : > { %502 = vrot.lane.b32.xlu0 %v1946_v13, %s1791_s10  ;;  %504 = vrot.lane.b32.xlu1 %v1949_v14, %s1791_s10 }
  0x3f   : > { %374 = vrot.lane.b32.xlu1 %v1881_v2, %s1791_s10  ;;  %372 = vrot.lane.b32.xlu0 %v1871_v0, %s1791_s10 }
  0x43   : > { %376 = vrot.lane.b32.xlu1 %v1908_v7, %s1791_s10  ;;  %370 = vrot.lane.b32.xlu0 %v1874_v1, %s1791_s10 }
  0x47   : > { %750 = vrot.lane.b32.xlu1 %v1966_v16, %s1789_s8  ;;  %378 = vrot.lane.b32.xlu0 %v1905_v6, %s1791_s10 }
  0x4b   : > { %669 = vrot.lane.b32.xlu1 %v1973_v17, %s1790_s9  ;;  %752 = vrot.lane.b32.xlu0 %v1976_v18, %s1789_s8 }
  0x4f   : > { %587 = vrot.lane.b32.xlu1 %v1966_v16, %s1790_s9  ;;  %671 = vrot.lane.b32.xlu0 %v1983_v19, %s1790_s9 }
  0x53   : > { %754 = vrot.lane.b32.xlu1 %v1990_v20, %s1789_s8  ;;  %589 = vrot.lane.b32.xlu0 %v1976_v18, %s1790_s9 }
  0x57   : > { %506 = vrot.lane.b32.xlu1 %v1997_v21, %s1791_s10  ;;  %756 = vrot.lane.b32.xlu0 %v2000_v22, %s1789_s8 }
  0x5b   : > { %673 = vrot.lane.b32.xlu1 %v2007_v23, %s1790_s9  ;;  %508 = vrot.lane.b32.xlu0 %v2010_v24, %s1791_s10 }
  0x5f   : > { %591 = vrot.lane.b32.xlu1 %v1990_v20, %s1790_s9  ;;  %675 = vrot.lane.b32.xlu0 %v2017_v25, %s1790_s9 }
  0x63   : > { %510 = vrot.lane.b32.xlu1 %v2024_v26, %s1791_s10  ;;  %593 = vrot.lane.b32.xlu0 %v2000_v22, %s1790_s9 }
  0x67   : > { %380 = vrot.lane.b32.xlu1 %v1966_v16, %s1791_s10  ;;  %512 = vrot.lane.b32.xlu0 %v2031_v27, %s1791_s10 }
  0x6b   : > { %384 = vrot.lane.b32.xlu1 %v1990_v20, %s1791_s10  ;;  %382 = vrot.lane.b32.xlu0 %v1976_v18, %s1791_s10 }
  0x6f   : > { %758 = vrot.lane.b32.xlu1 %v2042_v28, %s1789_s8  ;;  %386 = vrot.lane.b32.xlu0 %v2000_v22, %s1791_s10 }
  0x73   : > { %677 = vrot.lane.b32.xlu1 %v2049_v29, %s1790_s9  ;;  %760 = vrot.lane.b32.xlu0 %v2052_v30, %s1789_s8 }
  0x77   : > { %595 = vrot.lane.b32.xlu1 %v2042_v28, %s1790_s9  ;;  %679 = vrot.lane.b32.xlu0 %v2059_v31, %s1790_s9 }
  0x7b   : > { %762 = vrot.lane.b32.xlu1 %v727_v32, %s1789_s8  ;;  %597 = vrot.lane.b32.xlu0 %v2052_v30, %s1790_s9 }
  0x7f   : > { %516 = vrot.lane.b32.xlu1 %v2070_v33, %s1791_s10  ;;  %514 = vrot.lane.b32.xlu0 %v2073_v34, %s1791_s10 }
  0x83   : > { %599 = vrot.lane.b32.xlu1 %v727_v32, %s1790_s9  ;;  %681 = vrot.lane.b32.xlu0 %v646_v35, %s1790_s9 }
  0x87   : > { %388 = vrot.lane.b32.xlu1 %v2042_v28, %s1791_s10  ;;  %518 = vrot.lane.b32.xlu0 %v483_v36, %s1791_s10 }
  0x89   : > { %v743_v38 = vpop.permute.xlu0 %742  ;;  %v741_v39 = vpop.permute.xlu1 %740 }
  0x8a   : > { %v765_v44 = vsel %vm764_vm0, %v741_v39, %v743_v38 }
  0x8b   : > { %392 = vrot.lane.b32.xlu1 %v727_v32, %s1791_s10  ;;  %390 = vrot.lane.b32.xlu0 %v2052_v30, %s1791_s10  ;;  %v451_v32 = vld [vmem:[%s1868_s7 + $0x128] sm:$0xff] }
  0x8d   : > { %v745_v41 = vpop.permute.xlu0 %744  ;;  %v662_v42 = vpop.permute.xlu1 %661 }
  0x8e   : > { %v766_v43 = vsel %vm764_vm0, %v743_v38, %v745_v41 }
  0x8f   : > { %922 = vmatprep.subr.mxu0 %v766_v43  ;;  %901 = vperm.xlu0 %1748, %v898_v40  }
  0x90   : > { %923 = vmatpush1.msra.mxu0 %v765_v44 }
  0x91   : > { %v664_v45 = vpop.permute.xlu0 %663  ;;  %v660_v46 = vpop.permute.xlu1 %659 }
  0x92   : > { %v684_v47 = vsel %vm601_vm1, %v662_v42, %v664_v45  ;;  %v683_v48 = vsel %vm601_vm1, %v660_v46, %v662_v42 }
  0x93   : > { %924 = vmatprep.subr.mxu0 %v684_v47  ;;  %v453_v47 = vld [vmem:[%s1868_s7 + $0x138] sm:$0xff] }
  0x94   : > { %925 = vmatpush1.msra.mxu0 %v683_v48  ;;  %v452_v48 = vld [vmem:[%s1868_s7 + $0x130] sm:$0xff] }
  0x95   : > { %v582_v49 = vpop.permute.xlu1 %581  ;;  %v580_v50 = vpop.permute.xlu0 %579 }
  0x96   : > { %v603_v51 = vsel %vm601_vm1, %v580_v50, %v582_v49 }
  0x97   : > { %926 = vmatprep.subr.mxu0 %v603_v51 }
  0x99   : > { %v2097_v52 = vpop.permute.xlu1 %748  ;;  %v747_v53 = vpop.permute.xlu0 %746 }
  0x9a   : > { %v768_v54 = vsel %vm764_vm0, %v747_v53, %v2097_v52  ;;  %v767_v55 = vsel %vm764_vm0, %v745_v41, %v747_v53 }
  0x9b   : > { %993 = vmatprep.subr.mxu1 %v768_v54 }
  0x9c   : > { %994 = vmatpush1.msra.mxu1 %v767_v55 }
  0x9d   : > { %v578_v56 = vpop.permute.xlu0 %577  ;;  %v499_v57 = vpop.permute.xlu1 %498 }
  0x9e   : > { %v602_v58 = vsel %vm601_vm1, %v578_v56, %v580_v50  ;;  %v2137_v56 = vld [vmem:[%s2361_s1] sm:$0xf] }
  0x9f   : > { %927 = vmatpush1.msra.mxu0 %v602_v58 }
  0xa1   : > { %v501_v59 = vpop.permute.xlu0 %500  ;;  %v666_v60 = vpop.permute.xlu1 %665 }
  0xa2   : > { %v521_v61 = vsel %vm394_vm2, %v499_v57, %v501_v59  ;;  %v685_v38 = vsel %vm601_vm1, %v664_v45, %v666_v60 }
  0xa3   : > { %928 = vmatprep.subr.mxu0 %v521_v61 }
  0xa5   : > { %v2104_v62 = vpop.permute.xlu0 %667  ;;  %v497_v63 = vpop.permute.xlu1 %496 }
  0xa6   : > { %v520_v35 = vsel %vm394_vm2, %v497_v63, %v499_v57  ;;  %v686_v36 = vsel %vm601_vm1, %v666_v60, %v2104_v62 }
  0xa7   : > { %929 = vmatpush1.msra.mxu0 %v520_v35  ;;  %995 = vmatprep.subr.mxu1 %v686_v36 }
  0xa8   : > { %996 = vmatpush1.msra.mxu1 %v685_v38  ;;  %930 = vmatprep.subr.mxu0 %v451_v32 }
  0xa9   : > { %v584_v39 = vpop.permute.xlu0 %583  ;;  %v2112_v40 = vpop.permute.xlu1 %585  ;;  %931 = vmatpush1.msra.mxu0 %v450_v37  ;;  %v455_v37 = vld [vmem:[%s1868_s7 + $0x148] sm:$0xff] }
  0xaa   : > { %v605_v41 = vsel %vm601_vm1, %v584_v39, %v2112_v40  ;;  %v604_v42 = vsel %vm601_vm1, %v582_v49, %v584_v39  ;;  %932 = vmatprep.subr.mxu0 %v1915_v8  ;;  %v454_v39 = vld [vmem:[%s1868_s7 + $0x140] sm:$0xff] }
  0xab   : > { %997 = vmatprep.subr.mxu1 %v605_v41  ;;  %933 = vmatpush1.msra.mxu0 %v1935_v12 }
  0xac   : > { %998 = vmatpush1.msra.mxu1 %v604_v42 }
  0xad   : > { %v503_v43 = vpop.permute.xlu0 %502  ;;  %v2119_v44 = vpop.permute.xlu1 %504 }
  0xae   : > { %v523_v45 = vsel %vm394_vm2, %v503_v43, %v2119_v44  ;;  %v522_v46 = vsel %vm394_vm2, %v501_v59, %v503_v43 }
  0xaf   : > { %999 = vmatprep.subr.mxu1 %v523_v45 }
  0xb0   : > { %1000 = vmatpush1.msra.mxu1 %v522_v46 }
  0xb1   : > { %v375_v50 = vpop.permute.xlu1 %374  ;;  %v373_v49 = vpop.permute.xlu0 %372  ;;  %1001 = vmatprep.subr.mxu1 %v453_v47 }
  0xb2   : > { %v396_v8 = vsel %vm394_vm2, %v373_v49, %v375_v50  ;;  %1002 = vmatpush1.msra.mxu1 %v452_v48 }
  0xb3   : > { %934 = vmatprep.subr.mxu0 %v396_v8  ;;  %1003 = vmatprep.subr.mxu1 %v1946_v13  ;;  %v457_v8 = vld [vmem:[%s1868_s7 + $0x158] sm:$0xff] }
  0xb4   : > { %1004 = vmatpush1.msra.mxu1 %v1922_v9 }
  0xb5   : > { %v377_v12 = vpop.permute.xlu1 %376  ;;  %v371_v51 = vpop.permute.xlu0 %370 }
  0xb6   : > { %v395_v53 = vsel %vm394_vm2, %v371_v51, %v373_v49  ;;  %v397_v13 = vsel %vm394_vm2, %v375_v50, %v377_v12 }
  0xb7   : > { %935 = vmatpush1.msra.mxu0 %v395_v53 }
  0xb8   : > { %936 = vmatprep.subr.mxu0 %v1884_v3 }
  0xb9   : > { %v751_v54 = vpop.permute.xlu1 %750  ;;  %v2131_v55 = vpop.permute.xlu0 %378  ;;  %937 = vmatpush1.msra.mxu0 %v1894_v5 }
  0xba   : > { %v398_v9 = vsel %vm394_vm2, %v377_v12, %v2131_v55  ;;  %938 = vmatprep.subr.mxu0 %v1871_v0  ;;  %v769_v0 = vsel %vm764_vm0, %v2097_v52, %v751_v54 }
  0xbb   : > { %1005 = vmatprep.subr.mxu1 %v398_v9  ;;  %939 = vmatpush1.msra.mxu0 %v1874_v1 }
  0xbc   : > { %1006 = vmatpush1.msra.mxu1 %v397_v13  ;;  %1659 = vmatmul.mubr.msk.f32.vlgmr.msra.gmra.mxu0 %vm904_vm3, %v2137_v56 }
  0xbd   : > { %v670_v3 = vpop.permute.xlu1 %669  ;;  %v753_v5 = vpop.permute.xlu0 %752  ;;  %1007 = vmatprep.subr.mxu1 %v1925_v10  ;;  %1114 = vmatprep.mubr.f32.mxu0 %v1792_v15 }
  0xbe   : > { %v770_v57 = vsel %vm764_vm0, %v751_v54, %v753_v5  ;;  %1008 = vmatpush1.msra.mxu1 %v1891_v4  ;;  %v687_v4 = vsel %vm601_vm1, %v2104_v62, %v670_v3 }
  0xbf   : > { %1064 = vmatprep.subr.mxu0 %v770_v57  ;;  %1009 = vmatprep.subr.mxu1 %v1908_v7 }
  0xc0   : > { %1065 = vmatpush1.msra.mxu0 %v769_v0  ;;  %1010 = vmatpush1.msra.mxu1 %v1881_v2 }
  0xc1   : > { %v588_v1 = vpop.permute.xlu1 %587  ;;  %v672_v58 = vpop.permute.xlu0 %671  ;;  %1660 = vmatmul.mubr.msk.f32.vlgmr.msra.gmra.mxu1 %vm904_vm3, %v2137_v56 }
  0xc2   : > { %v688_v10 = vsel %vm601_vm1, %v670_v3, %v672_v58  ;;  %1185 = vmatprep.mubr.f32.mxu1 %v1792_v15  ;;  %v606_v2 = vsel %vm601_vm1, %v2112_v40, %v588_v1 }
  0xc3   : > { %1066 = vmatprep.subr.mxu0 %v688_v10 }
  0xc4   : > { %1067 = vmatpush1.msra.mxu0 %v687_v4 }
  0xc5   : > { %v755_v52 = vpop.permute.xlu1 %754  ;;  %v590_v7 = vpop.permute.xlu0 %589 }
  0xc6   : > { %v607_v59 = vsel %vm601_vm1, %v588_v1, %v590_v7  ;;  %v771_v62 = vsel %vm764_vm0, %v753_v5, %v755_v52 }
  0xc7   : > { %1068 = vmatprep.subr.mxu0 %v607_v59 }
  0xc8   : > { %1069 = vmatpush1.msra.mxu0 %v606_v2 }
  0xc9   : > { %v507_v60 = vpop.permute.xlu1 %506  ;;  %v2163_v61 = vpop.permute.xlu0 %756 }
  0xca   : > { %v772_v63 = vsel %vm764_vm0, %v755_v52, %v2163_v61  ;;  %v524_v38 = vsel %vm394_vm2, %v2119_v44, %v507_v60  ;;  %v459_v52 = vld [vmem:[%s1868_s7 + $0x168] sm:$0xff] }
  0xcb   : > { %1135 = vmatprep.subr.mxu1 %v772_v63 }
  0xcc   : > { %1136 = vmatpush1.msra.mxu1 %v771_v62 }
  0xcd   : > { %v674_v32 = vpop.permute.xlu1 %673  ;;  %v509_v35 = vpop.permute.xlu0 %508 }
  0xce   : > { %v525_v36 = vsel %vm394_vm2, %v507_v60, %v509_v35  ;;  %v689_v43 = vsel %vm601_vm1, %v672_v58, %v674_v32 }
  0xcf   : > { %1070 = vmatprep.subr.mxu0 %v525_v36 }
  0xd0   : > { %1071 = vmatpush1.msra.mxu0 %v524_v38 }
  0xd1   : > { %v592_v40 = vpop.permute.xlu1 %591  ;;  %v2173_v41 = vpop.permute.xlu0 %675  ;;  %1072 = vmatprep.subr.mxu0 %v455_v37 }
  0xd2   : > { %v690_v42 = vsel %vm601_vm1, %v674_v32, %v2173_v41  ;;  %1073 = vmatpush1.msra.mxu0 %v454_v39  ;;  %v608_v47 = vsel %vm601_vm1, %v590_v7, %v592_v40  ;;  %v458_v7 = vld [vmem:[%s1868_s7 + $0x160] sm:$0xff] }
  0xd3   : > { %1137 = vmatprep.subr.mxu1 %v690_v42  ;;  %1074 = vmatprep.subr.mxu0 %v1997_v21  ;;  %v456_v21 = vld [vmem:[%s1868_s7 + $0x150] sm:$0xff] }
  0xd4   : > { %1138 = vmatpush1.msra.mxu1 %v689_v43  ;;  %1075 = vmatpush1.msra.mxu0 %v1949_v14 }
  0xd5   : > { %v511_v44 = vpop.permute.xlu1 %510  ;;  %v594_v45 = vpop.permute.xlu0 %593 }
  0xd6   : > { %v609_v46 = vsel %vm601_vm1, %v592_v40, %v594_v45  ;;  %v526_v12 = vsel %vm394_vm2, %v509_v35, %v511_v44  ;;  %v460_v35 = vld [vmem:[%s1868_s7 + $0x170] sm:$0xff]  ;;  %s1701_s7 = smul.u32 3, %s2377_s19 }
  0xd7   : > { %1139 = vmatprep.subr.mxu1 %v609_v46 }
  0xd8   : > { %1140 = vmatpush1.msra.mxu1 %v608_v47  ;;  %s299_s8 = sadd.s32 %s1701_s7, %s1861_s25 }
  0xd9   : > { %v381_v48 = vpop.permute.xlu1 %380  ;;  %v513_v50 = vpop.permute.xlu0 %512  ;;  %s1658_s9 = sshll.u32 %s299_s8, 2 }
  0xda   : > { %v527_v49 = vsel %vm394_vm2, %v511_v44, %v513_v50  ;;  %v399_v54 = vsel %vm394_vm2, %v2131_v55, %v381_v48  ;;  %s301_s12 = scalar_lea.vmem %s2365_s5, %s1658_s9 }
  0xdb   : > { %1141 = vmatprep.subr.mxu1 %v527_v49 }
  0xdc   : > { %1142 = vmatpush1.msra.mxu1 %v526_v12 }
  0xdd   : > { %v385_v51 = vpop.permute.xlu1 %384  ;;  %v383_v14 = vpop.permute.xlu0 %382  ;;  %1143 = vmatprep.subr.mxu1 %v457_v8 }
  0xde   : > { %v400_v53 = vsel %vm394_vm2, %v381_v48, %v383_v14  ;;  %1144 = vmatpush1.msra.mxu1 %v456_v21  ;;  %v401_v5 = vsel %vm394_vm2, %v383_v14, %v385_v51 }
  0xdf   : > { %1076 = vmatprep.subr.mxu0 %v400_v53  ;;  %1145 = vmatprep.subr.mxu1 %v2024_v26 }
  0xe0   : > { %1077 = vmatpush1.msra.mxu0 %v399_v54  ;;  %1146 = vmatpush1.msra.mxu1 %v2010_v24 }
  0xe1   : > { %v759_v9 = vpop.permute.xlu1 %758  ;;  %v2191_v13 = vpop.permute.xlu0 %386  ;;  %1078 = vmatprep.subr.mxu0 %v1973_v17 }
  0xe2   : > { %v402_v3 = vsel %vm394_vm2, %v385_v51, %v2191_v13  ;;  %1079 = vmatpush1.msra.mxu0 %v1932_v11  ;;  %v773_v11 = vsel %vm764_vm0, %v2163_v61, %v759_v9 }
  0xe3   : > { %1147 = vmatprep.subr.mxu1 %v402_v3  ;;  %1080 = vmatprep.subr.mxu0 %v1966_v16 }
  0xe4   : > { %1148 = vmatpush1.msra.mxu1 %v401_v5  ;;  %1081 = vmatpush1.msra.mxu0 %v1905_v6 }
  0xe5   : > { %v678_v26 = vpop.permute.xlu1 %677  ;;  %v761_v24 = vpop.permute.xlu0 %760  ;;  %1661 = vmatmul.mubr.msk.f32.vlgmr.msra.gmra.mxu0 %vm904_vm3, %v2137_v56  ;;  %1149 = vmatprep.subr.mxu1 %v2007_v23 }
  0xe6   : > { %v774_v17 = vsel %vm764_vm0, %v759_v9, %v761_v24  ;;  %1150 = vmatpush1.msra.mxu1 %v1983_v19  ;;  %1256 = vmatprep.mubr.f32.mxu0 %v1792_v15  ;;  %v691_v23 = vsel %vm601_vm1, %v2173_v41, %v678_v26  ;;  %v1363_v41 = vlaneseq }
  0xe7   : > { %1206 = vmatprep.subr.mxu0 %v774_v17  ;;  %1151 = vmatprep.subr.mxu1 %v1990_v20 }
  0xe8   : > { %1207 = vmatpush1.msra.mxu0 %v773_v11  ;;  %1152 = vmatpush1.msra.mxu1 %v1976_v18  ;;  %v2268_v42 = vshrl.u32 %v1363_v41, 7 }
  0xe9   : > { %v596_v6 = vpop.permute.xlu1 %595  ;;  %v680_v16 = vpop.permute.xlu0 %679  ;;  %1662 = vmatmul.mubr.msk.f32.vlgmr.msra.gmra.mxu1 %vm904_vm3, %v2137_v56  ;;  %1677 = vmatprep.subr.mxu1 %v1792_v15 }
  0xea   : > { %v692_v19 = vsel %vm601_vm1, %v678_v26, %v680_v16  ;;  %1695 = vmatprep.mubr.msk.f32.mxu1 %vm1794_vm4, %v1792_v15  ;;  %v610_v0 = vsel %vm601_vm1, %v594_v45, %v596_v6  ;;  %v1365_v43 = vsub.s32 0, %v2268_v42  ;;  %v1369_v44 = vsub.s32 1, %v2268_v42  ;;  %v2278_v45 = vld [vmem:[%s2273_s6] sm:$0xff] }
  0xeb   : > { %1208 = vmatprep.subr.mxu0 %v692_v19  ;;  %v1377_v14 = vsub.s32 3, %v2268_v42  ;;  %v1381_v19 = vsub.s32 4, %v2268_v42 }
  0xec   : > { %1209 = vmatpush1.msra.mxu0 %v691_v23  ;;  %v1366_v47 = vrot.slane %v2278_v45, %v1365_v43  ;;  %v1370_v48 = vrot.slane %v2278_v45, %v1369_v44 }
  0xed   : > { %v763_v18 = vpop.permute.xlu1 %762  ;;  %v598_v20 = vpop.permute.xlu0 %597 }
  0xee   : > { %v775_v55 = vsel %vm764_vm0, %v761_v24, %v763_v18  ;;  %v611_v57 = vsel %vm601_vm1, %v596_v6, %v598_v20 }
  0xef   : > { %1210 = vmatprep.subr.mxu0 %v611_v57  ;;  %1678 = vmatpush3.msra.mxu1 %v775_v55 }
  0xf0   : > { %1211 = vmatpush1.msra.mxu0 %v610_v0  ;;  %1679 = vmatprep.subr.mxu1 %v1792_v15 }
  0xf1   : > { %v517_v1 = vpop.permute.xlu1 %516  ;;  %v515_v58 = vpop.permute.xlu0 %514 }
  0xf2   : > { %v528_v10 = vsel %vm394_vm2, %v513_v50, %v515_v58  ;;  %v529_v4 = vsel %vm394_vm2, %v515_v58, %v517_v1  ;;  %v1373_v50 = vsub.s32 2, %v2268_v42 }
  0xf3   : > { %1212 = vmatprep.subr.mxu0 %v529_v4 }
  0xf4   : > { %1213 = vmatpush1.msra.mxu0 %v528_v10 }
  0xf5   : > { %v600_v59 = vpop.permute.xlu1 %599  ;;  %v682_v2 = vpop.permute.xlu0 %681  ;;  %1214 = vmatprep.subr.mxu0 %v459_v52 }
  0xf6   : > { %v693_v60 = vsel %vm601_vm1, %v680_v16, %v682_v2  ;;  %1215 = vmatpush1.msra.mxu0 %v458_v7  ;;  %v612_v61 = vsel %vm601_vm1, %v598_v20, %v600_v59  ;;  %v1378_v16 = vrot.slane %v2278_v45, %v1377_v14  ;;  %v1382_v7 = vrot.slane %v2278_v45, %v1381_v19  ;;  %v1360_v14 = vld [vmem:[%s2273_s6 + $0x8] sm:$0x7] }
  0xf7   : > { %1680 = vmatpush3.msra.mxu1 %v693_v60  ;;  %1216 = vmatprep.subr.mxu0 %v2073_v34  ;;  %v1385_v59 = vsub.s32 5, %v2268_v42 }
  0xf8   : > { %1681 = vmatprep.subr.mxu1 %v1792_v15  ;;  %1217 = vmatpush1.msra.mxu0 %v2031_v27 }
  0xf9   : > { %v389_v63 = vpop.permute.xlu1 %388  ;;  %v519_v62 = vpop.permute.xlu0 %518  ;;  %1682 = vmatpush3.msra.mxu1 %v612_v61 }
  0xfa   : > { %v530_v32 = vsel %vm394_vm2, %v517_v1, %v519_v62  ;;  %1683 = vmatprep.subr.mxu1 %v1792_v15  ;;  %v403_v27 = vsel %vm394_vm2, %v2191_v13, %v389_v63  ;;  %v1374_v13 = vrot.slane %v2278_v45, %v1373_v50 }
  0xfb   : > { %1684 = vmatpush3.msra.mxu1 %v530_v32 }
  0xfc   : > { %1685 = vmatprep.subr.mxu1 %v1792_v15 }
  0xfd   : > { %v393_v36 = vpop.permute.xlu1 %392  ;;  %v391_v37 = vpop.permute.xlu0 %390  ;;  %1686 = vmatpush3.msra.mxu1 %v460_v35 }
  0xfe   : > { %1687 = vmatprep.subr.mxu1 %v1792_v15  ;;  %v404_v34 = vsel %vm394_vm2, %v389_v63, %v391_v37  ;;  %v405_v38 = vsel %vm394_vm2, %v391_v37, %v393_v36  ;;  %v1386_v36 = vrot.slane %v2278_v45, %v1385_v59  ;;  %v1389_v37 = vsub.s32 6, %v2268_v42 }
  0xff   : > { %1218 = vmatprep.subr.mxu0 %v404_v34  ;;  %1688 = vmatpush3.msra.mxu1 %v2070_v33 }
 0x100   : > { %1219 = vmatpush1.msra.mxu0 %v403_v27  ;;  %1689 = vmatprep.subr.mxu1 %v1792_v15 }
 0x101   : > { %1220 = vmatprep.subr.mxu0 %v2049_v29  ;;  %1690 = vmatpush3.msra.mxu1 %v405_v38 }
 0x102   : > { %1221 = vmatpush1.msra.mxu0 %v2017_v25  ;;  %1691 = vmatprep.subr.mxu1 %v1792_v15 }
 0x103   : > { %1222 = vmatprep.subr.mxu0 %v2042_v28  ;;  %1692 = vmatpush3.msra.mxu1 %v2059_v31 }
 0x104   : > { %1223 = vmatpush1.msra.mxu0 %v2000_v22  ;;  %1693 = vmatprep.subr.mxu1 %v1792_v15 }
 0x105   : > { %1663 = vmatmul.mubr.msk.f32.vlgmr.msra.gmra.mxu0 %vm904_vm3, %v2137_v56  ;;  %1694 = vmatpush3.msra.mxu1 %v2052_v30 }
 0x106   : > { %1696 = vmatmul.mubr.msk.f32.vlgmr.msra.gmra.mxu1 %vm904_vm3, %v2137_v56 }
 0x10a   : > { %v2255_v25 = vpop.permute.xlu0 %901 }
 0x17c   : > { %v974_v28 = vpop.f32.mrf.mxu0 }
 0x17d   : > { %v975_v22 = vadd.f32 %v974_v28, %v2255_v25 }
 0x17e   : > { %v976_v15 = vpop.f32.mrf.mxu0 }
 0x17f   : > { %v977_v29 = vadd.f32 %v976_v15, %v2255_v25  ;;  %v1455_v49 = vmul.f32 %v975_v22, %v975_v22  ;;  %v1418_v54 = vmul.f32 %v1366_v47, %v975_v22 }
 0x181   : > { %v1343_v30 = vcombine.low %v975_v22, %v977_v29  ;;  %v1045_v31 = vpop.f32.mrf.mxu1  ;;  %v1456_v12 = vmul.f32 %v977_v29, %v977_v29  ;;  %v1419_v9 = vmul.f32 %v1370_v48, %v977_v29  ;;  %v1466_v5 = vmul.f32 %v1455_v49, %v1366_v47 }
 0x182   : > { %v1046_v56 = vadd.f32 %v1045_v31, %v2255_v25  ;;  %v1430_v23 = vsel %vm1429_vm5, %v1418_v54, 0.0  ;;  %v1393_v31 = vsub.s32 7, %v2268_v42 }
 0x183   : > { %1353 = vst [vmem:[%s2262_s29] sm:$0xff] %v1343_v30  ;;  %v1047_v33 = vpop.f32.mrf.mxu1  ;;  %v1467_v24 = vmul.f32 %v1456_v12, %v1370_v48  ;;  %v1431_v18 = vsel %vm1429_vm5, %v1419_v9, 0.0  ;;  %v1477_v57 = vsel %vm1429_vm5, %v1466_v5, 0.0  ;;  %v1390_v30 = vrot.slane %v2278_v45, %v1389_v37 }
 0x184   : > { %v1048_v39 = vadd.f32 %v1047_v33, %v2255_v25  ;;  %v1457_v17 = vmul.f32 %v1046_v56, %v1046_v56  ;;  %v1420_v20 = vmul.f32 %v1374_v13, %v1046_v56  ;;  %v1432_v10 = vadd.f32 %v1431_v18, %v1430_v23 }
 0x185   : > { %v1478_v0 = vsel %vm1429_vm5, %v1467_v24, 0.0  ;;  %v1394_v48 = vrot.slane %v2278_v45, %v1393_v31  ;;  %v1398_v5 = vrot.slane %v1360_v14, %v1365_v43  ;;  %v1406_v23 = vrot.slane %v1360_v14, %v1373_v50 }
 0x186   : > { %v1344_v40 = vcombine.low %v1046_v56, %v1048_v39  ;;  %v1468_v1 = vmul.f32 %v1457_v17, %v1374_v13  ;;  %v1458_v58 = vmul.f32 %v1048_v39, %v1048_v39  ;;  %v1433_v4 = vsel %vm1429_vm5, %v1420_v20, 0.0 }
 0x187   : > { %v1421_v52 = vmul.f32 %v1378_v16, %v1048_v39  ;;  %v1479_v2 = vadd.f32 %v1478_v0, %v1477_v57  ;;  %v1434_v62 = vadd.f32 %v1433_v4, %v1432_v10 }
 0x188   : > { %1354 = vst [vmem:[%s2262_s29 + $0x8] sm:$0xff] %v1344_v40  ;;  %v1480_v60 = vsel %vm1429_vm5, %v1468_v1, 0.0  ;;  %v1469_v61 = vmul.f32 %v1458_v58, %v1378_v16  ;;  %v1402_v16 = vrot.slane %v1360_v14, %v1369_v44 }
 0x189   : > { %v1435_v32 = vsel %vm1429_vm5, %v1421_v52, 0.0  ;;  %v1481_v34 = vadd.f32 %v1480_v60, %v1479_v2 }
 0x18a   : > { %v1482_v27 = vsel %vm1429_vm5, %v1469_v61, 0.0  ;;  %v1436_v22 = vadd.f32 %v1435_v32, %v1434_v62 }
 0x18b   : > { %v1483_v33 = vadd.f32 %v1482_v27, %v1481_v34 }
 0x1a5   : > { %v1116_v46 = vpop.f32.mrf.mxu0 }
 0x1a6   : > { %v1117_v21 = vadd.f32 %v1116_v46, %v2255_v25 }
 0x1a7   : > { %v1118_v8 = vpop.f32.mrf.mxu0 }
 0x1a8   : > { %v1119_v51 = vadd.f32 %v1118_v8, %v2255_v25  ;;  %v1459_v63 = vmul.f32 %v1117_v21, %v1117_v21  ;;  %v1422_v35 = vmul.f32 %v1382_v7, %v1117_v21 }
 0x1a9   : > { %v1187_v53 = vpop.f32.mrf.mxu1 }
 0x1aa   : > { %v1345_v3 = vcombine.low %v1117_v21, %v1119_v51  ;;  %v1188_v11 = vadd.f32 %v1187_v53, %v2255_v25  ;;  %v1470_v38 = vmul.f32 %v1459_v63, %v1382_v7  ;;  %v1460_v28 = vmul.f32 %v1119_v51, %v1119_v51 }
 0x1ab   : > { %v1189_v26 = vpop.f32.mrf.mxu1  ;;  %v1437_v15 = vsel %vm1429_vm5, %v1422_v35, 0.0  ;;  %v1423_v29 = vmul.f32 %v1386_v36, %v1119_v51 }
 0x1ac   : > { %1355 = vst [vmem:[%s2262_s29 + $0x10] sm:$0xff] %v1345_v3  ;;  %v1190_v6 = vadd.f32 %v1189_v26, %v2255_v25  ;;  %v1484_v56 = vsel %vm1429_vm5, %v1470_v38, 0.0  ;;  %v1471_v39 = vmul.f32 %v1460_v28, %v1386_v36  ;;  %v1461_v40 = vmul.f32 %v1188_v11, %v1188_v11 }
 0x1ad   : > { %v1438_v41 = vadd.f32 %v1437_v15, %v1436_v22  ;;  %v1439_v46 = vsel %vm1429_vm5, %v1423_v29, 0.0  ;;  %v1424_v47 = vmul.f32 %v1390_v30, %v1188_v11  ;;  %v1485_v49 = vadd.f32 %v1484_v56, %v1483_v33 }
 0x1ae   : > { %v1346_v55 = vcombine.low %v1188_v11, %v1190_v6  ;;  %v1486_v8 = vsel %vm1429_vm5, %v1471_v39, 0.0  ;;  %v1472_v12 = vmul.f32 %v1461_v40, %v1390_v30  ;;  %v1462_v21 = vmul.f32 %v1190_v6, %v1190_v6 }
 0x1af   : > { %v1440_v51 = vadd.f32 %v1439_v46, %v1438_v41  ;;  %v1441_v53 = vsel %vm1429_vm5, %v1424_v47, 0.0  ;;  %v1425_v54 = vmul.f32 %v1394_v48, %v1190_v6  ;;  %v1487_v9 = vadd.f32 %v1486_v8, %v1485_v49 }
 0x1b0   : > { %1356 = vst [vmem:[%s2262_s29 + $0x18] sm:$0xff] %v1346_v55  ;;  %v1488_v13 = vsel %vm1429_vm5, %v1472_v12, 0.0  ;;  %v1473_v3 = vmul.f32 %v1462_v21, %v1394_v48 }
 0x1b1   : > { %v1442_v26 = vadd.f32 %v1441_v53, %v1440_v51  ;;  %v1443_v24 = vsel %vm1429_vm5, %v1425_v54, 0.0  ;;  %v1489_v18 = vadd.f32 %v1488_v13, %v1487_v9 }
 0x1b2   : > { %v1490_v0 = vsel %vm1429_vm5, %v1473_v3, 0.0 }
 0x1b3   : > { %v1444_v58 = vadd.f32 %v1443_v24, %v1442_v26  ;;  %v1491_v59 = vadd.f32 %v1490_v0, %v1489_v18 }
 0x1c5   : > { %v1258_v45 = vpop.f32.mrf.mxu0 }
 0x1c6   : > { %v1259_v17 = vadd.f32 %v1258_v45, %v2255_v25  ;;  %v1329_v11 = vpop.f32.mrf.mxu1 }
 0x1c7   : > { %v1330_v6 = vadd.f32 %v1329_v11, %v2255_v25  ;;  %v1260_v19 = vpop.f32.mrf.mxu0 }
 0x1c8   : > { %v1426_v20 = vmul.f32 %v1398_v5, %v1259_v17  ;;  %v1463_v43 = vmul.f32 %v1259_v17, %v1259_v17  ;;  %v1261_v55 = vadd.f32 %v1260_v19, %v2255_v25  ;;  %v1697_v57 = vpop.f32.mrf.mxu1 }
 0x1c9   : > { %1358 = vst [vmem:[%s2262_s29 + $0x28] sm:$0xf] %v1330_v6  ;;  %v1465_v1 = vmul.f32 %v1330_v6, %v1330_v6  ;;  %v1428_v7 = vmul.f32 %v1406_v23, %v1330_v6 }
 0x1ca   : > { %v1474_v10 = vmul.f32 %v1463_v43, %v1398_v5  ;;  %v1347_v44 = vcombine.low %v1259_v17, %v1261_v55  ;;  %v1427_v4 = vmul.f32 %v1402_v16, %v1261_v55  ;;  %v1464_v52 = vmul.f32 %v1261_v55, %v1261_v55 }
 0x1cb   : > { %v1445_v42 = vsel %vm1429_vm5, %v1426_v20, 0.0  ;;  %v1476_v50 = vmul.f32 %v1465_v1, %v1406_v23  ;;  %v1449_v35 = vsel %vm1429_vm5, %v1428_v7, 0.0 }
 0x1cc   : > { %1357 = vst [vmem:[%s2262_s29 + $0x20] sm:$0xff] %v1347_v44  ;;  %v1446_v2 = vadd.f32 %v1445_v42, %v1444_v58  ;;  %v1447_v25 = vsel %vm1429_vm5, %v1427_v4, 0.0  ;;  %v1475_v60 = vmul.f32 %v1464_v52, %v1402_v16  ;;  %v1492_v61 = vsel %vm1429_vm5, %v1474_v10, 0.0 }
 0x1cd   : > { %v1493_v63 = vadd.f32 %v1492_v61, %v1491_v59  ;;  %v1496_v34 = vsel %vm1429_vm5, %v1476_v50, 0.0 }
 0x1ce   : > { %v1448_v62 = vadd.f32 %v1447_v25, %v1446_v2  ;;  %v1494_v32 = vsel %vm1429_vm5, %v1475_v60, 0.0 }
 0x1cf   : > { %v1495_v36 = vadd.f32 %v1494_v32, %v1493_v63 }
 0x1d0   : > { %v1450_v37 = vadd.f32 %v1449_v35, %v1448_v62 }
 0x1d1   : > { %v1497_v27 = vadd.f32 %v1496_v34, %v1495_v36 }
 0x1d2   : > { %1451 = vadd.xlane.f32.xlu1 %v1450_v37 }
 0x1d3   : > { %1498 = vadd.xlane.f32.xlu0 %v1497_v27 }
 0x25b   : > { %v1452_v38 = vpop.xlane.xlu1 %1451 }
 0x25c   : > { %1454 = vst.msk [vmem:[%s301_s12] sm:$0xf] %vm1453_vm6, %v1452_v38  ;;  %v1499_v28 = vpop.xlane.xlu0 %1498 }
 0x25d   : > { %1501 = vst.msk [vmem:[%s301_s12] sm:$0xf] %vm1500_vm7, %v1499_v28 }
 0x25e PF: > { %s16_s22 = sadd.s32 1, %s1787_s22   ;;  %s2366_s18 = smov %s1779_s20 }
 0x25f   : > { %p13_p8 = scmp.ge.s32.totalorder %s16_s22, 8   ;;  %s2367_s19 = smov %s1783_s21 }
 0x260   : > { %s2368_s20 = smov %s2371_s23  ;;  %s2369_s21 = smov %s2375_s24 }
 0x261   :  { %15 = sbr.rel (!%p13_p8) target bundleno = 3 (0x3), region = 81 }

// kernel: variational_encoder_forward.8
= control target key start
LH: loop header
LB: loop body
LE: loop exit
PB: predicated region body
PF: predicated region fallthrough
CT: control target
= control target key end

     0   :  { %s453_s12 = smov 0   ;;  %s455_s13 = smov 0   ;;  %s508_s0 = inlined_call_operand.vmem [shape: f32[2,8,1152], index: 0, kind: input, shape index: {}]   ;;  %s509_s1 = inlined_call_operand.vmem [shape: f32[1,8,1], index: 1, kind: input, shape index: {}]   ;;  %s510_s2 = inlined_call_operand.vmem [shape: f32[1,8,1], index: 2, kind: input, shape index: {}]   ;;  %s511_s3 = inlined_call_operand.vmem [shape: f32[2,8,1152], index: 3, kind: output, shape index: {}]  }
   0x1   :  { %s457_s14 = smov 0  }
   0x2 LB: > { %s25_s15 = sadd.s32 1, %s426_s13  ;;  %p376_p0 = scmp.ge.s32.totalorder %s430_s14, 1  ;;  %s430_s14 = sphi %s457_s14, %s13_s14   ;;  %s426_s13 = sphi %s455_s13, %s513_s13   ;;  %s422_s12 = sphi %s453_s12, %s512_s12  }
   0x3   : > { %p27_p1 = scmp.ge.s32.totalorder %s25_s15, 2  ;;  %p158_p2 = scmp.lt.s32.totalorder %s430_s14, 3 }
   0x5   : > { %s515_s15 = smov (%p27_p1, %s25_s15), 0  ;;  %p159_p3 = pnand %p376_p0, %p158_p2 }
   0x6   : > { %p191_p4 = scmp.lt.s32.totalorder (!%p159_p3), %s422_s12, 1 }
   0x7   : > { %162 = sbr.rel (%p159_p3) target bundleno = 155 (0x9b), region = 32 }
   0xc   : > { %v219_v0 = vld [vmem:[%s509_s1] sm:$0xff]  ;;  %v432_v1 = vmov 0   ;;  %s517_s12 = smov (!%p191_p4, %s422_s12), 1 }
   0xd   : > { %407 = vset.pattern.permute.xlu0 %v432_v1  ;;  %v234_v2 = vld [vmem:[%s510_s2] sm:$0xff]  ;;  %s381_s20 = smul.u32 72, %s517_s12 }
   0xe   : > { %222 = vperm.xlu0 %407, %v219_v0  }
   0xf   : > { %s198_s23 = scalar_lea.vmem %s508_s0, %s381_s20  ;;  %s208_s26 = scalar_lea.vmem %s511_s3, %s381_s20 }
  0x10   : > { %v210_v3 = vld [vmem:[%s198_s23] sm:$0xff]  ;;  %v211_v4 = vld [vmem:[%s198_s23 + $0x8] sm:$0xff]  ;;  %v212_v5 = vld [vmem:[%s198_s23 + $0x10] sm:$0xff] }
  0x11   : > { %v213_v7 = vld [vmem:[%s198_s23 + $0x18] sm:$0xff]  ;;  %v214_v8 = vld [vmem:[%s198_s23 + $0x20] sm:$0xff]  ;;  %v215_v9 = vld [vmem:[%s198_s23 + $0x28] sm:$0xff] }
  0x12   : > { %237 = vperm.xlu0 %407, %v234_v2   ;;  %v216_v10 = vld [vmem:[%s198_s23 + $0x30] sm:$0xff]  ;;  %v217_v11 = vld [vmem:[%s198_s23 + $0x38] sm:$0xff]  ;;  %v218_v12 = vld [vmem:[%s198_s23 + $0x40] sm:$0xff] }
  0x89   : > { %v223_v6 = vpop.permute.xlu0 %222 }
  0x8a   : > { %v225_v13 = vmul.f32 %v223_v6, %v210_v3  ;;  %v226_v14 = vmul.f32 %v223_v6, %v211_v4  ;;  %v227_v15 = vmul.f32 %v223_v6, %v212_v5  ;;  %v228_v16 = vmul.f32 %v223_v6, %v213_v7 }
  0x8b   : > { %v229_v17 = vmul.f32 %v223_v6, %v214_v8  ;;  %v230_v19 = vmul.f32 %v223_v6, %v215_v9  ;;  %v231_v20 = vmul.f32 %v223_v6, %v216_v10  ;;  %v232_v21 = vmul.f32 %v223_v6, %v217_v11 }
  0x8c   : > { %v233_v22 = vmul.f32 %v223_v6, %v218_v12 }
  0x8d   : > { %v238_v18 = vpop.permute.xlu0 %237 }
  0x8e   : > { %v240_v23 = vadd.f32 %v238_v18, %v225_v13  ;;  %v241_v24 = vadd.f32 %v238_v18, %v226_v14  ;;  %v242_v25 = vadd.f32 %v238_v18, %v227_v15  ;;  %v243_v26 = vadd.f32 %v238_v18, %v228_v16 }
  0x8f   : > { %v244_v27 = vadd.f32 %v238_v18, %v229_v17  ;;  %v245_v28 = vadd.f32 %v238_v18, %v230_v19  ;;  %v246_v29 = vadd.f32 %v238_v18, %v231_v20  ;;  %v247_v30 = vadd.f32 %v238_v18, %v232_v21 }
  0x90   : > { %v248_v31 = vadd.f32 %v238_v18, %v233_v22  ;;  %vm249_vm0 = vcmp.gt.f32.partialorder %v240_v23, 0.0  ;;  %vm250_vm1 = vcmp.gt.f32.partialorder %v241_v24, 0.0  ;;  %vm251_vm2 = vcmp.gt.f32.partialorder %v242_v25, 0.0 }
  0x91   : > { %vm252_vm3 = vcmp.gt.f32.partialorder %v243_v26, 0.0  ;;  %vm253_vm4 = vcmp.gt.f32.partialorder %v244_v27, 0.0  ;;  %vm254_vm5 = vcmp.gt.f32.partialorder %v245_v28, 0.0  ;;  %vm255_vm6 = vcmp.gt.f32.partialorder %v246_v29, 0.0 }
  0x92   : > { %vm256_vm7 = vcmp.gt.f32.partialorder %v247_v30, 0.0  ;;  %vm257_vm8 = vcmp.gt.f32.partialorder %v248_v31, 0.0  ;;  %v258_v32 = vmul.f32 0.01, %v240_v23  ;;  %v259_v33 = vmul.f32 0.01, %v241_v24 }
  0x93   : > { %v260_v34 = vmul.f32 0.01, %v242_v25  ;;  %v261_v35 = vmul.f32 0.01, %v243_v26  ;;  %v262_v36 = vmul.f32 0.01, %v244_v27 }
  0x94   : > { %v263_v37 = vmul.f32 0.01, %v245_v28  ;;  %v264_v38 = vmul.f32 0.01, %v246_v29  ;;  %v265_v39 = vmul.f32 0.01, %v247_v30  ;;  %v267_v40 = vsel %vm249_vm0, %v240_v23, %v258_v32 }
  0x95   : > { %v266_v41 = vmul.f32 0.01, %v248_v31  ;;  %v268_v42 = vsel %vm250_vm1, %v241_v24, %v259_v33  ;;  %v269_v43 = vsel %vm251_vm2, %v242_v25, %v260_v34  ;;  %v270_v44 = vsel %vm252_vm3, %v243_v26, %v261_v35  ;;  %276 = vst [vmem:[%s208_s26] sm:$0xff] %v267_v40 }
  0x96   : > { %v271_v45 = vsel %vm253_vm4, %v244_v27, %v262_v36  ;;  %v272_v46 = vsel %vm254_vm5, %v245_v28, %v263_v37  ;;  %v273_v47 = vsel %vm255_vm6, %v246_v29, %v264_v38  ;;  %v274_v48 = vsel %vm256_vm7, %v247_v30, %v265_v39  ;;  %277 = vst [vmem:[%s208_s26 + $0x8] sm:$0xff] %v268_v42 }
  0x97   : > { %278 = vst [vmem:[%s208_s26 + $0x10] sm:$0xff] %v269_v43  ;;  %279 = vst [vmem:[%s208_s26 + $0x18] sm:$0xff] %v270_v44  ;;  %v275_v49 = vsel %vm257_vm8, %v248_v31, %v266_v41 }
  0x98   : > { %280 = vst [vmem:[%s208_s26 + $0x20] sm:$0xff] %v271_v45  ;;  %281 = vst [vmem:[%s208_s26 + $0x28] sm:$0xff] %v272_v46 }
  0x99   : > { %282 = vst [vmem:[%s208_s26 + $0x30] sm:$0xff] %v273_v47  ;;  %283 = vst [vmem:[%s208_s26 + $0x38] sm:$0xff] %v274_v48 }
  0x9a   : > { %284 = vst [vmem:[%s208_s26 + $0x40] sm:$0xff] %v275_v49 }
  0x9b PF: > { %s13_s14 = sadd.s32 1, %s430_s14   ;;  %s512_s12 = smov %s426_s13 }
  0x9c   : > { %p10_p5 = scmp.ge.s32.totalorder %s13_s14, 4   ;;  %s513_s13 = smov %s515_s15 }
  0x9e   :  { %12 = sbr.rel (!%p10_p5) target bundleno = 2 (0x2), region = 62 }

// kernel: variational_encoder_forward.7
= control target key start
LH: loop header
LB: loop body
LE: loop exit
PB: predicated region body
PF: predicated region fallthrough
CT: control target
= control target key end

     0   :  { %s1549_s18 = smov 0   ;;  %s1551_s19 = smov 0   ;;  %s1928_s0 = inlined_call_operand.vmem [shape: f32[2,1,32,1280], index: 0, kind: input, shape index: {}]   ;;  %s1929_s1 = inlined_call_operand.vmem [shape: f32[8,72], index: 1, kind: input, shape index: {}]   ;;  %s1930_s2 = inlined_call_operand.vmem [shape: f32[1,8,1], index: 2, kind: input, shape index: {}]   ;;  %s1931_s3 = inlined_call_operand.vmem [shape: f32[1,1152], index: 3, kind: input, shape index: {}]   ;;  %s1932_s4 = inlined_call_operand.vmem [shape: f32[2,8,1152], index: 4, kind: output, shape index: {0}]   ;;  %s1933_s5 = inlined_call_operand.vmem [shape: f32[2,1,8,2], index: 5, kind: output, shape index: {1}]  }
   0x1   :  { %s1553_s20 = smov 0  }
   0x2 LB: > { %s28_s21 = sadd.s32 1, %s1507_s19  ;;  %p1413_p0 = scmp.ge.s32.totalorder %s1511_s20, 1  ;;  %s1511_s20 = sphi %s1553_s20, %s16_s20   ;;  %s1507_s19 = sphi %s1551_s19, %s1935_s19   ;;  %s1503_s18 = sphi %s1549_s18, %s1934_s18  }
   0x3   : > { %p30_p1 = scmp.ge.s32.totalorder %s28_s21, 2  ;;  %p222_p2 = scmp.lt.s32.totalorder %s1511_s20, 3 }
   0x5   : > { %s1937_s21 = smov (%p30_p1, %s28_s21), 0  ;;  %p223_p3 = pnand %p1413_p0, %p222_p2 }
   0x6   : > { %p269_p4 = scmp.lt.s32.totalorder (!%p223_p3), %s1503_s18, 1  ;;  %s1513_s26 = smov (!%p223_p3), 94  }
   0x7   : > { %226 = sbr.rel (%p223_p3) target bundleno = 579 (0x243), region = 36  ;;  %s1514_s27 = smov (!%p223_p3), 95  }
   0x8   : > { %s1515_s28 = smov (!%p223_p3), 127  }
   0xc   : > { %s1939_s18 = smov (!%p269_p4, %s1503_s18), 1  ;;  %v1516_v12 = vmov 0.0   ;;  %v1517_v31 = vmov 0   ;;  %v792_v32 = vld [vmem:[%s1930_s2] sm:$0xff]  ;;  %vm682_vm0 = vcmask 769024   ;;  %vm547_vm1 = vcmask 777216  }
   0xd   : > { %s1456_s22 = smul.u32 320, %s1939_s18  ;;  %866 = vmatprep.mubr.f32.mxu0 %v1516_v12  ;;  %937 = vmatprep.mubr.f32.mxu1 %v1516_v12  ;;  %vm376_vm2 = vcmask 1039360   ;;  %v1781_v63 = vld [vmem:[%s1929_s1] sm:$0xff]  ;;  %vm798_vm3 = vcmask 588800   ;;  %vm1518_vm4 = vmmov 0   ;;  %s1416_s16 = sshll.u32 %s1939_s18, 3 }
   0xe   : > { %1488 = vset.pattern.permute.xlu0 %v1517_v31  ;;  %s1457_s8 = smul.u32 72, %s1939_s18  ;;  %s299_s23 = scalar_lea.vmem %s1933_s5, %s1416_s16  ;;  %vm1233_vm5 = vcmask 7168   ;;  %vm1263_vm6 = vcmask 15368  }
   0xf   : > { %s1573_s25 = scalar_lea.vmem %s1928_s0, %s1456_s22 }
  0x10   : > { %v1576_v0 = vld [vmem:[%s1573_s25 + $0x8] sm:$0xff]  ;;  %v1579_v1 = vld [vmem:[%s1573_s25] sm:$0xff]  ;;  %v1586_v2 = vld [vmem:[%s1573_s25 + $0x10] sm:$0xff]  ;;  %s1889_s11 = scalar_lea.vmem %s1932_s4, %s1457_s8 }
  0x11   : > { %664 = vrot.lane.b32.xlu0 %v1576_v0, %s1513_s26  ;;  %662 = vrot.lane.b32.xlu1 %v1579_v1, %s1513_s26  ;;  %v1589_v3 = vld [vmem:[%s1573_s25 + $0x58] sm:$0xff]  ;;  %v1596_v4 = vld [vmem:[%s1573_s25 + $0x60] sm:$0xff] }
  0x12   : > { %v1599_v5 = vld [vmem:[%s1573_s25 + $0x50] sm:$0xff]  ;;  %v1610_v6 = vld [vmem:[%s1573_s25 + $0xa8] sm:$0xff]  ;;  %v1620_v8 = vld [vmem:[%s1573_s25 + $0xa0] sm:$0xff] }
  0x13   : > { %v1617_v7 = vld [vmem:[%s1573_s25 + $0xb0] sm:$0xff]  ;;  %v1631_v9 = vld [vmem:[%s1573_s25 + $0x18] sm:$0xff]  ;;  %v1638_v10 = vld [vmem:[%s1573_s25 + $0x68] sm:$0xff] }
  0x14   : > { %v1641_v11 = vld [vmem:[%s1573_s25 + $0x20] sm:$0xff]  ;;  %v1650_v13 = vld [vmem:[%s1573_s25 + $0x70] sm:$0xff]  ;;  %v1657_v14 = vld [vmem:[%s1573_s25 + $0x28] sm:$0xff] }
  0x15   : > { %666 = vrot.lane.b32.xlu0 %v1586_v2, %s1513_s26  ;;  %597 = vrot.lane.b32.xlu1 %v1589_v3, %s1514_s27  ;;  %v1664_v15 = vld [vmem:[%s1573_s25 + $0xb8] sm:$0xff]  ;;  %v1667_v16 = vld [vmem:[%s1573_s25 + $0x30] sm:$0xff] }
  0x16   : > { %v1674_v17 = vld [vmem:[%s1573_s25 + $0x78] sm:$0xff]  ;;  %v1677_v18 = vld [vmem:[%s1573_s25 + $0xc0] sm:$0xff]  ;;  %v1691_v20 = vld [vmem:[%s1573_s25 + $0xc8] sm:$0xff] }
  0x17   : > { %v1684_v19 = vld [vmem:[%s1573_s25 + $0x80] sm:$0xff]  ;;  %v1698_v21 = vld [vmem:[%s1573_s25 + $0xd0] sm:$0xff]  ;;  %v1709_v22 = vld [vmem:[%s1573_s25 + $0x38] sm:$0xff] }
  0x18   : > { %v1716_v23 = vld [vmem:[%s1573_s25 + $0x88] sm:$0xff]  ;;  %v1719_v24 = vld [vmem:[%s1573_s25 + $0x40] sm:$0xff]  ;;  %v1726_v25 = vld [vmem:[%s1573_s25 + $0x90] sm:$0xff] }
  0x19   : > { %599 = vrot.lane.b32.xlu0 %v1596_v4, %s1514_s27  ;;  %595 = vrot.lane.b32.xlu1 %v1599_v5, %s1514_s27  ;;  %v651_v26 = vld [vmem:[%s1573_s25 + $0x48] sm:$0xff]  ;;  %v1737_v27 = vld [vmem:[%s1573_s25 + $0xe0] sm:$0xff] }
  0x1a   : > { %v1740_v28 = vld [vmem:[%s1573_s25 + $0xd8] sm:$0xff]  ;;  %v449_v30 = vld [vmem:[%s1573_s25 + $0xe8] sm:$0xff]  ;;  %v422_v54 = vld [vmem:[%s1573_s25 + $0xf0] sm:$0xff] }
  0x1b   : > { %v584_v29 = vld [vmem:[%s1573_s25 + $0x98] sm:$0xff] }
  0x1c   : > { %v423_v53 = vld [vmem:[%s1573_s25 + $0xf8] sm:$0xff] }
  0x1d   : > { %531 = vrot.lane.b32.xlu1 %v1586_v2, %s1514_s27  ;;  %529 = vrot.lane.b32.xlu0 %v1576_v0, %s1514_s27 }
  0x21   : > { %527 = vrot.lane.b32.xlu0 %v1579_v1, %s1514_s27  ;;  %462 = vrot.lane.b32.xlu1 %v1610_v6, %s1515_s28 }
  0x25   : > { %464 = vrot.lane.b32.xlu0 %v1617_v7, %s1515_s28  ;;  %460 = vrot.lane.b32.xlu1 %v1620_v8, %s1515_s28 }
  0x29   : > { %360 = vrot.lane.b32.xlu1 %v1586_v2, %s1515_s28  ;;  %358 = vrot.lane.b32.xlu0 %v1576_v0, %s1515_s28 }
  0x2d   : > { %668 = vrot.lane.b32.xlu1 %v1631_v9, %s1513_s26  ;;  %356 = vrot.lane.b32.xlu0 %v1579_v1, %s1515_s28 }
  0x31   : > { %601 = vrot.lane.b32.xlu1 %v1638_v10, %s1514_s27  ;;  %670 = vrot.lane.b32.xlu0 %v1641_v11, %s1513_s26 }
  0x35   : > { %533 = vrot.lane.b32.xlu1 %v1631_v9, %s1514_s27  ;;  %603 = vrot.lane.b32.xlu0 %v1650_v13, %s1514_s27 }
  0x39   : > { %672 = vrot.lane.b32.xlu1 %v1657_v14, %s1513_s26  ;;  %535 = vrot.lane.b32.xlu0 %v1641_v11, %s1514_s27 }
  0x3d   : > { %466 = vrot.lane.b32.xlu1 %v1664_v15, %s1515_s28  ;;  %674 = vrot.lane.b32.xlu0 %v1667_v16, %s1513_s26 }
  0x41   : > { %605 = vrot.lane.b32.xlu1 %v1674_v17, %s1514_s27  ;;  %468 = vrot.lane.b32.xlu0 %v1677_v18, %s1515_s28 }
  0x45   : > { %537 = vrot.lane.b32.xlu1 %v1657_v14, %s1514_s27  ;;  %607 = vrot.lane.b32.xlu0 %v1684_v19, %s1514_s27 }
  0x49   : > { %470 = vrot.lane.b32.xlu1 %v1691_v20, %s1515_s28  ;;  %539 = vrot.lane.b32.xlu0 %v1667_v16, %s1514_s27 }
  0x4d   : > { %362 = vrot.lane.b32.xlu1 %v1631_v9, %s1515_s28  ;;  %472 = vrot.lane.b32.xlu0 %v1698_v21, %s1515_s28 }
  0x51   : > { %366 = vrot.lane.b32.xlu1 %v1657_v14, %s1515_s28  ;;  %364 = vrot.lane.b32.xlu0 %v1641_v11, %s1515_s28 }
  0x55   : > { %676 = vrot.lane.b32.xlu1 %v1709_v22, %s1513_s26  ;;  %368 = vrot.lane.b32.xlu0 %v1667_v16, %s1515_s28 }
  0x59   : > { %609 = vrot.lane.b32.xlu1 %v1716_v23, %s1514_s27  ;;  %678 = vrot.lane.b32.xlu0 %v1719_v24, %s1513_s26 }
  0x5d   : > { %541 = vrot.lane.b32.xlu1 %v1709_v22, %s1514_s27  ;;  %611 = vrot.lane.b32.xlu0 %v1726_v25, %s1514_s27 }
  0x61   : > { %680 = vrot.lane.b32.xlu1 %v651_v26, %s1513_s26  ;;  %543 = vrot.lane.b32.xlu0 %v1719_v24, %s1514_s27 }
  0x65   : > { %476 = vrot.lane.b32.xlu1 %v1737_v27, %s1515_s28  ;;  %474 = vrot.lane.b32.xlu0 %v1740_v28, %s1515_s28 }
  0x69   : > { %545 = vrot.lane.b32.xlu1 %v651_v26, %s1514_s27  ;;  %613 = vrot.lane.b32.xlu0 %v584_v29, %s1514_s27 }
  0x6d   : > { %370 = vrot.lane.b32.xlu1 %v1709_v22, %s1515_s28  ;;  %478 = vrot.lane.b32.xlu0 %v449_v30, %s1515_s28 }
  0x71   : > { %374 = vrot.lane.b32.xlu1 %v651_v26, %s1515_s28  ;;  %372 = vrot.lane.b32.xlu0 %v1719_v24, %s1515_s28 }
  0x75   : > { %795 = vperm.xlu0 %1488, %v792_v32  }
  0x83   : > { %v665_v33 = vpop.permute.xlu0 %664  ;;  %v663_v34 = vpop.permute.xlu1 %662 }
  0x84   : > { %v683_v38 = vsel %vm682_vm0, %v663_v34, %v665_v33 }
  0x87   : > { %v667_v35 = vpop.permute.xlu0 %666  ;;  %v598_v36 = vpop.permute.xlu1 %597 }
  0x88   : > { %v684_v37 = vsel %vm682_vm0, %v665_v33, %v667_v35 }
  0x89   : > { %816 = vmatprep.subr.mxu0 %v684_v37 }
  0x8a   : > { %817 = vmatpush1.msra.mxu0 %v683_v38 }
  0x8b   : > { %v600_v39 = vpop.permute.xlu0 %599  ;;  %v596_v40 = vpop.permute.xlu1 %595 }
  0x8c   : > { %v616_v41 = vsel %vm547_vm1, %v598_v36, %v600_v39  ;;  %v615_v42 = vsel %vm547_vm1, %v596_v40, %v598_v36 }
  0x8d   : > { %818 = vmatprep.subr.mxu0 %v616_v41  ;;  %v424_v41 = vld [vmem:[%s1573_s25 + $0x100] sm:$0xff] }
  0x8e   : > { %819 = vmatpush1.msra.mxu0 %v615_v42 }
  0x8f   : > { %v532_v43 = vpop.permute.xlu1 %531  ;;  %v530_v44 = vpop.permute.xlu0 %529 }
  0x90   : > { %v549_v45 = vsel %vm547_vm1, %v530_v44, %v532_v43 }
  0x91   : > { %820 = vmatprep.subr.mxu0 %v549_v45 }
  0x93   : > { %v528_v46 = vpop.permute.xlu0 %527  ;;  %v463_v47 = vpop.permute.xlu1 %462 }
  0x94   : > { %v548_v48 = vsel %vm547_vm1, %v528_v46, %v530_v44 }
  0x95   : > { %821 = vmatpush1.msra.mxu0 %v548_v48 }
  0x97   : > { %v465_v49 = vpop.permute.xlu0 %464  ;;  %v461_v50 = vpop.permute.xlu1 %460 }
  0x98   : > { %v481_v51 = vsel %vm376_vm2, %v463_v47, %v465_v49  ;;  %v480_v52 = vsel %vm376_vm2, %v461_v50, %v463_v47 }
  0x99   : > { %822 = vmatprep.subr.mxu0 %v481_v51 }
  0x9a   : > { %823 = vmatpush1.msra.mxu0 %v480_v52 }
  0x9b   : > { %824 = vmatprep.subr.mxu0 %v423_v53  ;;  %v1769_v55 = vpop.permute.xlu1 %360  ;;  %v359_v56 = vpop.permute.xlu0 %358  ;;  %v427_v53 = vld [vmem:[%s1573_s25 + $0x118] sm:$0xff] }
  0x9c   : > { %825 = vmatpush1.msra.mxu0 %v422_v54  ;;  %v378_v57 = vsel %vm376_vm2, %v359_v56, %v1769_v55 }
  0x9d   : > { %826 = vmatprep.subr.mxu0 %v1610_v6 }
  0x9e   : > { %827 = vmatpush1.msra.mxu0 %v1620_v8 }
  0x9f   : > { %v669_v58 = vpop.permute.xlu1 %668  ;;  %828 = vmatprep.subr.mxu0 %v378_v57  ;;  %v357_v59 = vpop.permute.xlu0 %356 }
  0xa0   : > { %v377_v60 = vsel %vm376_vm2, %v357_v59, %v359_v56  ;;  %v685_v8 = vsel %vm682_vm0, %v667_v35, %v669_v58 }
  0xa1   : > { %829 = vmatpush1.msra.mxu0 %v377_v60 }
  0xa2   : > { %830 = vmatprep.subr.mxu0 %v1589_v3 }
  0xa3   : > { %v602_v61 = vpop.permute.xlu1 %601  ;;  %v671_v62 = vpop.permute.xlu0 %670  ;;  %831 = vmatpush1.msra.mxu0 %v1599_v5 }
  0xa4   : > { %v686_v6 = vsel %vm682_vm0, %v669_v58, %v671_v62  ;;  %832 = vmatprep.subr.mxu0 %v1576_v0  ;;  %v617_v29 = vsel %vm547_vm1, %v600_v39, %v602_v61  ;;  %v425_v39 = vld [vmem:[%s1573_s25 + $0x108] sm:$0xff] }
  0xa5   : > { %887 = vmatprep.subr.mxu1 %v686_v6  ;;  %833 = vmatpush1.msra.mxu0 %v1579_v1 }
  0xa6   : > { %888 = vmatpush1.msra.mxu1 %v685_v8  ;;  %1417 = vmatmul.mubr.msk.f32.vlgmr.msra.gmra.mxu0 %vm798_vm3, %v1781_v63 }
  0xa7   : > { %v534_v3 = vpop.permute.xlu1 %533  ;;  %v604_v5 = vpop.permute.xlu0 %603  ;;  %1008 = vmatprep.mubr.f32.mxu0 %v1516_v12 }
  0xa8   : > { %v618_v26 = vsel %vm547_vm1, %v602_v61, %v604_v5  ;;  %v550_v1 = vsel %vm547_vm1, %v532_v43, %v534_v3 }
  0xa9   : > { %889 = vmatprep.subr.mxu1 %v618_v26 }
  0xaa   : > { %890 = vmatpush1.msra.mxu1 %v617_v29 }
  0xab   : > { %v673_v0 = vpop.permute.xlu1 %672  ;;  %v536_v30 = vpop.permute.xlu0 %535 }
  0xac   : > { %v551_v31 = vsel %vm547_vm1, %v534_v3, %v536_v30  ;;  %v687_v35 = vsel %vm682_vm0, %v671_v62, %v673_v0 }
  0xad   : > { %891 = vmatprep.subr.mxu1 %v551_v31 }
  0xae   : > { %892 = vmatpush1.msra.mxu1 %v550_v1 }
  0xaf   : > { %v467_v32 = vpop.permute.xlu1 %466  ;;  %v1794_v33 = vpop.permute.xlu0 %674 }
  0xb0   : > { %v688_v34 = vsel %vm682_vm0, %v673_v0, %v1794_v33  ;;  %v482_v40 = vsel %vm376_vm2, %v465_v49, %v467_v32  ;;  %v429_v0 = vld [vmem:[%s1573_s25 + $0x128] sm:$0xff] }
  0xb1   : > { %958 = vmatprep.subr.mxu0 %v688_v34 }
  0xb2   : > { %959 = vmatpush1.msra.mxu0 %v687_v35 }
  0xb3   : > { %v606_v36 = vpop.permute.xlu1 %605  ;;  %v469_v37 = vpop.permute.xlu0 %468 }
  0xb4   : > { %v483_v38 = vsel %vm376_vm2, %v467_v32, %v469_v37  ;;  %v619_v45 = vsel %vm547_vm1, %v604_v5, %v606_v36 }
  0xb5   : > { %893 = vmatprep.subr.mxu1 %v483_v38 }
  0xb6   : > { %894 = vmatpush1.msra.mxu1 %v482_v40 }
  0xb7   : > { %v538_v42 = vpop.permute.xlu1 %537  ;;  %v1803_v43 = vpop.permute.xlu0 %607  ;;  %895 = vmatprep.subr.mxu1 %v425_v39 }
  0xb8   : > { %v620_v44 = vsel %vm547_vm1, %v606_v36, %v1803_v43  ;;  %896 = vmatpush1.msra.mxu1 %v424_v41  ;;  %v552_v49 = vsel %vm547_vm1, %v536_v30, %v538_v42  ;;  %v428_v30 = vld [vmem:[%s1573_s25 + $0x120] sm:$0xff] }
  0xb9   : > { %960 = vmatprep.subr.mxu0 %v620_v44  ;;  %897 = vmatprep.subr.mxu1 %v1664_v15  ;;  %v426_v15 = vld [vmem:[%s1573_s25 + $0x110] sm:$0xff] }
  0xba   : > { %961 = vmatpush1.msra.mxu0 %v619_v45  ;;  %898 = vmatpush1.msra.mxu1 %v1617_v7 }
  0xbb   : > { %v471_v46 = vpop.permute.xlu1 %470  ;;  %v540_v47 = vpop.permute.xlu0 %539 }
  0xbc   : > { %v553_v48 = vsel %vm547_vm1, %v538_v42, %v540_v47  ;;  %v484_v54 = vsel %vm376_vm2, %v469_v37, %v471_v46  ;;  %v430_v37 = vld [vmem:[%s1573_s25 + $0x130] sm:$0xff] }
  0xbd   : > { %962 = vmatprep.subr.mxu0 %v553_v48 }
  0xbe   : > { %963 = vmatpush1.msra.mxu0 %v552_v49  ;;  %v1165_v49 = vld [vmem:[%s1931_s3] sm:$0xff] }
  0xbf   : > { %v363_v50 = vpop.permute.xlu1 %362  ;;  %v473_v51 = vpop.permute.xlu0 %472 }
  0xc0   : > { %v485_v52 = vsel %vm376_vm2, %v471_v46, %v473_v51  ;;  %v379_v58 = vsel %vm376_vm2, %v1769_v55, %v363_v50 }
  0xc1   : > { %964 = vmatprep.subr.mxu0 %v485_v52 }
  0xc2   : > { %965 = vmatpush1.msra.mxu0 %v484_v54 }
  0xc3   : > { %v367_v56 = vpop.permute.xlu1 %366  ;;  %v365_v7 = vpop.permute.xlu0 %364  ;;  %966 = vmatprep.subr.mxu0 %v427_v53 }
  0xc4   : > { %v380_v57 = vsel %vm376_vm2, %v363_v50, %v365_v7  ;;  %967 = vmatpush1.msra.mxu0 %v426_v15  ;;  %v381_v62 = vsel %vm376_vm2, %v365_v7, %v367_v56 }
  0xc5   : > { %899 = vmatprep.subr.mxu1 %v380_v57  ;;  %968 = vmatprep.subr.mxu0 %v1691_v20 }
  0xc6   : > { %900 = vmatpush1.msra.mxu1 %v379_v58  ;;  %969 = vmatpush1.msra.mxu0 %v1677_v18 }
  0xc7   : > { %v677_v59 = vpop.permute.xlu1 %676  ;;  %v1821_v60 = vpop.permute.xlu0 %368  ;;  %901 = vmatprep.subr.mxu1 %v1638_v10 }
  0xc8   : > { %v382_v61 = vsel %vm376_vm2, %v367_v56, %v1821_v60  ;;  %902 = vmatpush1.msra.mxu1 %v1596_v4  ;;  %v689_v4 = vsel %vm682_vm0, %v1794_v33, %v677_v59 }
  0xc9   : > { %970 = vmatprep.subr.mxu0 %v382_v61  ;;  %903 = vmatprep.subr.mxu1 %v1631_v9 }
  0xca   : > { %971 = vmatpush1.msra.mxu0 %v381_v62  ;;  %904 = vmatpush1.msra.mxu1 %v1586_v2 }
  0xcb   : > { %v610_v20 = vpop.permute.xlu1 %609  ;;  %v679_v18 = vpop.permute.xlu0 %678  ;;  %1418 = vmatmul.mubr.msk.f32.vlgmr.msra.gmra.mxu1 %vm798_vm3, %v1781_v63  ;;  %972 = vmatprep.subr.mxu0 %v1674_v17 }
  0xcc   : > { %v690_v10 = vsel %vm682_vm0, %v677_v59, %v679_v18  ;;  %973 = vmatpush1.msra.mxu0 %v1650_v13  ;;  %1079 = vmatprep.mubr.f32.mxu1 %v1516_v12  ;;  %v621_v17 = vsel %vm547_vm1, %v1803_v43, %v610_v20 }
  0xcd   : > { %1029 = vmatprep.subr.mxu1 %v690_v10  ;;  %974 = vmatprep.subr.mxu0 %v1657_v14 }
  0xce   : > { %1030 = vmatpush1.msra.mxu1 %v689_v4  ;;  %975 = vmatpush1.msra.mxu0 %v1641_v11 }
  0xcf   : > { %v542_v2 = vpop.permute.xlu1 %541  ;;  %v612_v9 = vpop.permute.xlu0 %611  ;;  %1419 = vmatmul.mubr.msk.f32.vlgmr.msra.gmra.mxu0 %vm798_vm3, %v1781_v63  ;;  %1435 = vmatprep.subr.mxu0 %v1516_v12 }
  0xd0   : > { %v622_v13 = vsel %vm547_vm1, %v610_v20, %v612_v9  ;;  %1453 = vmatprep.mubr.msk.f32.mxu0 %vm1518_vm4, %v1516_v12  ;;  %v554_v8 = vsel %vm547_vm1, %v540_v47, %v542_v2 }
  0xd1   : > { %1031 = vmatprep.subr.mxu1 %v622_v13 }
  0xd2   : > { %1032 = vmatpush1.msra.mxu1 %v621_v17 }
  0xd3   : > { %v681_v11 = vpop.permute.xlu1 %680  ;;  %v544_v14 = vpop.permute.xlu0 %543 }
  0xd4   : > { %v691_v55 = vsel %vm682_vm0, %v679_v18, %v681_v11  ;;  %v555_v6 = vsel %vm547_vm1, %v542_v2, %v544_v14 }
  0xd5   : > { %1033 = vmatprep.subr.mxu1 %v555_v6  ;;  %1436 = vmatpush3.msra.mxu0 %v691_v55 }
  0xd6   : > { %1034 = vmatpush1.msra.mxu1 %v554_v8  ;;  %1437 = vmatprep.subr.mxu0 %v1516_v12 }
  0xd7   : > { %v477_v3 = vpop.permute.xlu1 %476  ;;  %v475_v5 = vpop.permute.xlu0 %474 }
  0xd8   : > { %v486_v26 = vsel %vm376_vm2, %v473_v51, %v475_v5  ;;  %v487_v29 = vsel %vm376_vm2, %v475_v5, %v477_v3 }
  0xd9   : > { %1035 = vmatprep.subr.mxu1 %v487_v29 }
  0xda   : > { %1036 = vmatpush1.msra.mxu1 %v486_v26 }
  0xdb   : > { %v546_v31 = vpop.permute.xlu1 %545  ;;  %v614_v1 = vpop.permute.xlu0 %613  ;;  %1037 = vmatprep.subr.mxu1 %v429_v0 }
  0xdc   : > { %v623_v32 = vsel %vm547_vm1, %v612_v9, %v614_v1  ;;  %1038 = vmatpush1.msra.mxu1 %v428_v30  ;;  %v556_v33 = vsel %vm547_vm1, %v544_v14, %v546_v31 }
  0xdd   : > { %1438 = vmatpush3.msra.mxu0 %v623_v32  ;;  %1039 = vmatprep.subr.mxu1 %v1740_v28 }
  0xde   : > { %1439 = vmatprep.subr.mxu0 %v1516_v12  ;;  %1040 = vmatpush1.msra.mxu1 %v1698_v21 }
  0xdf   : > { %v371_v34 = vpop.permute.xlu1 %370  ;;  %v479_v35 = vpop.permute.xlu0 %478  ;;  %1440 = vmatpush3.msra.mxu0 %v556_v33 }
  0xe0   : > { %v488_v36 = vsel %vm376_vm2, %v477_v3, %v479_v35  ;;  %1441 = vmatprep.subr.mxu0 %v1516_v12  ;;  %v383_v21 = vsel %vm376_vm2, %v1821_v60, %v371_v34 }
  0xe1   : > { %1442 = vmatpush3.msra.mxu0 %v488_v36 }
  0xe2   : > { %1443 = vmatprep.subr.mxu0 %v1516_v12 }
  0xe3   : > { %v375_v38 = vpop.permute.xlu1 %374  ;;  %v373_v39 = vpop.permute.xlu0 %372  ;;  %1444 = vmatpush3.msra.mxu0 %v430_v37 }
  0xe4   : > { %1445 = vmatprep.subr.mxu0 %v1516_v12  ;;  %v384_v28 = vsel %vm376_vm2, %v371_v34, %v373_v39  ;;  %v385_v40 = vsel %vm376_vm2, %v373_v39, %v375_v38 }
  0xe5   : > { %1041 = vmatprep.subr.mxu1 %v384_v28  ;;  %1446 = vmatpush3.msra.mxu0 %v1737_v27 }
  0xe6   : > { %1042 = vmatpush1.msra.mxu1 %v383_v21  ;;  %1447 = vmatprep.subr.mxu0 %v1516_v12 }
  0xe7   : > { %1043 = vmatprep.subr.mxu1 %v1716_v23  ;;  %1448 = vmatpush3.msra.mxu0 %v385_v40 }
  0xe8   : > { %1044 = vmatpush1.msra.mxu1 %v1684_v19  ;;  %1449 = vmatprep.subr.mxu0 %v1516_v12 }
  0xe9   : > { %1045 = vmatprep.subr.mxu1 %v1709_v22  ;;  %1450 = vmatpush3.msra.mxu0 %v1726_v25 }
  0xea   : > { %1046 = vmatpush1.msra.mxu1 %v1667_v16  ;;  %1451 = vmatprep.subr.mxu0 %v1516_v12 }
  0xeb   : > { %1420 = vmatmul.mubr.msk.f32.vlgmr.msra.gmra.mxu1 %vm798_vm3, %v1781_v63  ;;  %1452 = vmatpush3.msra.mxu0 %v1719_v24  ;;  %v1169_v24 = vlaneseq }
  0xec   : > { %1454 = vmatmul.mubr.msk.f32.vlgmr.msra.gmra.mxu0 %vm798_vm3, %v1781_v63 }
  0xed   : > { %v1170_v41 = vshrl.u32 %v1169_v24, 7 }
  0xef   : > { %v1171_v46 = vsub.s32 0, %v1170_v41  ;;  %v1175_v47 = vsub.s32 1, %v1170_v41  ;;  %v1179_v52 = vsub.s32 2, %v1170_v41  ;;  %v1183_v57 = vsub.s32 3, %v1170_v41 }
  0xf0   : > { %v1884_v19 = vpop.permute.xlu0 %795  ;;  %v1187_v18 = vsub.s32 4, %v1170_v41  ;;  %v1191_v11 = vsub.s32 5, %v1170_v41  ;;  %v1195_v26 = vsub.s32 6, %v1170_v41  ;;  %v1199_v31 = vsub.s32 7, %v1170_v41 }
  0xf1   : > { %v1172_v50 = vrot.slane %v1165_v49, %v1171_v46  ;;  %v1176_v51 = vrot.slane %v1165_v49, %v1175_v47  ;;  %v1180_v7 = vrot.slane %v1165_v49, %v1179_v52  ;;  %v1184_v20 = vrot.slane %v1165_v49, %v1183_v57 }
  0xf2   : > { %v1188_v17 = vrot.slane %v1165_v49, %v1187_v18  ;;  %v1192_v5 = vrot.slane %v1165_v49, %v1191_v11  ;;  %v1196_v33 = vrot.slane %v1165_v49, %v1195_v26  ;;  %v1200_v39 = vrot.slane %v1165_v49, %v1199_v31 }
 0x166   : > { %v868_v23 = vpop.f32.mrf.mxu0 }
 0x167   : > { %v869_v12 = vadd.f32 %v868_v23, %v1884_v19 }
 0x168   : > { %v870_v16 = vpop.f32.mrf.mxu0 }
 0x169   : > { %v871_v22 = vadd.f32 %v870_v16, %v1884_v19  ;;  %1156 = vst [vmem:[%s1889_s11] sm:$0xff] %v869_v12  ;;  %v1235_v53 = vmul.f32 %v869_v12, %v869_v12  ;;  %v1214_v15 = vmul.f32 %v1172_v50, %v869_v12 }
 0x16b   : > { %1157 = vst [vmem:[%s1889_s11 + $0x8] sm:$0xff] %v871_v22  ;;  %v1236_v54 = vmul.f32 %v871_v22, %v871_v22  ;;  %v1215_v56 = vmul.f32 %v1176_v51, %v871_v22  ;;  %v1244_v58 = vmul.f32 %v1235_v53, %v1172_v50 }
 0x16d   : > { %v1245_v59 = vmul.f32 %v1236_v54, %v1176_v51  ;;  %v1223_v61 = vadd.f32 %v1215_v56, %v1214_v15 }
 0x16f   : > { %v1253_v10 = vadd.f32 %v1245_v59, %v1244_v58 }
 0x18b   : > { %v939_v25 = vpop.f32.mrf.mxu1 }
 0x18c   : > { %v940_v27 = vadd.f32 %v939_v25, %v1884_v19  ;;  %v1422_v25 = vld [vmem:[%s1931_s3 + $0x8] ss:$0 sm:$0xff] }
 0x18d   : > { %v941_v63 = vpop.f32.mrf.mxu1 }
 0x18e   : > { %1158 = vst [vmem:[%s1889_s11 + $0x10] sm:$0xff] %v940_v27  ;;  %v942_v42 = vadd.f32 %v941_v63, %v1884_v19  ;;  %v1237_v60 = vmul.f32 %v940_v27, %v940_v27  ;;  %v1216_v62 = vmul.f32 %v1180_v7, %v940_v27 }
 0x18f   : > { %v1010_v43 = vpop.f32.mrf.mxu0 }
 0x190   : > { %1159 = vst [vmem:[%s1889_s11 + $0x18] sm:$0xff] %v942_v42  ;;  %v1011_v44 = vadd.f32 %v1010_v43, %v1884_v19  ;;  %v1246_v4 = vmul.f32 %v1237_v60, %v1180_v7  ;;  %v1238_v2 = vmul.f32 %v942_v42, %v942_v42  ;;  %v1224_v9 = vadd.f32 %v1223_v61, %v1216_v62 }
 0x191   : > { %v1012_v45 = vpop.f32.mrf.mxu0  ;;  %v1217_v13 = vmul.f32 %v1184_v20, %v942_v42 }
 0x192   : > { %v1013_v48 = vadd.f32 %v1012_v45, %v1884_v19  ;;  %1160 = vst [vmem:[%s1889_s11 + $0x20] sm:$0xff] %v1011_v44  ;;  %v1254_v14 = vadd.f32 %v1253_v10, %v1246_v4  ;;  %v1247_v55 = vmul.f32 %v1238_v2, %v1184_v20  ;;  %v1239_v6 = vmul.f32 %v1011_v44, %v1011_v44 }
 0x193   : > { %v1225_v8 = vadd.f32 %v1224_v9, %v1217_v13  ;;  %v1218_v3 = vmul.f32 %v1188_v17, %v1011_v44 }
 0x194   : > { %1161 = vst [vmem:[%s1889_s11 + $0x28] sm:$0xff] %v1013_v48  ;;  %v1255_v29 = vadd.f32 %v1254_v14, %v1247_v55  ;;  %v1248_v0 = vmul.f32 %v1239_v6, %v1188_v17  ;;  %v1240_v30 = vmul.f32 %v1013_v48, %v1013_v48  ;;  %v1219_v32 = vmul.f32 %v1192_v5, %v1013_v48 }
 0x195   : > { %v1226_v1 = vadd.f32 %v1225_v8, %v1218_v3 }
 0x196   : > { %v1256_v34 = vadd.f32 %v1255_v29, %v1248_v0  ;;  %v1249_v35 = vmul.f32 %v1240_v30, %v1192_v5 }
 0x197   : > { %v1227_v40 = vadd.f32 %v1226_v1, %v1219_v32 }
 0x198   : > { %v1257_v27 = vadd.f32 %v1256_v34, %v1249_v35 }
 0x1ab   : > { %v1081_v36 = vpop.f32.mrf.mxu1 }
 0x1ac   : > { %v1082_v37 = vadd.f32 %v1081_v36, %v1884_v19  ;;  %v1152_v38 = vpop.f32.mrf.mxu0 }
 0x1ad   : > { %v1153_v28 = vadd.f32 %v1152_v38, %v1884_v19  ;;  %v1083_v21 = vpop.f32.mrf.mxu1 }
 0x1ae   : > { %1162 = vst [vmem:[%s1889_s11 + $0x30] sm:$0xff] %v1082_v37  ;;  %v1220_v23 = vmul.f32 %v1196_v33, %v1082_v37  ;;  %v1241_v12 = vmul.f32 %v1082_v37, %v1082_v37  ;;  %v1084_v16 = vadd.f32 %v1083_v21, %v1884_v19  ;;  %v1455_v22 = vpop.f32.mrf.mxu0 }
 0x1af   : > { %1164 = vst [vmem:[%s1889_s11 + $0x40] sm:$0xff] %v1153_v28  ;;  %v1243_v24 = vmul.f32 %v1153_v28, %v1153_v28  ;;  %v1222_v44 = vmul.f32 %v1422_v25, %v1153_v28 }
 0x1b0   : > { %v1250_v63 = vmul.f32 %v1241_v12, %v1196_v33  ;;  %1163 = vst [vmem:[%s1889_s11 + $0x38] sm:$0xff] %v1084_v16  ;;  %v1221_v41 = vmul.f32 %v1200_v39, %v1084_v16  ;;  %v1242_v42 = vmul.f32 %v1084_v16, %v1084_v16  ;;  %v1228_v43 = vadd.f32 %v1227_v40, %v1220_v23 }
 0x1b1   : > { %v1252_v19 = vmul.f32 %v1422_v25, %v1243_v24 }
 0x1b2   : > { %v1229_v45 = vadd.f32 %v1228_v43, %v1221_v41  ;;  %v1251_v46 = vmul.f32 %v1242_v42, %v1200_v39  ;;  %v1258_v47 = vadd.f32 %v1257_v27, %v1250_v63 }
 0x1b4   : > { %v1230_v48 = vadd.f32 %v1229_v45, %v1222_v44  ;;  %v1259_v49 = vadd.f32 %v1258_v47, %v1251_v46 }
 0x1b6   : > { %1231 = vadd.xlane.f32.xlu1 %v1230_v48  ;;  %v1260_v50 = vadd.f32 %v1259_v49, %v1252_v19 }
 0x1b8   : > { %1261 = vadd.xlane.f32.xlu0 %v1260_v50 }
 0x23f   : > { %v1232_v51 = vpop.xlane.xlu1 %1231 }
 0x240   : > { %1234 = vst.msk [vmem:[%s299_s23] sm:$0xff] %vm1233_vm5, %v1232_v51 }
 0x241   : > { %v1262_v52 = vpop.xlane.xlu0 %1261 }
 0x242   : > { %1264 = vst.msk [vmem:[%s299_s23] sm:$0xff] %vm1263_vm6, %v1262_v52 }
 0x243 PF: > { %s16_s20 = sadd.s32 1, %s1511_s20   ;;  %s1934_s18 = smov %s1507_s19 }
 0x244   : > { %p13_p5 = scmp.ge.s32.totalorder %s16_s20, 4   ;;  %s1935_s19 = smov %s1937_s21 }
 0x246   :  { %15 = sbr.rel (!%p13_p5) target bundleno = 2 (0x2), region = 81 }

// kernel: variational_encoder_forward.9
= control target key start
LH: loop header
LB: loop body
LE: loop exit
PB: predicated region body
PF: predicated region fallthrough
CT: control target
= control target key end

     0   :  { %s1345_s24 = smov 0   ;;  %s1957_s0 = inlined_call_operand.vmem [shape: f32[2,8192], index: 0, kind: input, shape index: {}]   ;;  %s1958_s1 = inlined_call_operand.vmem [shape: f32[8192,256], index: 1, kind: input, shape index: {}]   ;;  %s1959_s2 = inlined_call_operand.vmem [shape: f32[1,256], index: 2, kind: input, shape index: {}]   ;;  %s1960_s3 = inlined_call_operand.vmem [shape: f32[256,256], index: 3, kind: input, shape index: {}]   ;;  %s1961_s4 = inlined_call_operand.vmem [shape: f32[1,256], index: 4, kind: input, shape index: {}]   ;;  %s1962_s5 = inlined_call_operand.vmem [shape: f32[256,16], index: 5, kind: input, shape index: {}]   ;;  %s1963_s6 = inlined_call_operand.vmem [shape: f32[1,16], index: 6, kind: input, shape index: {}]   ;;  %s1964_s7 = inlined_call_operand.vmem [shape: f32[2,16], index: 7, kind: output, shape index: {}]  }
   0x1 LB: > { %s1351_s25 = sadd.s32 4294967295, %s1301_s24   ;;  %p1236_p0 = scmp.ge.s32.totalorder %s1301_s24, 1  ;;  %s1301_s24 = sphi %s1345_s24, %s17_s24  }
   0x2   : > { %p245_p1 = scmp.lt.s32.totalorder %s1301_s24, 9 }
   0x4   : > { %p246_p2 = pnand %p1236_p0, %p245_p1 }
   0x5   : > { %s1237_s26 = sshll.u32 (!%p246_p2), %s1351_s25, 3  ;;  %s1239_s27 = sshll.u32 (!%p246_p2), %s1351_s25, 7 }
   0x6   : > { %249 = sbr.rel (%p246_p2) target bundleno = 824 (0x338), region = 48  ;;  %p279_p3 = scmp.lt.s32.totalorder (!%p246_p2), %s1237_s26, 63 }
   0x7   : > { %p285_p4 = scmp.lt.s32.totalorder (!%p246_p2), %s1239_s27, 1023  ;;  %p1242_p5 = scmp.ne.s32.totalorder (!%p246_p2), %s1351_s25, 0 }
   0xb   : > { %s1966_s26 = smov (!%p279_p3, %s1237_s26), 63  ;;  %s1968_s27 = smov (!%p285_p4, %s1239_s27), 1023 }
   0xc   : > { %s1238_s28 = sshll.u32 %s1966_s26, 1  ;;  %s1247_s9 = sshll.u32 %s1968_s27, 4 }
   0xd   : > { %s1360_s8 = scalar_lea.vmem %s1957_s0, %s1238_s28  ;;  %s1365_s12 = scalar_lea.vmem %s1958_s1, %s1247_s9 }
   0xe   : > { %294 = sbr.rel (%p1242_p5) target bundleno = 21 (0x15), region = 52 }
  0x13   : > { %v1303_v0 = vmov 0.0  }
  0x14   : > { %295 = vst [vmem:[#allocation2] sm:$0xf] %v1303_v0 }
  0x15 PF: > { %v330_v1 = vld [vmem:[%s1365_s12 + $0xf8] sm:$0xff]  ;;  %v329_v3 = vld [vmem:[%s1365_s12 + $0xf0] sm:$0xff]  ;;  %v328_v5 = vld [vmem:[%s1365_s12 + $0xe8] sm:$0xff]  ;;  %p1243_p6 = scmp.ne.s32.totalorder %s1351_s25, 7 }
  0x16   : > { %v394_v2 = vld [vmem:[%s1365_s12 + $0x2f8] sm:$0xff]  ;;  %599 = vmatprep.subr.mxu0 %v330_v1  ;;  %v393_v4 = vld [vmem:[%s1365_s12 + $0x2f0] sm:$0xff]  ;;  %v392_v6 = vld [vmem:[%s1365_s12 + $0x2e8] sm:$0xff] }
  0x17   : > { %670 = vmatprep.subr.mxu1 %v394_v2  ;;  %600 = vmatpush1.msra.mxu0 %v329_v3  ;;  %v327_v7 = vld [vmem:[%s1365_s12 + $0xe0] sm:$0xff]  ;;  %v326_v9 = vld [vmem:[%s1365_s12 + $0xd8] sm:$0xff]  ;;  %v325_v11 = vld [vmem:[%s1365_s12 + $0xd0] sm:$0xff] }
  0x18   : > { %671 = vmatpush1.msra.mxu1 %v393_v4  ;;  %v391_v8 = vld [vmem:[%s1365_s12 + $0x2e0] sm:$0xff]  ;;  %601 = vmatprep.subr.mxu0 %v328_v5  ;;  %v390_v10 = vld [vmem:[%s1365_s12 + $0x2d8] sm:$0xff]  ;;  %v389_v12 = vld [vmem:[%s1365_s12 + $0x2d0] sm:$0xff] }
  0x19   : > { %672 = vmatprep.subr.mxu1 %v392_v6  ;;  %602 = vmatpush1.msra.mxu0 %v327_v7  ;;  %v324_v13 = vld [vmem:[%s1365_s12 + $0xc8] sm:$0xff]  ;;  %v323_v15 = vld [vmem:[%s1365_s12 + $0xc0] sm:$0xff]  ;;  %v322_v17 = vld [vmem:[%s1365_s12 + $0xb8] sm:$0xff] }
  0x1a   : > { %673 = vmatpush1.msra.mxu1 %v391_v8  ;;  %v388_v14 = vld [vmem:[%s1365_s12 + $0x2c8] sm:$0xff]  ;;  %603 = vmatprep.subr.mxu0 %v326_v9  ;;  %v387_v16 = vld [vmem:[%s1365_s12 + $0x2c0] sm:$0xff]  ;;  %v386_v18 = vld [vmem:[%s1365_s12 + $0x2b8] sm:$0xff] }
  0x1b   : > { %674 = vmatprep.subr.mxu1 %v390_v10  ;;  %604 = vmatpush1.msra.mxu0 %v325_v11  ;;  %v321_v19 = vld [vmem:[%s1365_s12 + $0xb0] sm:$0xff]  ;;  %v320_v21 = vld [vmem:[%s1365_s12 + $0xa8] sm:$0xff]  ;;  %v319_v23 = vld [vmem:[%s1365_s12 + $0xa0] sm:$0xff] }
  0x1c   : > { %675 = vmatpush1.msra.mxu1 %v389_v12  ;;  %605 = vmatprep.subr.mxu0 %v324_v13  ;;  %v385_v20 = vld [vmem:[%s1365_s12 + $0x2b0] sm:$0xff]  ;;  %v384_v22 = vld [vmem:[%s1365_s12 + $0x2a8] sm:$0xff]  ;;  %v383_v24 = vld [vmem:[%s1365_s12 + $0x2a0] sm:$0xff] }
  0x1d   : > { %676 = vmatprep.subr.mxu1 %v388_v14  ;;  %606 = vmatpush1.msra.mxu0 %v323_v15  ;;  %v318_v25 = vld [vmem:[%s1365_s12 + $0x98] sm:$0xff]  ;;  %v317_v27 = vld [vmem:[%s1365_s12 + $0x90] sm:$0xff]  ;;  %v316_v29 = vld [vmem:[%s1365_s12 + $0x88] sm:$0xff] }
  0x1e   : > { %677 = vmatpush1.msra.mxu1 %v387_v16  ;;  %607 = vmatprep.subr.mxu0 %v322_v17  ;;  %v382_v26 = vld [vmem:[%s1365_s12 + $0x298] sm:$0xff]  ;;  %v381_v28 = vld [vmem:[%s1365_s12 + $0x290] sm:$0xff]  ;;  %v380_v30 = vld [vmem:[%s1365_s12 + $0x288] sm:$0xff] }
  0x1f   : > { %678 = vmatprep.subr.mxu1 %v386_v18  ;;  %608 = vmatpush1.msra.mxu0 %v321_v19  ;;  %v315_v31 = vld [vmem:[%s1365_s12 + $0x80] sm:$0xff]  ;;  %v314_v33 = vld [vmem:[%s1365_s12 + $0x78] sm:$0xff]  ;;  %v313_v35 = vld [vmem:[%s1365_s12 + $0x70] sm:$0xff] }
  0x20   : > { %679 = vmatpush1.msra.mxu1 %v385_v20  ;;  %609 = vmatprep.subr.mxu0 %v320_v21  ;;  %v379_v32 = vld [vmem:[%s1365_s12 + $0x280] sm:$0xff]  ;;  %v378_v34 = vld [vmem:[%s1365_s12 + $0x278] sm:$0xff]  ;;  %v377_v36 = vld [vmem:[%s1365_s12 + $0x270] sm:$0xff] }
  0x21   : > { %680 = vmatprep.subr.mxu1 %v384_v22  ;;  %610 = vmatpush1.msra.mxu0 %v319_v23  ;;  %v312_v37 = vld [vmem:[%s1365_s12 + $0x68] sm:$0xff]  ;;  %v311_v39 = vld [vmem:[%s1365_s12 + $0x60] sm:$0xff]  ;;  %v310_v41 = vld [vmem:[%s1365_s12 + $0x58] sm:$0xff] }
  0x22   : > { %681 = vmatpush1.msra.mxu1 %v383_v24  ;;  %611 = vmatprep.subr.mxu0 %v318_v25  ;;  %v376_v38 = vld [vmem:[%s1365_s12 + $0x268] sm:$0xff]  ;;  %v375_v40 = vld [vmem:[%s1365_s12 + $0x260] sm:$0xff]  ;;  %v374_v42 = vld [vmem:[%s1365_s12 + $0x258] sm:$0xff] }
  0x23   : > { %682 = vmatprep.subr.mxu1 %v382_v26  ;;  %612 = vmatpush1.msra.mxu0 %v317_v27  ;;  %v309_v43 = vld [vmem:[%s1365_s12 + $0x50] sm:$0xff]  ;;  %v308_v45 = vld [vmem:[%s1365_s12 + $0x48] sm:$0xff]  ;;  %v307_v47 = vld [vmem:[%s1365_s12 + $0x40] sm:$0xff] }
  0x24   : > { %683 = vmatpush1.msra.mxu1 %v381_v28  ;;  %613 = vmatprep.subr.mxu0 %v316_v29  ;;  %v373_v44 = vld [vmem:[%s1365_s12 + $0x250] sm:$0xff]  ;;  %v372_v46 = vld [vmem:[%s1365_s12 + $0x248] sm:$0xff]  ;;  %v371_v48 = vld [vmem:[%s1365_s12 + $0x240] sm:$0xff] }
  0x25   : > { %684 = vmatprep.subr.mxu1 %v380_v30  ;;  %614 = vmatpush1.msra.mxu0 %v315_v31  ;;  %v306_v49 = vld [vmem:[%s1365_s12 + $0x38] sm:$0xff]  ;;  %v305_v51 = vld [vmem:[%s1365_s12 + $0x30] sm:$0xff]  ;;  %v304_v53 = vld [vmem:[%s1365_s12 + $0x28] sm:$0xff]  ;;  %v1304_v31 = vmov 1983009808  }
  0x26   : > { %685 = vmatpush1.msra.mxu1 %v379_v32  ;;  %615 = vmatprep.subr.mxu0 %v314_v33  ;;  %v370_v50 = vld [vmem:[%s1365_s12 + $0x238] sm:$0xff]  ;;  %v369_v52 = vld [vmem:[%s1365_s12 + $0x230] sm:$0xff]  ;;  %v368_v54 = vld [vmem:[%s1365_s12 + $0x228] sm:$0xff]  ;;  %v559_v32 = vunpack.c.l.s4 %v1304_v31  ;;  %v561_v33 = vlaneseq }
  0x27   : > { %686 = vmatprep.subr.mxu1 %v378_v34  ;;  %616 = vmatpush1.msra.mxu0 %v313_v35  ;;  %v303_v55 = vld [vmem:[%s1365_s12 + $0x20] sm:$0xff]  ;;  %v302_v57 = vld [vmem:[%s1365_s12 + $0x18] sm:$0xff]  ;;  %v301_v59 = vld [vmem:[%s1365_s12 + $0x10] sm:$0xff] }
  0x28   : > { %687 = vmatpush1.msra.mxu1 %v377_v36  ;;  %617 = vmatprep.subr.mxu0 %v312_v37  ;;  %v367_v56 = vld [vmem:[%s1365_s12 + $0x220] sm:$0xff]  ;;  %v366_v58 = vld [vmem:[%s1365_s12 + $0x218] sm:$0xff]  ;;  %v365_v60 = vld [vmem:[%s1365_s12 + $0x210] sm:$0xff] }
  0x29   : > { %688 = vmatprep.subr.mxu1 %v376_v38  ;;  %618 = vmatpush1.msra.mxu0 %v311_v39  ;;  %v300_v61 = vld [vmem:[%s1365_s12 + $0x8] sm:$0xff]  ;;  %v299_v63 = vld [vmem:[%s1365_s12] sm:$0xff]  ;;  %v362_v1 = vld [vmem:[%s1365_s12 + $0x1f8] sm:$0xff] }
  0x2a   : > { %689 = vmatpush1.msra.mxu1 %v375_v40  ;;  %619 = vmatprep.subr.mxu0 %v310_v41  ;;  %v364_v62 = vld [vmem:[%s1365_s12 + $0x208] sm:$0xff]  ;;  %v363_v0 = vld [vmem:[%s1365_s12 + $0x200] sm:$0xff]  ;;  %v426_v2 = vld [vmem:[%s1365_s12 + $0x3f8] sm:$0xff] }
  0x2b   : > { %690 = vmatprep.subr.mxu1 %v374_v42  ;;  %620 = vmatpush1.msra.mxu0 %v309_v43  ;;  %v361_v3 = vld [vmem:[%s1365_s12 + $0x1f0] sm:$0xff]  ;;  %v360_v5 = vld [vmem:[%s1365_s12 + $0x1e8] sm:$0xff]  ;;  %v359_v7 = vld [vmem:[%s1365_s12 + $0x1e0] sm:$0xff]  ;;  %v560_v42 = vunpack.c.0.s8 %v559_v32  ;;  %v1470_v43 = vshrl.u32 %v561_v33, 7 }
  0x2c   : > { %691 = vmatpush1.msra.mxu1 %v373_v44  ;;  %621 = vmatprep.subr.mxu0 %v308_v45  ;;  %v425_v4 = vld [vmem:[%s1365_s12 + $0x3f0] sm:$0xff]  ;;  %v424_v6 = vld [vmem:[%s1365_s12 + $0x3e8] sm:$0xff]  ;;  %v423_v8 = vld [vmem:[%s1365_s12 + $0x3e0] sm:$0xff] }
  0x2d   : > { %692 = vmatprep.subr.mxu1 %v372_v46  ;;  %622 = vmatpush1.msra.mxu0 %v307_v47  ;;  %v358_v9 = vld [vmem:[%s1365_s12 + $0x1d8] sm:$0xff]  ;;  %v357_v11 = vld [vmem:[%s1365_s12 + $0x1d0] sm:$0xff]  ;;  %v356_v13 = vld [vmem:[%s1365_s12 + $0x1c8] sm:$0xff] }
  0x2e   : > { %693 = vmatpush1.msra.mxu1 %v371_v48  ;;  %623 = vmatprep.subr.mxu0 %v306_v49  ;;  %v422_v10 = vld [vmem:[%s1365_s12 + $0x3d8] sm:$0xff]  ;;  %v421_v12 = vld [vmem:[%s1365_s12 + $0x3d0] sm:$0xff]  ;;  %v420_v14 = vld [vmem:[%s1365_s12 + $0x3c8] sm:$0xff] }
  0x2f   : > { %694 = vmatprep.subr.mxu1 %v370_v50  ;;  %624 = vmatpush1.msra.mxu0 %v305_v51  ;;  %v355_v15 = vld [vmem:[%s1365_s12 + $0x1c0] sm:$0xff]  ;;  %v354_v17 = vld [vmem:[%s1365_s12 + $0x1b8] sm:$0xff]  ;;  %v353_v19 = vld [vmem:[%s1365_s12 + $0x1b0] sm:$0xff] }
  0x30   : > { %695 = vmatpush1.msra.mxu1 %v369_v52  ;;  %625 = vmatprep.subr.mxu0 %v304_v53  ;;  %v419_v16 = vld [vmem:[%s1365_s12 + $0x3c0] sm:$0xff]  ;;  %v418_v18 = vld [vmem:[%s1365_s12 + $0x3b8] sm:$0xff]  ;;  %v417_v20 = vld [vmem:[%s1365_s12 + $0x3b0] sm:$0xff]  ;;  %v1482_v53 = vsub.s32 %v560_v42, %v1470_v43 }
  0x31   : > { %696 = vmatprep.subr.mxu1 %v368_v54  ;;  %626 = vmatpush1.msra.mxu0 %v303_v55  ;;  %v352_v21 = vld [vmem:[%s1365_s12 + $0x1a8] sm:$0xff]  ;;  %v351_v23 = vld [vmem:[%s1365_s12 + $0x1a0] sm:$0xff]  ;;  %v350_v25 = vld [vmem:[%s1365_s12 + $0x198] sm:$0xff] }
  0x32   : > { %697 = vmatpush1.msra.mxu1 %v367_v56  ;;  %627 = vmatprep.subr.mxu0 %v302_v57  ;;  %v416_v22 = vld [vmem:[%s1365_s12 + $0x3a8] sm:$0xff]  ;;  %v415_v24 = vld [vmem:[%s1365_s12 + $0x3a0] sm:$0xff]  ;;  %v414_v26 = vld [vmem:[%s1365_s12 + $0x398] sm:$0xff] }
  0x33   : > { %698 = vmatprep.subr.mxu1 %v366_v58  ;;  %628 = vmatpush1.msra.mxu0 %v301_v59  ;;  %v349_v27 = vld [vmem:[%s1365_s12 + $0x190] sm:$0xff]  ;;  %v348_v29 = vld [vmem:[%s1365_s12 + $0x188] sm:$0xff]  ;;  %v347_v34 = vld [vmem:[%s1365_s12 + $0x180] sm:$0xff] }
  0x34   : > { %699 = vmatpush1.msra.mxu1 %v365_v60  ;;  %629 = vmatprep.subr.mxu0 %v300_v61  ;;  %v413_v28 = vld [vmem:[%s1365_s12 + $0x390] sm:$0xff]  ;;  %v412_v30 = vld [vmem:[%s1365_s12 + $0x388] sm:$0xff]  ;;  %v411_v35 = vld [vmem:[%s1365_s12 + $0x380] sm:$0xff] }
  0x35   : > { %700 = vmatprep.subr.mxu1 %v364_v62  ;;  %630 = vmatpush1.msra.mxu0 %v299_v63  ;;  %v346_v36 = vld [vmem:[%s1365_s12 + $0x178] sm:$0xff]  ;;  %v345_v38 = vld [vmem:[%s1365_s12 + $0x170] sm:$0xff]  ;;  %v344_v40 = vld [vmem:[%s1365_s12 + $0x168] sm:$0xff] }
  0x36   : > { %701 = vmatpush1.msra.mxu1 %v363_v0  ;;  %631 = vmatprep.subr.mxu0 %v362_v1  ;;  %v410_v37 = vld [vmem:[%s1365_s12 + $0x378] sm:$0xff]  ;;  %v409_v39 = vld [vmem:[%s1365_s12 + $0x370] sm:$0xff]  ;;  %v408_v41 = vld [vmem:[%s1365_s12 + $0x368] sm:$0xff] }
  0x37   : > { %702 = vmatprep.subr.mxu1 %v426_v2  ;;  %632 = vmatpush2.msra.mxu0 %v361_v3  ;;  %v343_v44 = vld [vmem:[%s1365_s12 + $0x160] sm:$0xff]  ;;  %v342_v46 = vld [vmem:[%s1365_s12 + $0x158] sm:$0xff]  ;;  %v341_v49 = vld [vmem:[%s1365_s12 + $0x150] sm:$0xff] }
  0x38   : > { %703 = vmatpush2.msra.mxu1 %v425_v4  ;;  %633 = vmatprep.subr.mxu0 %v360_v5  ;;  %v407_v45 = vld [vmem:[%s1365_s12 + $0x360] sm:$0xff]  ;;  %v406_v47 = vld [vmem:[%s1365_s12 + $0x358] sm:$0xff]  ;;  %v405_v50 = vld [vmem:[%s1365_s12 + $0x350] sm:$0xff] }
  0x39   : > { %704 = vmatprep.subr.mxu1 %v424_v6  ;;  %634 = vmatpush2.msra.mxu0 %v359_v7  ;;  %v297_v48 = vld [vmem:[%s1360_s8] sm:$0xff]  ;;  %v340_v51 = vld [vmem:[%s1365_s12 + $0x148] sm:$0xff]  ;;  %v338_v57 = vld [vmem:[%s1365_s12 + $0x138] sm:$0xff] }
  0x3a   : > { %705 = vmatpush2.msra.mxu1 %v423_v8  ;;  %635 = vmatprep.subr.mxu0 %v358_v9  ;;  %v404_v52 = vld [vmem:[%s1365_s12 + $0x348] sm:$0xff]  ;;  %v339_v54 = vld [vmem:[%s1365_s12 + $0x140] sm:$0xff]  ;;  %v557_v56 = vcombine.high %v297_v48, %v297_v48  ;;  %v402_v58 = vld [vmem:[%s1365_s12 + $0x338] sm:$0xff]  ;;  %v564_v63 = vrot.slane %v297_v48, %v1482_v53 }
  0x3b   : > { %706 = vmatprep.subr.mxu1 %v422_v10  ;;  %636 = vmatpush2.msra.mxu0 %v357_v11  ;;  %v403_v55 = vld [vmem:[%s1365_s12 + $0x340] sm:$0xff]  ;;  %v337_v59 = vld [vmem:[%s1365_s12 + $0x130] sm:$0xff]  ;;  %v336_v61 = vld [vmem:[%s1365_s12 + $0x128] sm:$0xff] }
  0x3c   : > { %707 = vmatpush2.msra.mxu1 %v421_v12  ;;  %637 = vmatprep.subr.mxu0 %v356_v13  ;;  %v401_v60 = vld [vmem:[%s1365_s12 + $0x330] sm:$0xff]  ;;  %v400_v62 = vld [vmem:[%s1365_s12 + $0x328] sm:$0xff]  ;;  %v335_v0 = vld [vmem:[%s1365_s12 + $0x120] sm:$0xff]  ;;  %v571_v2 = vrot.slane %v557_v56, %v1482_v53  ;;  %v572_v9 = vcombine.high %v564_v63, %v564_v63 }
  0x3d   : > { %708 = vmatprep.subr.mxu1 %v420_v14  ;;  %638 = vmatpush2.msra.mxu0 %v355_v15  ;;  %v399_v1 = vld [vmem:[%s1365_s12 + $0x320] sm:$0xff]  ;;  %v334_v3 = vld [vmem:[%s1365_s12 + $0x118] sm:$0xff]  ;;  %v333_v5 = vld [vmem:[%s1365_s12 + $0x110] sm:$0xff] }
  0x3e   : > { %709 = vmatpush2.msra.mxu1 %v419_v16  ;;  %639 = vmatprep.subr.mxu0 %v354_v17  ;;  %v398_v4 = vld [vmem:[%s1365_s12 + $0x318] sm:$0xff]  ;;  %v397_v6 = vld [vmem:[%s1365_s12 + $0x310] sm:$0xff]  ;;  %v332_v7 = vld [vmem:[%s1365_s12 + $0x108] sm:$0xff]  ;;  %v573_v11 = vcombine.high %v571_v2, %v571_v2 }
  0x3f   : > { %710 = vmatprep.subr.mxu1 %v418_v18  ;;  %640 = vmatpush2.msra.mxu0 %v353_v19  ;;  %v396_v8 = vld [vmem:[%s1365_s12 + $0x308] sm:$0xff]  ;;  %v331_v10 = vld [vmem:[%s1365_s12 + $0x100] sm:$0xff]  ;;  %v458_v13 = vld [vmem:[%s1365_s12 + $0x4f8] sm:$0xff] }
  0x40   : > { %711 = vmatpush2.msra.mxu1 %v417_v20  ;;  %641 = vmatprep.subr.mxu0 %v352_v21  ;;  %v395_v12 = vld [vmem:[%s1365_s12 + $0x300] sm:$0xff]  ;;  %v522_v14 = vld [vmem:[%s1365_s12 + $0x6f8] sm:$0xff]  ;;  %v457_v15 = vld [vmem:[%s1365_s12 + $0x4f0] sm:$0xff] }
  0x41   : > { %712 = vmatprep.subr.mxu1 %v416_v22  ;;  %642 = vmatpush2.msra.mxu0 %v351_v23  ;;  %v521_v16 = vld [vmem:[%s1365_s12 + $0x6f0] sm:$0xff]  ;;  %v456_v17 = vld [vmem:[%s1365_s12 + $0x4e8] sm:$0xff]  ;;  %v455_v19 = vld [vmem:[%s1365_s12 + $0x4e0] sm:$0xff] }
  0x42   : > { %713 = vmatpush2.msra.mxu1 %v415_v24  ;;  %643 = vmatprep.subr.mxu0 %v350_v25  ;;  %v520_v18 = vld [vmem:[%s1365_s12 + $0x6e8] sm:$0xff]  ;;  %v519_v20 = vld [vmem:[%s1365_s12 + $0x6e0] sm:$0xff]  ;;  %v454_v21 = vld [vmem:[%s1365_s12 + $0x4d8] sm:$0xff] }
  0x43   : > { %714 = vmatprep.subr.mxu1 %v414_v26  ;;  %644 = vmatpush2.msra.mxu0 %v349_v27  ;;  %v518_v22 = vld [vmem:[%s1365_s12 + $0x6d8] sm:$0xff]  ;;  %v453_v23 = vld [vmem:[%s1365_s12 + $0x4d0] sm:$0xff]  ;;  %v452_v25 = vld [vmem:[%s1365_s12 + $0x4c8] sm:$0xff] }
  0x44   : > { %715 = vmatpush2.msra.mxu1 %v413_v28  ;;  %645 = vmatprep.subr.mxu0 %v348_v29  ;;  %v517_v24 = vld [vmem:[%s1365_s12 + $0x6d0] sm:$0xff]  ;;  %v516_v26 = vld [vmem:[%s1365_s12 + $0x6c8] sm:$0xff]  ;;  %v451_v27 = vld [vmem:[%s1365_s12 + $0x4c0] sm:$0xff] }
  0x45   : > { %716 = vmatprep.subr.mxu1 %v412_v30  ;;  %646 = vmatpush2.msra.mxu0 %v347_v34  ;;  %v515_v28 = vld [vmem:[%s1365_s12 + $0x6c0] sm:$0xff]  ;;  %v450_v29 = vld [vmem:[%s1365_s12 + $0x4b8] sm:$0xff]  ;;  %v449_v31 = vld [vmem:[%s1365_s12 + $0x4b0] sm:$0xff] }
  0x46   : > { %717 = vmatpush2.msra.mxu1 %v411_v35  ;;  %647 = vmatprep.subr.mxu0 %v346_v36  ;;  %v514_v30 = vld [vmem:[%s1365_s12 + $0x6b8] sm:$0xff]  ;;  %v513_v32 = vld [vmem:[%s1365_s12 + $0x6b0] sm:$0xff]  ;;  %v448_v33 = vld [vmem:[%s1365_s12 + $0x4a8] sm:$0xff] }
  0x47   : > { %718 = vmatprep.subr.mxu1 %v410_v37  ;;  %648 = vmatpush2.msra.mxu0 %v345_v38  ;;  %v512_v34 = vld [vmem:[%s1365_s12 + $0x6a8] sm:$0xff]  ;;  %v447_v35 = vld [vmem:[%s1365_s12 + $0x4a0] sm:$0xff]  ;;  %v446_v37 = vld [vmem:[%s1365_s12 + $0x498] sm:$0xff] }
  0x48   : > { %719 = vmatpush2.msra.mxu1 %v409_v39  ;;  %649 = vmatprep.subr.mxu0 %v344_v40  ;;  %v511_v36 = vld [vmem:[%s1365_s12 + $0x6a0] sm:$0xff]  ;;  %v510_v38 = vld [vmem:[%s1365_s12 + $0x698] sm:$0xff]  ;;  %v445_v39 = vld [vmem:[%s1365_s12 + $0x490] sm:$0xff] }
  0x49   : > { %720 = vmatprep.subr.mxu1 %v408_v41  ;;  %650 = vmatpush2.msra.mxu0 %v343_v44  ;;  %v509_v40 = vld [vmem:[%s1365_s12 + $0x690] sm:$0xff]  ;;  %v444_v41 = vld [vmem:[%s1365_s12 + $0x488] sm:$0xff]  ;;  %v443_v44 = vld [vmem:[%s1365_s12 + $0x480] sm:$0xff] }
  0x4a   : > { %721 = vmatpush2.msra.mxu1 %v407_v45  ;;  %651 = vmatprep.subr.mxu0 %v342_v46  ;;  %v508_v42 = vld [vmem:[%s1365_s12 + $0x688] sm:$0xff]  ;;  %v507_v45 = vld [vmem:[%s1365_s12 + $0x680] sm:$0xff]  ;;  %v442_v46 = vld [vmem:[%s1365_s12 + $0x478] sm:$0xff] }
  0x4b   : > { %722 = vmatprep.subr.mxu1 %v406_v47  ;;  %652 = vmatpush2.msra.mxu0 %v341_v49  ;;  %v506_v47 = vld [vmem:[%s1365_s12 + $0x678] sm:$0xff]  ;;  %v441_v48 = vld [vmem:[%s1365_s12 + $0x470] sm:$0xff] }
  0x4c   : > { %723 = vmatpush2.msra.mxu1 %v405_v50  ;;  %653 = vmatprep.subr.mxu0 %v340_v51  ;;  %v505_v49 = vld [vmem:[%s1365_s12 + $0x670] sm:$0xff]  ;;  %v440_v50 = vld [vmem:[%s1365_s12 + $0x468] sm:$0xff]  ;;  %v502_v56 = vld [vmem:[%s1365_s12 + $0x658] sm:$0xff] }
  0x4d   : > { %724 = vmatprep.subr.mxu1 %v404_v52  ;;  %654 = vmatpush2.msra.mxu0 %v339_v54  ;;  %v504_v51 = vld [vmem:[%s1365_s12 + $0x668] sm:$0xff]  ;;  %v439_v52 = vld [vmem:[%s1365_s12 + $0x460] sm:$0xff] }
  0x4e   : > { %725 = vmatpush2.msra.mxu1 %v403_v55  ;;  %655 = vmatprep.subr.mxu0 %v338_v57  ;;  %v503_v54 = vld [vmem:[%s1365_s12 + $0x660] sm:$0xff]  ;;  %v438_v55 = vld [vmem:[%s1365_s12 + $0x458] sm:$0xff]  ;;  %v437_v57 = vld [vmem:[%s1365_s12 + $0x450] sm:$0xff] }
  0x4f   : > { %726 = vmatprep.subr.mxu1 %v402_v58  ;;  %656 = vmatpush2.msra.mxu0 %v337_v59  ;;  %v501_v58 = vld [vmem:[%s1365_s12 + $0x650] sm:$0xff]  ;;  %v436_v59 = vld [vmem:[%s1365_s12 + $0x448] sm:$0xff] }
  0x50   : > { %727 = vmatpush2.msra.mxu1 %v401_v60  ;;  %657 = vmatprep.subr.mxu0 %v336_v61  ;;  %v500_v60 = vld [vmem:[%s1365_s12 + $0x648] sm:$0xff]  ;;  %v435_v61 = vld [vmem:[%s1365_s12 + $0x440] sm:$0xff] }
  0x51   : > { %728 = vmatprep.subr.mxu1 %v400_v62  ;;  %658 = vmatpush2.msra.mxu0 %v335_v0  ;;  %v499_v62 = vld [vmem:[%s1365_s12 + $0x640] sm:$0xff]  ;;  %v498_v0 = vld [vmem:[%s1365_s12 + $0x638] sm:$0xff] }
  0x52   : > { %729 = vmatpush2.msra.mxu1 %v399_v1  ;;  %659 = vmatprep.subr.mxu0 %v334_v3  ;;  %v433_v1 = vld [vmem:[%s1365_s12 + $0x430] sm:$0xff]  ;;  %v432_v3 = vld [vmem:[%s1365_s12 + $0x428] sm:$0xff] }
  0x53   : > { %730 = vmatprep.subr.mxu1 %v398_v4  ;;  %660 = vmatpush2.msra.mxu0 %v333_v5  ;;  %v496_v4 = vld [vmem:[%s1365_s12 + $0x628] sm:$0xff]  ;;  %v431_v5 = vld [vmem:[%s1365_s12 + $0x420] sm:$0xff] }
  0x54   : > { %731 = vmatpush2.msra.mxu1 %v397_v6  ;;  %661 = vmatprep.subr.mxu0 %v332_v7  ;;  %v495_v6 = vld [vmem:[%s1365_s12 + $0x620] sm:$0xff]  ;;  %v430_v7 = vld [vmem:[%s1365_s12 + $0x418] sm:$0xff] }
  0x55   : > { %732 = vmatprep.subr.mxu1 %v396_v8  ;;  %662 = vmatpush2.msra.mxu0 %v331_v10  ;;  %v494_v8 = vld [vmem:[%s1365_s12 + $0x618] sm:$0xff]  ;;  %v493_v10 = vld [vmem:[%s1365_s12 + $0x610] sm:$0xff] }
  0x56   : > { %663 = vmatprep.mubr.f32.mxu0 %v572_v9  ;;  %733 = vmatpush2.msra.mxu1 %v395_v12  ;;  %v429_v9 = vld [vmem:[%s1365_s12 + $0x410] sm:$0xff]  ;;  %v492_v12 = vld [vmem:[%s1365_s12 + $0x608] sm:$0xff] }
  0x57   : > { %734 = vmatprep.mubr.f32.mxu1 %v573_v11  ;;  %664 = vmatmul.mubr.f32.vlgmr.msra.gmra.mxu0 %v564_v63  ;;  %v434_v63 = vld [vmem:[%s1365_s12 + $0x438] sm:$0xff]  ;;  %v428_v11 = vld [vmem:[%s1365_s12 + $0x408] sm:$0xff] }
  0x58   : > { %735 = vmatmul.mubr.f32.vlgmr.msra.gmra.mxu1 %v571_v2  ;;  %741 = vmatprep.subr.mxu0 %v458_v13  ;;  %v497_v2 = vld [vmem:[%s1365_s12 + $0x630] sm:$0xff]  ;;  %v427_v13 = vld [vmem:[%s1365_s12 + $0x400] sm:$0xff] }
  0x59   : > { %812 = vmatprep.subr.mxu1 %v522_v14  ;;  %742 = vmatpush1.msra.mxu0 %v457_v15  ;;  %v491_v14 = vld [vmem:[%s1365_s12 + $0x600] sm:$0xff]  ;;  %v490_v15 = vld [vmem:[%s1365_s12 + $0x5f8] sm:$0xff] }
  0x5a   : > { %813 = vmatpush1.msra.mxu1 %v521_v16  ;;  %743 = vmatprep.subr.mxu0 %v456_v17  ;;  %v554_v16 = vld [vmem:[%s1365_s12 + $0x7f8] sm:$0xff]  ;;  %v489_v17 = vld [vmem:[%s1365_s12 + $0x5f0] sm:$0xff] }
  0x5b   : > { %814 = vmatprep.subr.mxu1 %v520_v18  ;;  %744 = vmatpush1.msra.mxu0 %v455_v19  ;;  %v553_v18 = vld [vmem:[%s1365_s12 + $0x7f0] sm:$0xff]  ;;  %v488_v19 = vld [vmem:[%s1365_s12 + $0x5e8] sm:$0xff] }
  0x5c   : > { %815 = vmatpush1.msra.mxu1 %v519_v20  ;;  %745 = vmatprep.subr.mxu0 %v454_v21  ;;  %v552_v20 = vld [vmem:[%s1365_s12 + $0x7e8] sm:$0xff]  ;;  %v487_v21 = vld [vmem:[%s1365_s12 + $0x5e0] sm:$0xff] }
  0x5d   : > { %816 = vmatprep.subr.mxu1 %v518_v22  ;;  %746 = vmatpush1.msra.mxu0 %v453_v23  ;;  %v551_v22 = vld [vmem:[%s1365_s12 + $0x7e0] sm:$0xff]  ;;  %v486_v23 = vld [vmem:[%s1365_s12 + $0x5d8] sm:$0xff] }
  0x5e   : > { %817 = vmatpush1.msra.mxu1 %v517_v24  ;;  %747 = vmatprep.subr.mxu0 %v452_v25  ;;  %v550_v24 = vld [vmem:[%s1365_s12 + $0x7d8] sm:$0xff]  ;;  %v485_v25 = vld [vmem:[%s1365_s12 + $0x5d0] sm:$0xff] }
  0x5f   : > { %818 = vmatprep.subr.mxu1 %v516_v26  ;;  %748 = vmatpush1.msra.mxu0 %v451_v27  ;;  %v549_v26 = vld [vmem:[%s1365_s12 + $0x7d0] sm:$0xff]  ;;  %v484_v27 = vld [vmem:[%s1365_s12 + $0x5c8] sm:$0xff] }
  0x60   : > { %819 = vmatpush1.msra.mxu1 %v515_v28  ;;  %749 = vmatprep.subr.mxu0 %v450_v29  ;;  %v548_v28 = vld [vmem:[%s1365_s12 + $0x7c8] sm:$0xff]  ;;  %v483_v29 = vld [vmem:[%s1365_s12 + $0x5c0] sm:$0xff] }
  0x61   : > { %820 = vmatprep.subr.mxu1 %v514_v30  ;;  %750 = vmatpush1.msra.mxu0 %v449_v31  ;;  %v547_v30 = vld [vmem:[%s1365_s12 + $0x7c0] sm:$0xff]  ;;  %v482_v31 = vld [vmem:[%s1365_s12 + $0x5b8] sm:$0xff] }
  0x62   : > { %821 = vmatpush1.msra.mxu1 %v513_v32  ;;  %751 = vmatprep.subr.mxu0 %v448_v33  ;;  %v546_v32 = vld [vmem:[%s1365_s12 + $0x7b8] sm:$0xff]  ;;  %v481_v33 = vld [vmem:[%s1365_s12 + $0x5b0] sm:$0xff] }
  0x63   : > { %822 = vmatprep.subr.mxu1 %v512_v34  ;;  %752 = vmatpush1.msra.mxu0 %v447_v35  ;;  %v545_v34 = vld [vmem:[%s1365_s12 + $0x7b0] sm:$0xff]  ;;  %v480_v35 = vld [vmem:[%s1365_s12 + $0x5a8] sm:$0xff] }
  0x64   : > { %823 = vmatpush1.msra.mxu1 %v511_v36  ;;  %753 = vmatprep.subr.mxu0 %v446_v37  ;;  %v544_v36 = vld [vmem:[%s1365_s12 + $0x7a8] sm:$0xff]  ;;  %v479_v37 = vld [vmem:[%s1365_s12 + $0x5a0] sm:$0xff] }
  0x65   : > { %824 = vmatprep.subr.mxu1 %v510_v38  ;;  %754 = vmatpush1.msra.mxu0 %v445_v39  ;;  %v543_v38 = vld [vmem:[%s1365_s12 + $0x7a0] sm:$0xff]  ;;  %v478_v39 = vld [vmem:[%s1365_s12 + $0x598] sm:$0xff] }
  0x66   : > { %825 = vmatpush1.msra.mxu1 %v509_v40  ;;  %755 = vmatprep.subr.mxu0 %v444_v41  ;;  %v542_v40 = vld [vmem:[%s1365_s12 + $0x798] sm:$0xff]  ;;  %v477_v41 = vld [vmem:[%s1365_s12 + $0x590] sm:$0xff] }
  0x67   : > { %826 = vmatprep.subr.mxu1 %v508_v42  ;;  %756 = vmatpush1.msra.mxu0 %v443_v44  ;;  %v541_v42 = vld [vmem:[%s1365_s12 + $0x790] sm:$0xff]  ;;  %v476_v44 = vld [vmem:[%s1365_s12 + $0x588] sm:$0xff] }
  0x68   : > { %827 = vmatpush1.msra.mxu1 %v507_v45  ;;  %757 = vmatprep.subr.mxu0 %v442_v46  ;;  %v540_v45 = vld [vmem:[%s1365_s12 + $0x788] sm:$0xff]  ;;  %v475_v46 = vld [vmem:[%s1365_s12 + $0x580] sm:$0xff] }
  0x69   : > { %828 = vmatprep.subr.mxu1 %v506_v47  ;;  %758 = vmatpush1.msra.mxu0 %v441_v48  ;;  %v539_v47 = vld [vmem:[%s1365_s12 + $0x780] sm:$0xff]  ;;  %v474_v48 = vld [vmem:[%s1365_s12 + $0x578] sm:$0xff] }
  0x6a   : > { %829 = vmatpush1.msra.mxu1 %v505_v49  ;;  %759 = vmatprep.subr.mxu0 %v440_v50  ;;  %v538_v49 = vld [vmem:[%s1365_s12 + $0x778] sm:$0xff]  ;;  %v473_v50 = vld [vmem:[%s1365_s12 + $0x570] sm:$0xff] }
  0x6b   : > { %830 = vmatprep.subr.mxu1 %v504_v51  ;;  %760 = vmatpush1.msra.mxu0 %v439_v52  ;;  %v537_v51 = vld [vmem:[%s1365_s12 + $0x770] sm:$0xff]  ;;  %v472_v52 = vld [vmem:[%s1365_s12 + $0x568] sm:$0xff] }
  0x6c   : > { %831 = vmatpush1.msra.mxu1 %v503_v54  ;;  %761 = vmatprep.subr.mxu0 %v438_v55  ;;  %v536_v54 = vld [vmem:[%s1365_s12 + $0x768] sm:$0xff]  ;;  %v471_v55 = vld [vmem:[%s1365_s12 + $0x560] sm:$0xff] }
  0x6d   : > { %832 = vmatprep.subr.mxu1 %v502_v56  ;;  %762 = vmatpush1.msra.mxu0 %v437_v57  ;;  %v535_v56 = vld [vmem:[%s1365_s12 + $0x760] sm:$0xff]  ;;  %v470_v57 = vld [vmem:[%s1365_s12 + $0x558] sm:$0xff] }
  0x6e   : > { %833 = vmatpush1.msra.mxu1 %v501_v58  ;;  %763 = vmatprep.subr.mxu0 %v436_v59  ;;  %v534_v58 = vld [vmem:[%s1365_s12 + $0x758] sm:$0xff]  ;;  %v298_v59 = vld [vmem:[%s1360_s8 + $0x8] sm:$0xff] }
  0x6f   : > { %834 = vmatprep.subr.mxu1 %v500_v60  ;;  %764 = vmatpush1.msra.mxu0 %v435_v61  ;;  %v469_v60 = vld [vmem:[%s1365_s12 + $0x550] sm:$0xff] }
  0x70   : > { %835 = vmatpush1.msra.mxu1 %v499_v62  ;;  %765 = vmatprep.subr.mxu0 %v434_v63  ;;  %v533_v61 = vld [vmem:[%s1365_s12 + $0x750] sm:$0xff]  ;;  %v468_v62 = vld [vmem:[%s1365_s12 + $0x548] sm:$0xff] }
  0x71   : > { %836 = vmatprep.subr.mxu1 %v498_v0  ;;  %766 = vmatpush1.msra.mxu0 %v433_v1  ;;  %v532_v63 = vld [vmem:[%s1365_s12 + $0x748] sm:$0xff]  ;;  %v467_v0 = vld [vmem:[%s1365_s12 + $0x540] sm:$0xff] }
  0x72   : > { %837 = vmatpush1.msra.mxu1 %v497_v2  ;;  %767 = vmatprep.subr.mxu0 %v432_v3  ;;  %v531_v1 = vld [vmem:[%s1365_s12 + $0x740] sm:$0xff]  ;;  %v574_v2 = vcombine.high %v298_v59, %v298_v59  ;;  %v466_v3 = vld [vmem:[%s1365_s12 + $0x538] sm:$0xff] }
  0x73   : > { %838 = vmatprep.subr.mxu1 %v496_v4  ;;  %768 = vmatpush1.msra.mxu0 %v431_v5  ;;  %v530_v4 = vld [vmem:[%s1365_s12 + $0x738] sm:$0xff]  ;;  %v465_v5 = vld [vmem:[%s1365_s12 + $0x530] sm:$0xff] }
  0x74   : > { %839 = vmatpush1.msra.mxu1 %v495_v6  ;;  %769 = vmatprep.subr.mxu0 %v430_v7  ;;  %v529_v6 = vld [vmem:[%s1365_s12 + $0x730] sm:$0xff]  ;;  %v464_v7 = vld [vmem:[%s1365_s12 + $0x528] sm:$0xff] }
  0x75   : > { %840 = vmatprep.subr.mxu1 %v494_v8  ;;  %770 = vmatpush1.msra.mxu0 %v429_v9  ;;  %v528_v8 = vld [vmem:[%s1365_s12 + $0x728] sm:$0xff]  ;;  %v581_v9 = vrot.slane %v298_v59, %v1482_v53 }
  0x76   : > { %841 = vmatpush1.msra.mxu1 %v493_v10  ;;  %771 = vmatprep.subr.mxu0 %v428_v11  ;;  %v463_v10 = vld [vmem:[%s1365_s12 + $0x520] sm:$0xff] }
  0x77   : > { %842 = vmatprep.subr.mxu1 %v492_v12  ;;  %772 = vmatpush1.msra.mxu0 %v427_v13  ;;  %v527_v11 = vld [vmem:[%s1365_s12 + $0x720] sm:$0xff]  ;;  %v588_v12 = vrot.slane %v574_v2, %v1482_v53  ;;  %v462_v13 = vld [vmem:[%s1365_s12 + $0x518] sm:$0xff] }
  0x78   : > { %843 = vmatpush1.msra.mxu1 %v491_v14  ;;  %773 = vmatprep.subr.mxu0 %v490_v15  ;;  %v526_v14 = vld [vmem:[%s1365_s12 + $0x718] sm:$0xff]  ;;  %v461_v15 = vld [vmem:[%s1365_s12 + $0x510] sm:$0xff] }
  0x79   : > { %844 = vmatprep.subr.mxu1 %v554_v16  ;;  %774 = vmatpush2.msra.mxu0 %v489_v17  ;;  %v525_v16 = vld [vmem:[%s1365_s12 + $0x710] sm:$0xff]  ;;  %v460_v17 = vld [vmem:[%s1365_s12 + $0x508] sm:$0xff] }
  0x7a   : > { %845 = vmatpush2.msra.mxu1 %v553_v18  ;;  %775 = vmatprep.subr.mxu0 %v488_v19  ;;  %v524_v18 = vld [vmem:[%s1365_s12 + $0x708] sm:$0xff]  ;;  %v589_v19 = vcombine.high %v581_v9, %v581_v9 }
  0x7b   : > { %846 = vmatprep.subr.mxu1 %v552_v20  ;;  %776 = vmatpush2.msra.mxu0 %v487_v21  ;;  %v459_v20 = vld [vmem:[%s1365_s12 + $0x500] sm:$0xff]  ;;  %v590_v21 = vcombine.high %v588_v12, %v588_v12 }
  0x7c   : > { %847 = vmatpush2.msra.mxu1 %v551_v22  ;;  %777 = vmatprep.subr.mxu0 %v486_v23  ;;  %v523_v22 = vld [vmem:[%s1365_s12 + $0x700] sm:$0xff] }
  0x7d   : > { %848 = vmatprep.subr.mxu1 %v550_v24  ;;  %778 = vmatpush2.msra.mxu0 %v485_v25 }
  0x7e   : > { %849 = vmatpush2.msra.mxu1 %v549_v26  ;;  %779 = vmatprep.subr.mxu0 %v484_v27 }
  0x7f   : > { %850 = vmatprep.subr.mxu1 %v548_v28  ;;  %780 = vmatpush2.msra.mxu0 %v483_v29 }
  0x80   : > { %851 = vmatpush2.msra.mxu1 %v547_v30  ;;  %781 = vmatprep.subr.mxu0 %v482_v31 }
  0x81   : > { %852 = vmatprep.subr.mxu1 %v546_v32  ;;  %782 = vmatpush2.msra.mxu0 %v481_v33 }
  0x82   : > { %853 = vmatpush2.msra.mxu1 %v545_v34  ;;  %783 = vmatprep.subr.mxu0 %v480_v35 }
  0x83   : > { %854 = vmatprep.subr.mxu1 %v544_v36  ;;  %784 = vmatpush2.msra.mxu0 %v479_v37 }
  0x84   : > { %855 = vmatpush2.msra.mxu1 %v543_v38  ;;  %785 = vmatprep.subr.mxu0 %v478_v39  ;;  %v296_v38 = vld [vmem:[#allocation2] sm:$0xf] }
  0x85   : > { %856 = vmatprep.subr.mxu1 %v542_v40  ;;  %786 = vmatpush2.msra.mxu0 %v477_v41 }
  0x86   : > { %857 = vmatpush2.msra.mxu1 %v541_v42  ;;  %787 = vmatprep.subr.mxu0 %v476_v44 }
  0x87   : > { %858 = vmatprep.subr.mxu1 %v540_v45  ;;  %788 = vmatpush2.msra.mxu0 %v475_v46 }
  0x88   : > { %859 = vmatpush2.msra.mxu1 %v539_v47  ;;  %789 = vmatprep.subr.mxu0 %v474_v48 }
  0x89   : > { %860 = vmatprep.subr.mxu1 %v538_v49  ;;  %790 = vmatpush2.msra.mxu0 %v473_v50 }
  0x8a   : > { %861 = vmatpush2.msra.mxu1 %v537_v51  ;;  %791 = vmatprep.subr.mxu0 %v472_v52 }
  0x8b   : > { %862 = vmatprep.subr.mxu1 %v536_v54  ;;  %792 = vmatpush2.msra.mxu0 %v471_v55 }
  0x8c   : > { %863 = vmatpush2.msra.mxu1 %v535_v56  ;;  %793 = vmatprep.subr.mxu0 %v470_v57 }
  0x8d   : > { %864 = vmatprep.subr.mxu1 %v534_v58  ;;  %794 = vmatpush2.msra.mxu0 %v469_v60 }
  0x8e   : > { %865 = vmatpush2.msra.mxu1 %v533_v61  ;;  %795 = vmatprep.subr.mxu0 %v468_v62 }
  0x8f   : > { %866 = vmatprep.subr.mxu1 %v532_v63  ;;  %796 = vmatpush2.msra.mxu0 %v467_v0 }
  0x90   : > { %867 = vmatpush2.msra.mxu1 %v531_v1  ;;  %797 = vmatprep.subr.mxu0 %v466_v3 }
  0x91   : > { %868 = vmatprep.subr.mxu1 %v530_v4  ;;  %798 = vmatpush2.msra.mxu0 %v465_v5 }
  0x92   : > { %869 = vmatpush2.msra.mxu1 %v529_v6  ;;  %799 = vmatprep.subr.mxu0 %v464_v7 }
  0x93   : > { %870 = vmatprep.subr.mxu1 %v528_v8  ;;  %800 = vmatpush2.msra.mxu0 %v463_v10 }
  0x94   : > { %871 = vmatpush2.msra.mxu1 %v527_v11  ;;  %801 = vmatprep.subr.mxu0 %v462_v13 }
  0x95   : > { %872 = vmatprep.subr.mxu1 %v526_v14  ;;  %802 = vmatpush2.msra.mxu0 %v461_v15 }
  0x96   : > { %873 = vmatpush2.msra.mxu1 %v525_v16  ;;  %803 = vmatprep.subr.mxu0 %v460_v17 }
  0x97   : > { %874 = vmatprep.subr.mxu1 %v524_v18  ;;  %804 = vmatpush2.msra.mxu0 %v459_v20 }
  0x98   : > { %805 = vmatprep.mubr.f32.mxu0 %v589_v19  ;;  %875 = vmatpush2.msra.mxu1 %v523_v22 }
  0x99   : > { %876 = vmatprep.mubr.f32.mxu1 %v590_v21  ;;  %806 = vmatmul.mubr.f32.vlgmr.msra.gmra.mxu0 %v581_v9 }
  0x9a   : > { %877 = vmatmul.mubr.f32.vlgmr.msra.gmra.mxu1 %v588_v12 }
 0x117   : > { %v665_v23 = vpop.f32.mrf.mxu0 }
 0x118   : > { %v736_v24 = vpop.f32.mrf.mxu1 }
 0x119   : > { %v667_v25 = vpop.f32.mrf.mxu0  ;;  %v737_v27 = vadd.f32 %v736_v24, %v665_v23 }
 0x11a   : > { %v738_v26 = vpop.f32.mrf.mxu1 }
 0x11b   : > { %v739_v30 = vadd.f32 %v738_v26, %v667_v25 }
 0x159   : > { %v807_v28 = vpop.f32.mrf.mxu0 }
 0x15a   : > { %v878_v29 = vpop.f32.mrf.mxu1  ;;  %v808_v31 = vadd.f32 %v807_v28, %v737_v27 }
 0x15b   : > { %v809_v32 = vpop.f32.mrf.mxu0 }
 0x15c   : > { %v810_v33 = vadd.f32 %v809_v32, %v739_v30  ;;  %v880_v34 = vpop.f32.mrf.mxu1  ;;  %v879_v35 = vadd.f32 %v878_v29, %v808_v31 }
 0x15e   : > { %v881_v36 = vadd.f32 %v880_v34, %v810_v33 }
 0x160   : > { %v885_v37 = vcombine.low %v879_v35, %v881_v36 }
 0x162   : > { %v892_v39 = vrot.slane %v885_v37, %v1482_v53  ;;  %899 = sbr.rel (%p1243_p6) target bundleno = 824 (0x338), region = 56 }
 0x164   : > { %v894_v40 = vadd.f32 %v892_v39, %v296_v38 }
 0x166   : > { %895 = vst [vmem:[#allocation2] sm:$0xf] %v894_v40 }
 0x167   : > { %v953_v41 = vld [vmem:[%s1960_s3 + $0xf8] sm:$0xff]  ;;  %v952_v42 = vld [vmem:[%s1960_s3 + $0xf0] sm:$0xff]  ;;  %v951_v44 = vld [vmem:[%s1960_s3 + $0xe8] sm:$0xff]  ;;  %v905_v0 = vsub.s32 0, %v1470_v43  ;;  %v909_v1 = vsub.s32 1, %v1470_v43  ;;  %vm1191_vm0 = vcmask 123904  }
 0x168   : > { %1009 = vmatprep.subr.mxu0 %v953_v41  ;;  %v950_v45 = vld [vmem:[%s1960_s3 + $0xe0] sm:$0xff]  ;;  %v949_v46 = vld [vmem:[%s1960_s3 + $0xd8] sm:$0xff]  ;;  %v948_v47 = vld [vmem:[%s1960_s3 + $0xd0] sm:$0xff] }
 0x169   : > { %1010 = vmatpush1.msra.mxu0 %v952_v42  ;;  %v947_v48 = vld [vmem:[%s1960_s3 + $0xc8] sm:$0xff]  ;;  %v946_v49 = vld [vmem:[%s1960_s3 + $0xc0] sm:$0xff]  ;;  %v945_v50 = vld [vmem:[%s1960_s3 + $0xb8] sm:$0xff] }
 0x16a   : > { %1011 = vmatprep.subr.mxu0 %v951_v44  ;;  %v944_v51 = vld [vmem:[%s1960_s3 + $0xb0] sm:$0xff]  ;;  %v943_v52 = vld [vmem:[%s1960_s3 + $0xa8] sm:$0xff]  ;;  %v942_v54 = vld [vmem:[%s1960_s3 + $0xa0] sm:$0xff] }
 0x16b   : > { %1012 = vmatpush1.msra.mxu0 %v950_v45  ;;  %v941_v55 = vld [vmem:[%s1960_s3 + $0x98] sm:$0xff]  ;;  %v940_v56 = vld [vmem:[%s1960_s3 + $0x90] sm:$0xff]  ;;  %v939_v57 = vld [vmem:[%s1960_s3 + $0x88] sm:$0xff] }
 0x16c   : > { %1013 = vmatprep.subr.mxu0 %v949_v46  ;;  %v938_v58 = vld [vmem:[%s1960_s3 + $0x80] sm:$0xff]  ;;  %v937_v59 = vld [vmem:[%s1960_s3 + $0x78] sm:$0xff]  ;;  %v936_v60 = vld [vmem:[%s1960_s3 + $0x70] sm:$0xff] }
 0x16d   : > { %1014 = vmatpush1.msra.mxu0 %v948_v47  ;;  %v935_v61 = vld [vmem:[%s1960_s3 + $0x68] sm:$0xff]  ;;  %v934_v62 = vld [vmem:[%s1960_s3 + $0x60] sm:$0xff]  ;;  %v933_v63 = vld [vmem:[%s1960_s3 + $0x58] sm:$0xff] }
 0x16e   : > { %1015 = vmatprep.subr.mxu0 %v947_v48  ;;  %v932_v2 = vld [vmem:[%s1960_s3 + $0x50] sm:$0xff]  ;;  %v931_v3 = vld [vmem:[%s1960_s3 + $0x48] sm:$0xff]  ;;  %v930_v4 = vld [vmem:[%s1960_s3 + $0x40] sm:$0xff] }
 0x16f   : > { %1016 = vmatpush1.msra.mxu0 %v946_v49  ;;  %v929_v5 = vld [vmem:[%s1960_s3 + $0x38] sm:$0xff]  ;;  %v901_v6 = vld [vmem:[%s1959_s2] sm:$0x3]  ;;  %v1112_v11 = vld [vmem:[%s1962_s5 + $0xf0] sm:$0xff] }
 0x170   : > { %1017 = vmatprep.subr.mxu0 %v945_v50  ;;  %v906_v7 = vrot.slane %v901_v6, %v905_v0  ;;  %v910_v8 = vrot.slane %v901_v6, %v909_v1  ;;  %v1113_v9 = vld [vmem:[%s1962_s5 + $0xf8] sm:$0xff]  ;;  %v928_v12 = vld [vmem:[%s1960_s3 + $0x30] sm:$0xff]  ;;  %v927_v14 = vld [vmem:[%s1960_s3 + $0x28] sm:$0xff] }
 0x171   : > { %1018 = vmatpush1.msra.mxu0 %v944_v51  ;;  %v1097_v10 = vld [vmem:[%s1962_s5 + $0x78] sm:$0xff]  ;;  %1248 = vmatprep.subr.mxu1 %v1113_v9  ;;  %v1096_v13 = vld [vmem:[%s1962_s5 + $0x70] sm:$0xff]  ;;  %v1111_v16 = vld [vmem:[%s1962_s5 + $0xe8] sm:$0xff] }
 0x172   : > { %1019 = vmatprep.subr.mxu0 %v943_v52  ;;  %v911_v15 = vcombine.low %v906_v7, %v910_v8  ;;  %1249 = vmatpush3.msra.mxu1 %v1097_v10  ;;  %v926_v17 = vld [vmem:[%s1960_s3 + $0x20] sm:$0xff]  ;;  %v1095_v19 = vld [vmem:[%s1962_s5 + $0x68] sm:$0xff]  ;;  %v925_v20 = vld [vmem:[%s1960_s3 + $0x18] sm:$0xff] }
 0x173   : > { %1020 = vmatpush1.msra.mxu0 %v942_v54  ;;  %v900_v18 = vld [vmem:[#allocation2] sm:$0xf]  ;;  %1250 = vmatprep.subr.mxu1 %v1112_v11  ;;  %v924_v23 = vld [vmem:[%s1960_s3 + $0x10] sm:$0xff]  ;;  %v923_v25 = vld [vmem:[%s1960_s3 + $0x8] sm:$0xff] }
 0x174   : > { %1021 = vmatprep.subr.mxu0 %v941_v55  ;;  %v918_v21 = vrot.slane %v911_v15, %v1482_v53  ;;  %1251 = vmatpush3.msra.mxu1 %v1096_v13  ;;  %v1110_v22 = vld [vmem:[%s1962_s5 + $0xe0] sm:$0xff]  ;;  %v1109_v27 = vld [vmem:[%s1962_s5 + $0xd8] sm:$0xff]  ;;  %v1108_v32 = vld [vmem:[%s1962_s5 + $0xd0] sm:$0xff] }
 0x175   : > { %1022 = vmatpush1.msra.mxu0 %v940_v56  ;;  %1252 = vmatprep.subr.mxu1 %v1111_v16  ;;  %v1094_v24 = vld [vmem:[%s1962_s5 + $0x60] sm:$0xff]  ;;  %v1093_v29 = vld [vmem:[%s1962_s5 + $0x58] sm:$0xff]  ;;  %v984_v33 = vld [vmem:[%s1960_s3 + $0x1f0] sm:$0xff] }
 0x176   : > { %1023 = vmatprep.subr.mxu0 %v939_v57  ;;  %v920_v26 = vadd.f32 %v918_v21, %v900_v18  ;;  %1253 = vmatpush3.msra.mxu1 %v1095_v19  ;;  %v922_v28 = vld [vmem:[%s1960_s3] sm:$0xff]  ;;  %v985_v30 = vld [vmem:[%s1960_s3 + $0x1f8] sm:$0xff]  ;;  %v1092_v34 = vld [vmem:[%s1962_s5 + $0x50] sm:$0xff] }
 0x177   : > { %1024 = vmatpush1.msra.mxu0 %v938_v58  ;;  %1254 = vmatprep.subr.mxu1 %v1110_v22  ;;  %v983_v35 = vld [vmem:[%s1960_s3 + $0x1e8] sm:$0xff]  ;;  %v982_v38 = vld [vmem:[%s1960_s3 + $0x1e0] sm:$0xff]  ;;  %v981_v39 = vld [vmem:[%s1960_s3 + $0x1d8] sm:$0xff] }
 0x178   : > { %1025 = vmatprep.subr.mxu0 %v937_v59  ;;  %v921_v31 = vmax.f32 %v920_v26, 0.0  ;;  %1255 = vmatpush3.msra.mxu1 %v1094_v24  ;;  %v1107_v37 = vld [vmem:[%s1962_s5 + $0xc8] sm:$0xff]  ;;  %v980_v41 = vld [vmem:[%s1960_s3 + $0x1d0] sm:$0xff]  ;;  %v1106_v42 = vld [vmem:[%s1962_s5 + $0xc0] sm:$0xff] }
 0x179   : > { %1026 = vmatpush1.msra.mxu0 %v936_v60  ;;  %1256 = vmatprep.subr.mxu1 %v1109_v27  ;;  %v1091_v40 = vld [vmem:[%s1962_s5 + $0x48] sm:$0xff]  ;;  %v1090_v45 = vld [vmem:[%s1962_s5 + $0x40] sm:$0xff]  ;;  %v1105_v47 = vld [vmem:[%s1962_s5 + $0xb8] sm:$0xff] }
 0x17a   : > { %1027 = vmatprep.subr.mxu0 %v935_v61  ;;  %v1789_v36 = vrot.slane %v921_v31, %v1482_v53  ;;  %1257 = vmatpush3.msra.mxu1 %v1093_v29  ;;  %v979_v44 = vld [vmem:[%s1960_s3 + $0x1c8] sm:$0xff]  ;;  %v978_v46 = vld [vmem:[%s1960_s3 + $0x1c0] sm:$0xff]  ;;  %v977_v48 = vld [vmem:[%s1960_s3 + $0x1b8] sm:$0xff] }
 0x17b   : > { %1028 = vmatpush1.msra.mxu0 %v934_v62  ;;  %1258 = vmatprep.subr.mxu1 %v1108_v32  ;;  %v1089_v49 = vld [vmem:[%s1962_s5 + $0x38] sm:$0xff]  ;;  %v976_v50 = vld [vmem:[%s1960_s3 + $0x1b0] sm:$0xff]  ;;  %v975_v52 = vld [vmem:[%s1960_s3 + $0x1a8] sm:$0xff] }
 0x17c   : > { %1029 = vmatprep.subr.mxu0 %v933_v63  ;;  %v1006_v53 = vcombine.high %v1789_v36, %v1789_v36  ;;  %1259 = vmatpush3.msra.mxu1 %v1092_v34  ;;  %v1104_v51 = vld [vmem:[%s1962_s5 + $0xb0] sm:$0xff]  ;;  %v974_v55 = vld [vmem:[%s1960_s3 + $0x1a0] sm:$0xff]  ;;  %v1103_v56 = vld [vmem:[%s1962_s5 + $0xa8] sm:$0xff] }
 0x17d   : > { %1030 = vmatpush1.msra.mxu0 %v932_v2  ;;  %1260 = vmatprep.subr.mxu1 %v1107_v37  ;;  %v1088_v54 = vld [vmem:[%s1962_s5 + $0x30] sm:$0xff]  ;;  %v973_v57 = vld [vmem:[%s1960_s3 + $0x198] sm:$0xff]  ;;  %v1087_v58 = vld [vmem:[%s1962_s5 + $0x28] sm:$0xff] }
 0x17e   : > { %1031 = vmatprep.subr.mxu0 %v931_v3  ;;  %1073 = vmatprep.mubr.f32.mxu0 %v1006_v53  ;;  %v972_v59 = vld [vmem:[%s1960_s3 + $0x190] sm:$0xff]  ;;  %v1102_v60 = vld [vmem:[%s1962_s5 + $0xa0] sm:$0xff]  ;;  %v971_v61 = vld [vmem:[%s1960_s3 + $0x188] sm:$0xff] }
 0x17f   : > { %1032 = vmatpush1.msra.mxu0 %v930_v4  ;;  %1261 = vmatpush3.msra.mxu1 %v1091_v40  ;;  %v1086_v62 = vld [vmem:[%s1962_s5 + $0x20] sm:$0xff]  ;;  %v969_v2 = vld [vmem:[%s1960_s3 + $0x178] sm:$0xff]  ;;  %v968_v3 = vld [vmem:[%s1960_s3 + $0x170] sm:$0xff] }
 0x180   : > { %1033 = vmatprep.subr.mxu0 %v929_v5  ;;  %1262 = vmatprep.subr.mxu1 %v1106_v42  ;;  %v970_v63 = vld [vmem:[%s1960_s3 + $0x180] sm:$0xff]  ;;  %v967_v4 = vld [vmem:[%s1960_s3 + $0x168] sm:$0xff]  ;;  %v965_v6 = vld [vmem:[%s1960_s3 + $0x158] sm:$0xff] }
 0x181   : > { %1034 = vmatpush1.msra.mxu0 %v928_v12  ;;  %1263 = vmatpush3.msra.mxu1 %v1090_v45  ;;  %v966_v5 = vld [vmem:[%s1960_s3 + $0x160] sm:$0xff]  ;;  %v964_v7 = vld [vmem:[%s1960_s3 + $0x150] sm:$0xff]  ;;  %v963_v8 = vld [vmem:[%s1960_s3 + $0x148] sm:$0xff] }
 0x182   : > { %1035 = vmatprep.subr.mxu0 %v927_v14  ;;  %1264 = vmatprep.subr.mxu1 %v1105_v47  ;;  %v962_v9 = vld [vmem:[%s1960_s3 + $0x140] sm:$0xff]  ;;  %v961_v10 = vld [vmem:[%s1960_s3 + $0x138] sm:$0xff]  ;;  %v960_v11 = vld [vmem:[%s1960_s3 + $0x130] sm:$0xff] }
 0x183   : > { %1036 = vmatpush1.msra.mxu0 %v926_v17  ;;  %1265 = vmatpush3.msra.mxu1 %v1089_v49  ;;  %v959_v12 = vld [vmem:[%s1960_s3 + $0x128] sm:$0xff]  ;;  %v958_v13 = vld [vmem:[%s1960_s3 + $0x120] sm:$0xff]  ;;  %v957_v14 = vld [vmem:[%s1960_s3 + $0x118] sm:$0xff] }
 0x184   : > { %1037 = vmatprep.subr.mxu0 %v925_v20  ;;  %1266 = vmatprep.subr.mxu1 %v1104_v51  ;;  %v956_v15 = vld [vmem:[%s1960_s3 + $0x110] sm:$0xff]  ;;  %v955_v16 = vld [vmem:[%s1960_s3 + $0x108] sm:$0xff]  ;;  %v954_v17 = vld [vmem:[%s1960_s3 + $0x100] sm:$0xff] }
 0x185   : > { %1038 = vmatpush1.msra.mxu0 %v924_v23  ;;  %1267 = vmatpush3.msra.mxu1 %v1088_v54  ;;  %v1101_v18 = vld [vmem:[%s1962_s5 + $0x98] sm:$0xff]  ;;  %v1100_v20 = vld [vmem:[%s1962_s5 + $0x90] sm:$0xff]  ;;  %v1099_v22 = vld [vmem:[%s1962_s5 + $0x88] sm:$0xff] }
 0x186   : > { %1039 = vmatprep.subr.mxu0 %v923_v25  ;;  %1268 = vmatprep.subr.mxu1 %v1103_v56  ;;  %v1085_v19 = vld [vmem:[%s1962_s5 + $0x18] sm:$0xff]  ;;  %v1084_v21 = vld [vmem:[%s1962_s5 + $0x10] sm:$0xff]  ;;  %v1083_v23 = vld [vmem:[%s1962_s5 + $0x8] sm:$0xff] }
 0x187   : > { %1040 = vmatpush1.msra.mxu0 %v922_v28  ;;  %1269 = vmatpush3.msra.mxu1 %v1087_v58  ;;  %v1098_v24 = vld [vmem:[%s1962_s5 + $0x80] sm:$0xff] }
 0x188   : > { %1041 = vmatprep.subr.mxu0 %v985_v30  ;;  %1270 = vmatprep.subr.mxu1 %v1102_v60  ;;  %v1082_v25 = vld [vmem:[%s1962_s5] sm:$0xff] }
 0x189   : > { %1042 = vmatpush2.msra.mxu0 %v984_v33  ;;  %1271 = vmatpush3.msra.mxu1 %v1086_v62  ;;  %v986_v26 = vld [vmem:[%s1961_s4] sm:$0x3] }
 0x18a   : > { %1043 = vmatprep.subr.mxu0 %v983_v35  ;;  %1272 = vmatprep.subr.mxu1 %v1101_v18  ;;  %v991_v27 = vrot.slane %v986_v26, %v905_v0  ;;  %v995_v28 = vrot.slane %v986_v26, %v909_v1 }
 0x18b   : > { %1044 = vmatpush2.msra.mxu0 %v982_v38  ;;  %1273 = vmatpush3.msra.mxu1 %v1085_v19 }
 0x18c   : > { %1045 = vmatprep.subr.mxu0 %v981_v39  ;;  %1274 = vmatprep.subr.mxu1 %v1100_v20 }
 0x18d   : > { %1046 = vmatpush2.msra.mxu0 %v980_v41  ;;  %1275 = vmatpush3.msra.mxu1 %v1084_v21 }
 0x18e   : > { %1047 = vmatprep.subr.mxu0 %v979_v44  ;;  %1276 = vmatprep.subr.mxu1 %v1099_v22 }
 0x18f   : > { %1048 = vmatpush2.msra.mxu0 %v978_v46  ;;  %1277 = vmatpush3.msra.mxu1 %v1083_v23 }
 0x190   : > { %1049 = vmatprep.subr.mxu0 %v977_v48  ;;  %1278 = vmatprep.subr.mxu1 %v1098_v24 }
 0x191   : > { %1050 = vmatpush2.msra.mxu0 %v976_v50  ;;  %1279 = vmatpush3.msra.mxu1 %v1082_v25 }
 0x192   : > { %1051 = vmatprep.subr.mxu0 %v975_v52 }
 0x193   : > { %1052 = vmatpush2.msra.mxu0 %v974_v55 }
 0x194   : > { %1053 = vmatprep.subr.mxu0 %v973_v57 }
 0x195   : > { %1054 = vmatpush2.msra.mxu0 %v972_v59 }
 0x196   : > { %1055 = vmatprep.subr.mxu0 %v971_v61 }
 0x197   : > { %1056 = vmatpush2.msra.mxu0 %v970_v63 }
 0x198   : > { %1057 = vmatprep.subr.mxu0 %v969_v2 }
 0x199   : > { %1058 = vmatpush2.msra.mxu0 %v968_v3 }
 0x19a   : > { %1059 = vmatprep.subr.mxu0 %v967_v4 }
 0x19b   : > { %1060 = vmatpush2.msra.mxu0 %v966_v5 }
 0x19c   : > { %1061 = vmatprep.subr.mxu0 %v965_v6 }
 0x19d   : > { %1062 = vmatpush2.msra.mxu0 %v964_v7 }
 0x19e   : > { %1063 = vmatprep.subr.mxu0 %v963_v8 }
 0x19f   : > { %1064 = vmatpush2.msra.mxu0 %v962_v9 }
 0x1a0   : > { %1065 = vmatprep.subr.mxu0 %v961_v10 }
 0x1a1   : > { %1066 = vmatpush2.msra.mxu0 %v960_v11 }
 0x1a2   : > { %1067 = vmatprep.subr.mxu0 %v959_v12 }
 0x1a3   : > { %1068 = vmatpush2.msra.mxu0 %v958_v13 }
 0x1a4   : > { %1069 = vmatprep.subr.mxu0 %v957_v14 }
 0x1a5   : > { %1070 = vmatpush2.msra.mxu0 %v956_v15 }
 0x1a6   : > { %1071 = vmatprep.subr.mxu0 %v955_v16 }
 0x1a7   : > { %1072 = vmatpush2.msra.mxu0 %v954_v17 }
 0x1a8   : > { %1074 = vmatmul.mubr.f32.vlgmr.msra.gmra.mxu0 %v1789_v36  ;;  %v1244_v36 = vld [vmem:[%s1963_s6] ss:$0 sm:$0xff] }
 0x268   : > { %v1075_v29 = vpop.f32.mrf.mxu0 }
 0x269   : > { %v1076_v30 = vadd.f32 %v1075_v29, %v991_v27 }
 0x26a   : > { %v1077_v31 = vpop.f32.mrf.mxu0 }
 0x26b   : > { %v1078_v32 = vadd.f32 %v1077_v31, %v995_v28  ;;  %v1080_v34 = vmax.f32 %v1076_v30, 0.0 }
 0x26d   : > { %v1081_v33 = vmax.f32 %v1078_v32, 0.0 }
 0x26f   : > { %1185 = vmatprep.mubr.f32.mxu1 %v1081_v33 }
 0x270   : > { %1186 = vmatmul.mubr.f32.vlgmr.msra.gmra.mxu1 %v1080_v34 }
 0x330   : > { %v1280_v35 = vpop.f32.mrf.mxu1 }
 0x332   : > { %v1281_v37 = vpop.f32.mrf.mxu1 }
 0x333   : > { %v1282_v38 = vadd.f32 %v1281_v37, %v1280_v35 }
 0x335   : > { %v1188_v0 = vadd.f32 %v1282_v38, %v1244_v36 }
 0x337   : > { %1192 = vst.msk [vmem:[%s1964_s7] sm:$0x3] %vm1191_vm0, %v1188_v0 }
 0x338 PF: > { %s17_s24 = sadd.s32 1, %s1301_s24  }
 0x339   : > { %p14_p7 = scmp.ge.s32.totalorder %s17_s24, 10  }
 0x33b   :  { %16 = sbr.rel (!%p14_p7) target bundleno = 1 (0x1), region = 85 }

</bundles_post_ra>
